<compile_context>
chip_gen: v7x
topology: tpu7x:2x2x1
jax: 0.10.0
libtpu: 0.0.40
codegen_flags: <defaults>
</compile_context>

<pallas_src>
import functools
import math

import jax
import jax.numpy as jnp
from jax.experimental import pallas as pl
from jax.experimental.pallas import tpu as pltpu

# ----------------------------- small RoFormer config -------------------------------
VOCAB = 128          # tokenizer.vocab_size (synthetic)
HIDDEN = 32          # config.roformer.hidden_size (== embedding_size)
N_LAYERS = 2         # config.roformer.n_layers
N_HEADS = 4          # config.roformer.n_heads
HEAD_DIM = HIDDEN // N_HEADS
HALF = HEAD_DIM // 2
INTER = HIDDEN * 4   # intermediate_size
LN_EPS = 1e-12
BATCH = 2
SEQ = 8


# ============================ in-kernel math helpers ================================
def _gelu(x):
    # exact (erf) GELU, matching HF hidden_act="gelu"
    return 0.5 * x * (1.0 + jax.lax.erf(x * (1.0 / math.sqrt(2.0))))


def _layer_norm(x, gamma, beta, eps):
    mu = jnp.mean(x, axis=-1, keepdims=True)
    xc = x - mu
    var = jnp.mean(xc * xc, axis=-1, keepdims=True)
    return xc * jax.lax.rsqrt(var + eps) * gamma + beta


def _bf16(x):
    return x.astype(jnp.bfloat16)


# ============================ fully-fused Pallas kernel =============================
def _roformer_kernel(x_ref, ge_ref, be_ref,
                     wqkv_ref, bqkv_ref, wo_ref, bo_ref, g1_ref, b1_ref,
                     wfi_ref, bfi_ref, wfo_ref, bfo_ref, g2_ref, b2_ref,
                     cos_ref, sin_ref, mask_ref,
                     hw_ref, hb_ref, hg_ref, hbe_ref, dw_ref, db_ref,
                     o_ref, *, eps, n_layers, bsz, seq, n_heads):
    hidden = x_ref.shape[-1]
    dh = hidden // n_heads
    scale = 1.0 / math.sqrt(dh)

    # ---------------- embedding LayerNorm (no residual, no zeros DMA) --------------
    x = _layer_norm(x_ref[...], ge_ref[...], be_ref[...], eps)           # [N, H] f32

    cos = cos_ref[...]      # [N, H]  per-head [cos | cos], tiled over batch rows
    sin = sin_ref[...]      # [N, H]  per-head [-sin | sin], tiled over batch rows
    mask = mask_ref[...]    # [B, S]  additive key bias

    # ------------------------------ encoder layers ---------------------------------
    for l in range(n_layers):                                            # static unroll
        # merged projection: [Q | Qswap | K | Kswap | V] in one [N,H] @ [H,5H] matmul
        qkv = (jnp.dot(_bf16(x), wqkv_ref[l], preferred_element_type=jnp.float32)
               + bqkv_ref[l])
        q = qkv[:, 0:hidden]
        qs = qkv[:, hidden:2 * hidden]
        k = qkv[:, 2 * hidden:3 * hidden]
        ks = qkv[:, 3 * hidden:4 * hidden]
        v = qkv[:, 4 * hidden:5 * hidden]                                # rotary_value=False

        # full-width rotary: interleaved RoFormer rotation expressed in the per-head
        # [even | odd] half layout -> two elementwise FMAs, no narrow lane slices.
        qrot = q * cos + qs * sin
        krot = k * cos + ks * sin

        # per-batch / per-head attention (tiny, unrolled)
        ctx_rows = []
        for b in range(bsz):
            r0 = b * seq
            bias = mask[b:b + 1, :]                                      # [1, S]
            ctx_heads = []
            for h in range(n_heads):
                c0 = h * dh
                qh = qrot[r0:r0 + seq, c0:c0 + dh]                       # [S, dh]
                kh = krot[r0:r0 + seq, c0:c0 + dh]
                vh = v[r0:r0 + seq, c0:c0 + dh]
                # ONE dot per head: full dh contraction == aq.ak + bq.bk
                scores = jax.lax.dot_general(
                    qh, kh, (((1,), (1,)), ((), ())),
                    preferred_element_type=jnp.float32) * scale + bias
                scores = scores - jnp.max(scores, axis=-1, keepdims=True)
                p = jnp.exp(scores)
                p = p / jnp.sum(p, axis=-1, keepdims=True)               # exact softmax
                ctx_heads.append(jnp.dot(p, vh, preferred_element_type=jnp.float32))
            ctx_rows.append(jnp.concatenate(ctx_heads, axis=-1))         # [S, H]
        ctx = jnp.concatenate(ctx_rows, axis=0)                          # [N, H]

        # single out-projection for all heads / all batch rows
        attn = jnp.dot(_bf16(ctx), wo_ref[l], preferred_element_type=jnp.float32) + bo_ref[l]
        x1 = _layer_norm(attn + x, g1_ref[l], b1_ref[l], eps)
        inter = _gelu(jnp.dot(_bf16(x1), wfi_ref[l],
                              preferred_element_type=jnp.float32) + bfi_ref[l])
        ffn = jnp.dot(_bf16(inter), wfo_ref[l],
                      preferred_element_type=jnp.float32) + bfo_ref[l]
        x = _layer_norm(ffn + x1, g2_ref[l], b2_ref[l], eps)

    # ------------------- MLM head: dense + GELU + LN + tied decoder ----------------
    h = jnp.dot(_bf16(x), hw_ref[...], preferred_element_type=jnp.float32) + hb_ref[...]
    h = _layer_norm(_gelu(h), hg_ref[...], hbe_ref[...], eps)
    # single lane-dense [N, VOCAB=128] store -> only full-width stores hit HBM
    o_ref[...] = (jnp.dot(_bf16(h), dw_ref[...], preferred_element_type=jnp.float32)
                  + db_ref[...]).astype(o_ref.dtype)


# ============================== pallas_call wrapper =================================
def _fullblock(shape):
    return pl.BlockSpec(shape, lambda *_: (0,) * len(shape))


@jax.jit
def roformer_forward(fp, input_ids, attn_mask):
    b, s = input_ids.shape
    n = b * s
    # Embedding gather is plain-JAX glue; token_type_ids default to 0.
    x = (jnp.take(fp["word_emb"], input_ids.reshape(-1), axis=0)
         + fp["tok_type_emb"][0]).astype(jnp.float32)                    # [N, HIDDEN]
    # Extended attention mask: (1 - mask) * finfo(f32).min, additive over keys (HF).
    mask_bias = (1.0 - attn_mask.astype(jnp.float32)) * jnp.finfo(jnp.float32).min

    args = (x, fp["emb_g"], fp["emb_b"],
            fp["wqkv"], fp["bqkv"], fp["wo"], fp["bo"], fp["g1"], fp["b1"],
            fp["wfi"], fp["bfi"], fp["wfo"], fp["bfo"], fp["g2"], fp["b2"],
            fp["cos"], fp["sin"], mask_bias,
            fp["head_w"], fp["head_b"], fp["head_g"], fp["head_be"],
            fp["dec_w"], fp["dec_b"])

    logits = pl.pallas_call(
        functools.partial(_roformer_kernel, eps=LN_EPS, n_layers=N_LAYERS,
                          bsz=b, seq=s, n_heads=N_HEADS),
        out_shape=jax.ShapeDtypeStruct((n, VOCAB), jnp.float32),
        grid=(1,),
        in_specs=[_fullblock(a.shape) for a in args],
        out_specs=_fullblock((n, VOCAB)),
        compiler_params=pltpu.CompilerParams(dimension_semantics=("arbitrary",)),
    )(*args)
    return logits.reshape(b, s, VOCAB)


# ============================ plain-JAX glue (tables / params) ======================
def _halflayout_perm(swap):
    """Per head: even dims then odd dims ([q1|q2]); swap=True gives [q2|q1]."""
    idx = []
    for h in range(N_HEADS):
        base = h * HEAD_DIM
        even = [base + i for i in range(0, HEAD_DIM, 2)]
        odd = [base + i for i in range(1, HEAD_DIM, 2)]
        idx += (odd + even) if swap else (even + odd)
    return jnp.asarray(idx, dtype=jnp.int32)


def make_rotary_tables_fused(batch, seq, head_dim, n_heads):
    """Full-width [B*S, HIDDEN] cos / signed-sin tables matching the half layout."""
    # HF RoFormerSinusoidalPositionalEmbedding: inv_freq_j = 10000^(-2j/dim)
    pos = jnp.arange(seq, dtype=jnp.float32)
    inv_freq = 1.0 / (10000.0 ** (jnp.arange(0, head_dim, 2, dtype=jnp.float32) / head_dim))
    freqs = pos[:, None] * inv_freq[None, :]                      # [S, dh/2]
    cos_h, sin_h = jnp.cos(freqs), jnp.sin(freqs)
    cos_head = jnp.concatenate([cos_h, cos_h], axis=-1)           # [S, dh]  [cos | cos]
    sin_head = jnp.concatenate([-sin_h, sin_h], axis=-1)          # [S, dh]  [-sin | sin]
    cos_full = jnp.tile(cos_head, (1, n_heads))                   # [S, HIDDEN]
    sin_full = jnp.tile(sin_head, (1, n_heads))
    return jnp.tile(cos_full, (batch, 1)), jnp.tile(sin_full, (batch, 1))


def init_params(key):
    keys = iter(jax.random.split(key, 16 + 16 * N_LAYERS))

    def dense(din, dout):
        w = jax.random.normal(next(keys), (din, dout), jnp.float32) * 0.02
        return w, jnp.zeros((dout,), jnp.float32)

    def ln(d):
        return jnp.ones((d,), jnp.float32), jnp.zeros((d,), jnp.float32)

    params = {
        "word_emb": jax.random.normal(next(keys), (VOCAB, HIDDEN), jnp.float32) * 0.02,
        "tok_type_emb": jax.random.normal(next(keys), (2, HIDDEN), jnp.float32) * 0.02,
        "emb_ln": ln(HIDDEN),
        "layers": [],
        "head_dense": dense(HIDDEN, HIDDEN),
        "head_ln": ln(HIDDEN),
        "decoder_b": jnp.zeros((VOCAB,), jnp.float32),
    }
    for _ in range(N_LAYERS):
        params["layers"].append({
            "q": dense(HIDDEN, HIDDEN), "k": dense(HIDDEN, HIDDEN), "v": dense(HIDDEN, HIDDEN),
            "o": dense(HIDDEN, HIDDEN), "ln1": ln(HIDDEN),
            "ffn_in": dense(HIDDEN, INTER), "ffn_out": dense(INTER, HIDDEN), "ln2": ln(HIDDEN),
        })
    return params


def fuse_params(params, batch=BATCH, seq=SEQ):
    """One-time repack of HF-style params into kernel-ready fused/stacked weights."""
    perm = _halflayout_perm(swap=False)
    perm_s = _halflayout_perm(swap=True)
    cos_t, sin_t = make_rotary_tables_fused(batch, seq, HEAD_DIM, N_HEADS)

    def stack(fn):
        return jnp.stack([fn(p) for p in params["layers"]], axis=0)

    fused = {
        "word_emb": params["word_emb"],
        "tok_type_emb": params["tok_type_emb"],
        "emb_g": params["emb_ln"][0][None, :],
        "emb_b": params["emb_ln"][1][None, :],
        "cos": cos_t, "sin": sin_t,                                   # [B*S, HIDDEN]
        "head_w": params["head_dense"][0].astype(jnp.bfloat16),
        "head_b": params["head_dense"][1][None, :],
        "head_g": params["head_ln"][0][None, :],
        "head_be": params["head_ln"][1][None, :],
        # decoder weight tied to word embeddings (inference-only tie; re-run
        # fuse_params if word_emb is ever updated)
        "dec_w": params["word_emb"].T.astype(jnp.bfloat16),
        "dec_b": params["decoder_b"][None, :],
        # [L, H, 5H]: [Wq_perm | Wq_perm_swapped | Wk_perm | Wk_perm_swapped | Wv]
        "wqkv": stack(lambda p: jnp.concatenate(
            [p["q"][0][:, perm], p["q"][0][:, perm_s],
             p["k"][0][:, perm], p["k"][0][:, perm_s], p["v"][0]],
            axis=1)).astype(jnp.bfloat16),
        "bqkv": stack(lambda p: jnp.concatenate(
            [p["q"][1][perm], p["q"][1][perm_s],
             p["k"][1][perm], p["k"][1][perm_s], p["v"][1]])[None, :]),
        "wo": stack(lambda p: p["o"][0]).astype(jnp.bfloat16),
        "bo": stack(lambda p: p["o"][1][None, :]),
        "g1": stack(lambda p: p["ln1"][0][None, :]),
        "b1": stack(lambda p: p["ln1"][1][None, :]),
        "wfi": stack(lambda p: p["ffn_in"][0]).astype(jnp.bfloat16),
        "bfi": stack(lambda p: p["ffn_in"][1][None, :]),
        "wfo": stack(lambda p: p["ffn_out"][0]).astype(jnp.bfloat16),
        "bfo": stack(lambda p: p["ffn_out"][1][None, :]),
        "g2": stack(lambda p: p["ln2"][0][None, :]),
        "b2": stack(lambda p: p["ln2"][1][None, :]),
    }
    return fused


# ===================================== main =========================================
if __name__ == "__main__":
    key = jax.random.PRNGKey(0)
    pkey, ikey = jax.random.split(key)

    params = init_params(pkey)
    fused_params = fuse_params(params)

    input_ids = jax.random.randint(ikey, (BATCH, SEQ), 1, VOCAB, dtype=jnp.int32)
    attn_mask = jnp.ones((BATCH, SEQ), jnp.int32).at[1, SEQ - 2:].set(0)  # pad tail of seq 1

    logits = roformer_forward(fused_params, input_ids, attn_mask)
    jax.block_until_ready(logits)

    assert logits.shape == (BATCH, SEQ, VOCAB), logits.shape
    assert bool(jnp.all(jnp.isfinite(logits)))
    print("KERNEL_OK")
</pallas_src>

<mosaic_0001>
module attributes {stable_mosaic.version = 11 : i64} {
  func.func @_roformer_kernel(%arg0: i32, %arg1: memref<16x32xf32, #tpu.memory_space<vmem>>, %arg2: memref<1x32xf32, #tpu.memory_space<vmem>>, %arg3: memref<1x32xf32, #tpu.memory_space<vmem>>, %arg4: memref<2x32x160xbf16, #tpu.memory_space<vmem>>, %arg5: memref<2x1x160xf32, #tpu.memory_space<vmem>>, %arg6: memref<2x32x32xbf16, #tpu.memory_space<vmem>>, %arg7: memref<2x1x32xf32, #tpu.memory_space<vmem>>, %arg8: memref<2x1x32xf32, #tpu.memory_space<vmem>>, %arg9: memref<2x1x32xf32, #tpu.memory_space<vmem>>, %arg10: memref<2x32x128xbf16, #tpu.memory_space<vmem>>, %arg11: memref<2x1x128xf32, #tpu.memory_space<vmem>>, %arg12: memref<2x128x32xbf16, #tpu.memory_space<vmem>>, %arg13: memref<2x1x32xf32, #tpu.memory_space<vmem>>, %arg14: memref<2x1x32xf32, #tpu.memory_space<vmem>>, %arg15: memref<2x1x32xf32, #tpu.memory_space<vmem>>, %arg16: memref<16x32xf32, #tpu.memory_space<vmem>>, %arg17: memref<16x32xf32, #tpu.memory_space<vmem>>, %arg18: memref<2x8xf32, #tpu.memory_space<vmem>>, %arg19: memref<32x32xbf16, #tpu.memory_space<vmem>>, %arg20: memref<1x32xf32, #tpu.memory_space<vmem>>, %arg21: memref<1x32xf32, #tpu.memory_space<vmem>>, %arg22: memref<1x32xf32, #tpu.memory_space<vmem>>, %arg23: memref<32x128xbf16, #tpu.memory_space<vmem>>, %arg24: memref<1x128xf32, #tpu.memory_space<vmem>>, %arg25: memref<16x128xf32, #tpu.memory_space<vmem>>) attributes {dimension_semantics = [#tpu.dimension_semantics<arbitrary>], iteration_bounds = array<i64: 1>, scalar_prefetch = 0 : i64, scratch_operands = 0 : i64, tpu.core_type = #tpu.core_type<tc>, window_params = [{pipeline_mode = #tpu.pipeline_mode<synchronous>, transform_indices = @transform_0, window_bounds = array<i64: 16, 32>}, {pipeline_mode = #tpu.pipeline_mode<synchronous>, transform_indices = @transform_1, window_bounds = array<i64: 1, 32>}, {pipeline_mode = #tpu.pipeline_mode<synchronous>, transform_indices = @transform_2, window_bounds = array<i64: 1, 32>}, {pipeline_mode = #tpu.pipeline_mode<synchronous>, transform_indices = @transform_3, window_bounds = array<i64: 2, 32, 160>}, {pipeline_mode = #tpu.pipeline_mode<synchronous>, transform_indices = @transform_4, window_bounds = array<i64: 2, 1, 160>}, {pipeline_mode = #tpu.pipeline_mode<synchronous>, transform_indices = @transform_5, window_bounds = array<i64: 2, 32, 32>}, {pipeline_mode = #tpu.pipeline_mode<synchronous>, transform_indices = @transform_6, window_bounds = array<i64: 2, 1, 32>}, {pipeline_mode = #tpu.pipeline_mode<synchronous>, transform_indices = @transform_7, window_bounds = array<i64: 2, 1, 32>}, {pipeline_mode = #tpu.pipeline_mode<synchronous>, transform_indices = @transform_8, window_bounds = array<i64: 2, 1, 32>}, {pipeline_mode = #tpu.pipeline_mode<synchronous>, transform_indices = @transform_9, window_bounds = array<i64: 2, 32, 128>}, {pipeline_mode = #tpu.pipeline_mode<synchronous>, transform_indices = @transform_10, window_bounds = array<i64: 2, 1, 128>}, {pipeline_mode = #tpu.pipeline_mode<synchronous>, transform_indices = @transform_11, window_bounds = array<i64: 2, 128, 32>}, {pipeline_mode = #tpu.pipeline_mode<synchronous>, transform_indices = @transform_12, window_bounds = array<i64: 2, 1, 32>}, {pipeline_mode = #tpu.pipeline_mode<synchronous>, transform_indices = @transform_13, window_bounds = array<i64: 2, 1, 32>}, {pipeline_mode = #tpu.pipeline_mode<synchronous>, transform_indices = @transform_14, window_bounds = array<i64: 2, 1, 32>}, {pipeline_mode = #tpu.pipeline_mode<synchronous>, transform_indices = @transform_15, window_bounds = array<i64: 16, 32>}, {pipeline_mode = #tpu.pipeline_mode<synchronous>, transform_indices = @transform_16, window_bounds = array<i64: 16, 32>}, {pipeline_mode = #tpu.pipeline_mode<synchronous>, transform_indices = @transform_17, window_bounds = array<i64: 2, 8>}, {pipeline_mode = #tpu.pipeline_mode<synchronous>, transform_indices = @transform_18, window_bounds = array<i64: 32, 32>}, {pipeline_mode = #tpu.pipeline_mode<synchronous>, transform_indices = @transform_19, window_bounds = array<i64: 1, 32>}, {pipeline_mode = #tpu.pipeline_mode<synchronous>, transform_indices = @transform_20, window_bounds = array<i64: 1, 32>}, {pipeline_mode = #tpu.pipeline_mode<synchronous>, transform_indices = @transform_21, window_bounds = array<i64: 1, 32>}, {pipeline_mode = #tpu.pipeline_mode<synchronous>, transform_indices = @transform_22, window_bounds = array<i64: 32, 128>}, {pipeline_mode = #tpu.pipeline_mode<synchronous>, transform_indices = @transform_23, window_bounds = array<i64: 1, 128>}, {pipeline_mode = #tpu.pipeline_mode<synchronous>, transform_indices = @transform_24, window_bounds = array<i64: 16, 128>}]} {
    %c0 = arith.constant 0 : index
    %c0_0 = arith.constant 0 : index
    %0 = vector.load %arg1[%c0, %c0_0] : memref<16x32xf32, #tpu.memory_space<vmem>>, vector<16x32xf32>
    %c0_1 = arith.constant 0 : index
    %c0_2 = arith.constant 0 : index
    %1 = vector.load %arg2[%c0_1, %c0_2] : memref<1x32xf32, #tpu.memory_space<vmem>>, vector<1x32xf32>
    %c0_3 = arith.constant 0 : index
    %c0_4 = arith.constant 0 : index
    %2 = vector.load %arg3[%c0_3, %c0_4] : memref<1x32xf32, #tpu.memory_space<vmem>>, vector<1x32xf32>
    %cst = arith.constant dense<0.000000e+00> : vector<16xf32>
    %3 = vector.multi_reduction <add>, %0, %cst [1] : vector<16x32xf32> to vector<16xf32>
    %4 = vector.shape_cast %3 : vector<16xf32> to vector<16x1xf32>
    %cst_5 = arith.constant 3.200000e+01 : f32
    %5 = vector.broadcast %cst_5 : f32 to vector<16x1xf32>
    %6 = arith.divf %4, %5 : vector<16x1xf32>
    %7 = vector.broadcast %6 : vector<16x1xf32> to vector<16x32xf32>
    %8 = arith.subf %0, %7 : vector<16x32xf32>
    %9 = arith.mulf %8, %8 : vector<16x32xf32>
    %cst_6 = arith.constant dense<0.000000e+00> : vector<16xf32>
    %10 = vector.multi_reduction <add>, %9, %cst_6 [1] : vector<16x32xf32> to vector<16xf32>
    %11 = vector.shape_cast %10 : vector<16xf32> to vector<16x1xf32>
    %cst_7 = arith.constant 3.200000e+01 : f32
    %12 = vector.broadcast %cst_7 : f32 to vector<16x1xf32>
    %13 = arith.divf %11, %12 : vector<16x1xf32>
    %cst_8 = arith.constant 9.99999996E-13 : f32
    %14 = vector.broadcast %cst_8 : f32 to vector<16x1xf32>
    %15 = arith.addf %13, %14 : vector<16x1xf32>
    %16 = math.rsqrt %15 : vector<16x1xf32>
    %17 = vector.broadcast %16 : vector<16x1xf32> to vector<16x32xf32>
    %18 = arith.mulf %8, %17 : vector<16x32xf32>
    %19 = vector.broadcast %1 : vector<1x32xf32> to vector<16x32xf32>
    %20 = arith.mulf %18, %19 : vector<16x32xf32>
    %21 = vector.broadcast %2 : vector<1x32xf32> to vector<16x32xf32>
    %22 = arith.addf %20, %21 : vector<16x32xf32>
    %c0_9 = arith.constant 0 : index
    %c0_10 = arith.constant 0 : index
    %23 = vector.load %arg16[%c0_9, %c0_10] : memref<16x32xf32, #tpu.memory_space<vmem>>, vector<16x32xf32>
    %c0_11 = arith.constant 0 : index
    %c0_12 = arith.constant 0 : index
    %24 = vector.load %arg17[%c0_11, %c0_12] : memref<16x32xf32, #tpu.memory_space<vmem>>, vector<16x32xf32>
    %c0_13 = arith.constant 0 : index
    %c0_14 = arith.constant 0 : index
    %25 = vector.load %arg18[%c0_13, %c0_14] : memref<2x8xf32, #tpu.memory_space<vmem>>, vector<2x8xf32>
    %26 = arith.truncf %22 : vector<16x32xf32> to vector<16x32xbf16>
    %c0_15 = arith.constant 0 : index
    %c0_16 = arith.constant 0 : index
    %c0_17 = arith.constant 0 : index
    %27 = vector.load %arg4[%c0_15, %c0_16, %c0_17] : memref<2x32x160xbf16, #tpu.memory_space<vmem>>, vector<1x32x160xbf16>
    %28 = vector.shape_cast %27 : vector<1x32x160xbf16> to vector<32x160xbf16>
    %cst_18 = arith.constant dense<0.000000e+00> : vector<16x160xf32>
    %29 = tpu.matmul %26, %28, %cst_18 {dimension_numbers = #tpu.dot_dimension_numbers<[1], [0], [0], [1], [0, 0, 1, 1], [], []>} : vector<16x32xbf16>, vector<32x160xbf16>, vector<16x160xf32> -> vector<16x160xf32>
    %c0_19 = arith.constant 0 : index
    %c0_20 = arith.constant 0 : index
    %c0_21 = arith.constant 0 : index
    %30 = vector.load %arg5[%c0_19, %c0_20, %c0_21] : memref<2x1x160xf32, #tpu.memory_space<vmem>>, vector<1x1x160xf32>
    %31 = vector.shape_cast %30 : vector<1x1x160xf32> to vector<1x160xf32>
    %32 = vector.broadcast %31 : vector<1x160xf32> to vector<16x160xf32>
    %33 = arith.addf %29, %32 : vector<16x160xf32>
    %34 = vector.extract_strided_slice %33 {offsets = [0, 0], sizes = [16, 32], strides = [1, 1]} : vector<16x160xf32> to vector<16x32xf32>
    %35 = vector.extract_strided_slice %33 {offsets = [0, 32], sizes = [16, 32], strides = [1, 1]} : vector<16x160xf32> to vector<16x32xf32>
    %36 = vector.extract_strided_slice %33 {offsets = [0, 64], sizes = [16, 32], strides = [1, 1]} : vector<16x160xf32> to vector<16x32xf32>
    %37 = vector.extract_strided_slice %33 {offsets = [0, 96], sizes = [16, 32], strides = [1, 1]} : vector<16x160xf32> to vector<16x32xf32>
    %38 = vector.extract_strided_slice %33 {offsets = [0, 128], sizes = [16, 32], strides = [1, 1]} : vector<16x160xf32> to vector<16x32xf32>
    %39 = arith.mulf %34, %23 : vector<16x32xf32>
    %40 = arith.mulf %35, %24 : vector<16x32xf32>
    %41 = arith.addf %39, %40 : vector<16x32xf32>
    %42 = arith.mulf %36, %23 : vector<16x32xf32>
    %43 = arith.mulf %37, %24 : vector<16x32xf32>
    %44 = arith.addf %42, %43 : vector<16x32xf32>
    %45 = vector.extract_strided_slice %25 {offsets = [0, 0], sizes = [1, 8], strides = [1, 1]} : vector<2x8xf32> to vector<1x8xf32>
    %46 = vector.extract_strided_slice %41 {offsets = [0, 0], sizes = [8, 8], strides = [1, 1]} : vector<16x32xf32> to vector<8x8xf32>
    %47 = vector.extract_strided_slice %44 {offsets = [0, 0], sizes = [8, 8], strides = [1, 1]} : vector<16x32xf32> to vector<8x8xf32>
    %48 = vector.extract_strided_slice %38 {offsets = [0, 0], sizes = [8, 8], strides = [1, 1]} : vector<16x32xf32> to vector<8x8xf32>
    %cst_22 = arith.constant dense<0.000000e+00> : vector<8x8xf32>
    %49 = tpu.matmul %46, %47, %cst_22 {dimension_numbers = #tpu.dot_dimension_numbers<[1], [1], [0], [0], [0, 0, 1, 0], [], []>} : vector<8x8xf32>, vector<8x8xf32>, vector<8x8xf32> -> vector<8x8xf32>
    %cst_23 = arith.constant 0.353553385 : f32
    %50 = vector.broadcast %cst_23 : f32 to vector<8x8xf32>
    %51 = arith.mulf %49, %50 : vector<8x8xf32>
    %52 = vector.broadcast %45 : vector<1x8xf32> to vector<8x8xf32>
    %53 = arith.addf %51, %52 : vector<8x8xf32>
    %cst_24 = arith.constant dense<0xFF800000> : vector<8xf32>
    %54 = vector.multi_reduction <maximumf>, %53, %cst_24 [1] : vector<8x8xf32> to vector<8xf32>
    %55 = vector.shape_cast %54 : vector<8xf32> to vector<8x1xf32>
    %56 = vector.broadcast %55 : vector<8x1xf32> to vector<8x8xf32>
    %57 = arith.subf %53, %56 : vector<8x8xf32>
    %58 = math.exp %57 : vector<8x8xf32>
    %cst_25 = arith.constant dense<0.000000e+00> : vector<8xf32>
    %59 = vector.multi_reduction <add>, %58, %cst_25 [1] : vector<8x8xf32> to vector<8xf32>
    %60 = vector.shape_cast %59 : vector<8xf32> to vector<8x1xf32>
    %61 = vector.broadcast %60 : vector<8x1xf32> to vector<8x8xf32>
    %62 = arith.divf %58, %61 : vector<8x8xf32>
    %cst_26 = arith.constant dense<0.000000e+00> : vector<8x8xf32>
    %63 = tpu.matmul %62, %48, %cst_26 {dimension_numbers = #tpu.dot_dimension_numbers<[1], [0], [0], [1], [0, 0, 1, 1], [], []>} : vector<8x8xf32>, vector<8x8xf32>, vector<8x8xf32> -> vector<8x8xf32>
    %64 = vector.extract_strided_slice %41 {offsets = [0, 8], sizes = [8, 8], strides = [1, 1]} : vector<16x32xf32> to vector<8x8xf32>
    %65 = vector.extract_strided_slice %44 {offsets = [0, 8], sizes = [8, 8], strides = [1, 1]} : vector<16x32xf32> to vector<8x8xf32>
    %66 = vector.extract_strided_slice %38 {offsets = [0, 8], sizes = [8, 8], strides = [1, 1]} : vector<16x32xf32> to vector<8x8xf32>
    %cst_27 = arith.constant dense<0.000000e+00> : vector<8x8xf32>
    %67 = tpu.matmul %64, %65, %cst_27 {dimension_numbers = #tpu.dot_dimension_numbers<[1], [1], [0], [0], [0, 0, 1, 0], [], []>} : vector<8x8xf32>, vector<8x8xf32>, vector<8x8xf32> -> vector<8x8xf32>
    %cst_28 = arith.constant 0.353553385 : f32
    %68 = vector.broadcast %cst_28 : f32 to vector<8x8xf32>
    %69 = arith.mulf %67, %68 : vector<8x8xf32>
    %70 = vector.broadcast %45 : vector<1x8xf32> to vector<8x8xf32>
    %71 = arith.addf %69, %70 : vector<8x8xf32>
    %cst_29 = arith.constant dense<0xFF800000> : vector<8xf32>
    %72 = vector.multi_reduction <maximumf>, %71, %cst_29 [1] : vector<8x8xf32> to vector<8xf32>
    %73 = vector.shape_cast %72 : vector<8xf32> to vector<8x1xf32>
    %74 = vector.broadcast %73 : vector<8x1xf32> to vector<8x8xf32>
    %75 = arith.subf %71, %74 : vector<8x8xf32>
    %76 = math.exp %75 : vector<8x8xf32>
    %cst_30 = arith.constant dense<0.000000e+00> : vector<8xf32>
    %77 = vector.multi_reduction <add>, %76, %cst_30 [1] : vector<8x8xf32> to vector<8xf32>
    %78 = vector.shape_cast %77 : vector<8xf32> to vector<8x1xf32>
    %79 = vector.broadcast %78 : vector<8x1xf32> to vector<8x8xf32>
    %80 = arith.divf %76, %79 : vector<8x8xf32>
    %cst_31 = arith.constant dense<0.000000e+00> : vector<8x8xf32>
    %81 = tpu.matmul %80, %66, %cst_31 {dimension_numbers = #tpu.dot_dimension_numbers<[1], [0], [0], [1], [0, 0, 1, 1], [], []>} : vector<8x8xf32>, vector<8x8xf32>, vector<8x8xf32> -> vector<8x8xf32>
    %82 = vector.extract_strided_slice %41 {offsets = [0, 16], sizes = [8, 8], strides = [1, 1]} : vector<16x32xf32> to vector<8x8xf32>
    %83 = vector.extract_strided_slice %44 {offsets = [0, 16], sizes = [8, 8], strides = [1, 1]} : vector<16x32xf32> to vector<8x8xf32>
    %84 = vector.extract_strided_slice %38 {offsets = [0, 16], sizes = [8, 8], strides = [1, 1]} : vector<16x32xf32> to vector<8x8xf32>
    %cst_32 = arith.constant dense<0.000000e+00> : vector<8x8xf32>
    %85 = tpu.matmul %82, %83, %cst_32 {dimension_numbers = #tpu.dot_dimension_numbers<[1], [1], [0], [0], [0, 0, 1, 0], [], []>} : vector<8x8xf32>, vector<8x8xf32>, vector<8x8xf32> -> vector<8x8xf32>
    %cst_33 = arith.constant 0.353553385 : f32
    %86 = vector.broadcast %cst_33 : f32 to vector<8x8xf32>
    %87 = arith.mulf %85, %86 : vector<8x8xf32>
    %88 = vector.broadcast %45 : vector<1x8xf32> to vector<8x8xf32>
    %89 = arith.addf %87, %88 : vector<8x8xf32>
    %cst_34 = arith.constant dense<0xFF800000> : vector<8xf32>
    %90 = vector.multi_reduction <maximumf>, %89, %cst_34 [1] : vector<8x8xf32> to vector<8xf32>
    %91 = vector.shape_cast %90 : vector<8xf32> to vector<8x1xf32>
    %92 = vector.broadcast %91 : vector<8x1xf32> to vector<8x8xf32>
    %93 = arith.subf %89, %92 : vector<8x8xf32>
    %94 = math.exp %93 : vector<8x8xf32>
    %cst_35 = arith.constant dense<0.000000e+00> : vector<8xf32>
    %95 = vector.multi_reduction <add>, %94, %cst_35 [1] : vector<8x8xf32> to vector<8xf32>
    %96 = vector.shape_cast %95 : vector<8xf32> to vector<8x1xf32>
    %97 = vector.broadcast %96 : vector<8x1xf32> to vector<8x8xf32>
    %98 = arith.divf %94, %97 : vector<8x8xf32>
    %cst_36 = arith.constant dense<0.000000e+00> : vector<8x8xf32>
    %99 = tpu.matmul %98, %84, %cst_36 {dimension_numbers = #tpu.dot_dimension_numbers<[1], [0], [0], [1], [0, 0, 1, 1], [], []>} : vector<8x8xf32>, vector<8x8xf32>, vector<8x8xf32> -> vector<8x8xf32>
    %100 = vector.extract_strided_slice %41 {offsets = [0, 24], sizes = [8, 8], strides = [1, 1]} : vector<16x32xf32> to vector<8x8xf32>
    %101 = vector.extract_strided_slice %44 {offsets = [0, 24], sizes = [8, 8], strides = [1, 1]} : vector<16x32xf32> to vector<8x8xf32>
    %102 = vector.extract_strided_slice %38 {offsets = [0, 24], sizes = [8, 8], strides = [1, 1]} : vector<16x32xf32> to vector<8x8xf32>
    %cst_37 = arith.constant dense<0.000000e+00> : vector<8x8xf32>
    %103 = tpu.matmul %100, %101, %cst_37 {dimension_numbers = #tpu.dot_dimension_numbers<[1], [1], [0], [0], [0, 0, 1, 0], [], []>} : vector<8x8xf32>, vector<8x8xf32>, vector<8x8xf32> -> vector<8x8xf32>
    %cst_38 = arith.constant 0.353553385 : f32
    %104 = vector.broadcast %cst_38 : f32 to vector<8x8xf32>
    %105 = arith.mulf %103, %104 : vector<8x8xf32>
    %106 = vector.broadcast %45 : vector<1x8xf32> to vector<8x8xf32>
    %107 = arith.addf %105, %106 : vector<8x8xf32>
    %cst_39 = arith.constant dense<0xFF800000> : vector<8xf32>
    %108 = vector.multi_reduction <maximumf>, %107, %cst_39 [1] : vector<8x8xf32> to vector<8xf32>
    %109 = vector.shape_cast %108 : vector<8xf32> to vector<8x1xf32>
    %110 = vector.broadcast %109 : vector<8x1xf32> to vector<8x8xf32>
    %111 = arith.subf %107, %110 : vector<8x8xf32>
    %112 = math.exp %111 : vector<8x8xf32>
    %cst_40 = arith.constant dense<0.000000e+00> : vector<8xf32>
    %113 = vector.multi_reduction <add>, %112, %cst_40 [1] : vector<8x8xf32> to vector<8xf32>
    %114 = vector.shape_cast %113 : vector<8xf32> to vector<8x1xf32>
    %115 = vector.broadcast %114 : vector<8x1xf32> to vector<8x8xf32>
    %116 = arith.divf %112, %115 : vector<8x8xf32>
    %cst_41 = arith.constant dense<0.000000e+00> : vector<8x8xf32>
    %117 = tpu.matmul %116, %102, %cst_41 {dimension_numbers = #tpu.dot_dimension_numbers<[1], [0], [0], [1], [0, 0, 1, 1], [], []>} : vector<8x8xf32>, vector<8x8xf32>, vector<8x8xf32> -> vector<8x8xf32>
    %118 = tpu.concatenate %63, %81, %99, %117 in 1 : vector<8x8xf32>, vector<8x8xf32>, vector<8x8xf32>, vector<8x8xf32> -> vector<8x32xf32>
    %119 = vector.extract_strided_slice %25 {offsets = [1, 0], sizes = [1, 8], strides = [1, 1]} : vector<2x8xf32> to vector<1x8xf32>
    %120 = vector.extract_strided_slice %41 {offsets = [8, 0], sizes = [8, 8], strides = [1, 1]} : vector<16x32xf32> to vector<8x8xf32>
    %121 = vector.extract_strided_slice %44 {offsets = [8, 0], sizes = [8, 8], strides = [1, 1]} : vector<16x32xf32> to vector<8x8xf32>
    %122 = vector.extract_strided_slice %38 {offsets = [8, 0], sizes = [8, 8], strides = [1, 1]} : vector<16x32xf32> to vector<8x8xf32>
    %cst_42 = arith.constant dense<0.000000e+00> : vector<8x8xf32>
    %123 = tpu.matmul %120, %121, %cst_42 {dimension_numbers = #tpu.dot_dimension_numbers<[1], [1], [0], [0], [0, 0, 1, 0], [], []>} : vector<8x8xf32>, vector<8x8xf32>, vector<8x8xf32> -> vector<8x8xf32>
    %cst_43 = arith.constant 0.353553385 : f32
    %124 = vector.broadcast %cst_43 : f32 to vector<8x8xf32>
    %125 = arith.mulf %123, %124 : vector<8x8xf32>
    %126 = vector.broadcast %119 : vector<1x8xf32> to vector<8x8xf32>
    %127 = arith.addf %125, %126 : vector<8x8xf32>
    %cst_44 = arith.constant dense<0xFF800000> : vector<8xf32>
    %128 = vector.multi_reduction <maximumf>, %127, %cst_44 [1] : vector<8x8xf32> to vector<8xf32>
    %129 = vector.shape_cast %128 : vector<8xf32> to vector<8x1xf32>
    %130 = vector.broadcast %129 : vector<8x1xf32> to vector<8x8xf32>
    %131 = arith.subf %127, %130 : vector<8x8xf32>
    %132 = math.exp %131 : vector<8x8xf32>
    %cst_45 = arith.constant dense<0.000000e+00> : vector<8xf32>
    %133 = vector.multi_reduction <add>, %132, %cst_45 [1] : vector<8x8xf32> to vector<8xf32>
    %134 = vector.shape_cast %133 : vector<8xf32> to vector<8x1xf32>
    %135 = vector.broadcast %134 : vector<8x1xf32> to vector<8x8xf32>
    %136 = arith.divf %132, %135 : vector<8x8xf32>
    %cst_46 = arith.constant dense<0.000000e+00> : vector<8x8xf32>
    %137 = tpu.matmul %136, %122, %cst_46 {dimension_numbers = #tpu.dot_dimension_numbers<[1], [0], [0], [1], [0, 0, 1, 1], [], []>} : vector<8x8xf32>, vector<8x8xf32>, vector<8x8xf32> -> vector<8x8xf32>
    %138 = vector.extract_strided_slice %41 {offsets = [8, 8], sizes = [8, 8], strides = [1, 1]} : vector<16x32xf32> to vector<8x8xf32>
    %139 = vector.extract_strided_slice %44 {offsets = [8, 8], sizes = [8, 8], strides = [1, 1]} : vector<16x32xf32> to vector<8x8xf32>
    %140 = vector.extract_strided_slice %38 {offsets = [8, 8], sizes = [8, 8], strides = [1, 1]} : vector<16x32xf32> to vector<8x8xf32>
    %cst_47 = arith.constant dense<0.000000e+00> : vector<8x8xf32>
    %141 = tpu.matmul %138, %139, %cst_47 {dimension_numbers = #tpu.dot_dimension_numbers<[1], [1], [0], [0], [0, 0, 1, 0], [], []>} : vector<8x8xf32>, vector<8x8xf32>, vector<8x8xf32> -> vector<8x8xf32>
    %cst_48 = arith.constant 0.353553385 : f32
    %142 = vector.broadcast %cst_48 : f32 to vector<8x8xf32>
    %143 = arith.mulf %141, %142 : vector<8x8xf32>
    %144 = vector.broadcast %119 : vector<1x8xf32> to vector<8x8xf32>
    %145 = arith.addf %143, %144 : vector<8x8xf32>
    %cst_49 = arith.constant dense<0xFF800000> : vector<8xf32>
    %146 = vector.multi_reduction <maximumf>, %145, %cst_49 [1] : vector<8x8xf32> to vector<8xf32>
    %147 = vector.shape_cast %146 : vector<8xf32> to vector<8x1xf32>
    %148 = vector.broadcast %147 : vector<8x1xf32> to vector<8x8xf32>
    %149 = arith.subf %145, %148 : vector<8x8xf32>
    %150 = math.exp %149 : vector<8x8xf32>
    %cst_50 = arith.constant dense<0.000000e+00> : vector<8xf32>
    %151 = vector.multi_reduction <add>, %150, %cst_50 [1] : vector<8x8xf32> to vector<8xf32>
    %152 = vector.shape_cast %151 : vector<8xf32> to vector<8x1xf32>
    %153 = vector.broadcast %152 : vector<8x1xf32> to vector<8x8xf32>
    %154 = arith.divf %150, %153 : vector<8x8xf32>
    %cst_51 = arith.constant dense<0.000000e+00> : vector<8x8xf32>
    %155 = tpu.matmul %154, %140, %cst_51 {dimension_numbers = #tpu.dot_dimension_numbers<[1], [0], [0], [1], [0, 0, 1, 1], [], []>} : vector<8x8xf32>, vector<8x8xf32>, vector<8x8xf32> -> vector<8x8xf32>
    %156 = vector.extract_strided_slice %41 {offsets = [8, 16], sizes = [8, 8], strides = [1, 1]} : vector<16x32xf32> to vector<8x8xf32>
    %157 = vector.extract_strided_slice %44 {offsets = [8, 16], sizes = [8, 8], strides = [1, 1]} : vector<16x32xf32> to vector<8x8xf32>
    %158 = vector.extract_strided_slice %38 {offsets = [8, 16], sizes = [8, 8], strides = [1, 1]} : vector<16x32xf32> to vector<8x8xf32>
    %cst_52 = arith.constant dense<0.000000e+00> : vector<8x8xf32>
    %159 = tpu.matmul %156, %157, %cst_52 {dimension_numbers = #tpu.dot_dimension_numbers<[1], [1], [0], [0], [0, 0, 1, 0], [], []>} : vector<8x8xf32>, vector<8x8xf32>, vector<8x8xf32> -> vector<8x8xf32>
    %cst_53 = arith.constant 0.353553385 : f32
    %160 = vector.broadcast %cst_53 : f32 to vector<8x8xf32>
    %161 = arith.mulf %159, %160 : vector<8x8xf32>
    %162 = vector.broadcast %119 : vector<1x8xf32> to vector<8x8xf32>
    %163 = arith.addf %161, %162 : vector<8x8xf32>
    %cst_54 = arith.constant dense<0xFF800000> : vector<8xf32>
    %164 = vector.multi_reduction <maximumf>, %163, %cst_54 [1] : vector<8x8xf32> to vector<8xf32>
    %165 = vector.shape_cast %164 : vector<8xf32> to vector<8x1xf32>
    %166 = vector.broadcast %165 : vector<8x1xf32> to vector<8x8xf32>
    %167 = arith.subf %163, %166 : vector<8x8xf32>
    %168 = math.exp %167 : vector<8x8xf32>
    %cst_55 = arith.constant dense<0.000000e+00> : vector<8xf32>
    %169 = vector.multi_reduction <add>, %168, %cst_55 [1] : vector<8x8xf32> to vector<8xf32>
    %170 = vector.shape_cast %169 : vector<8xf32> to vector<8x1xf32>
    %171 = vector.broadcast %170 : vector<8x1xf32> to vector<8x8xf32>
    %172 = arith.divf %168, %171 : vector<8x8xf32>
    %cst_56 = arith.constant dense<0.000000e+00> : vector<8x8xf32>
    %173 = tpu.matmul %172, %158, %cst_56 {dimension_numbers = #tpu.dot_dimension_numbers<[1], [0], [0], [1], [0, 0, 1, 1], [], []>} : vector<8x8xf32>, vector<8x8xf32>, vector<8x8xf32> -> vector<8x8xf32>
    %174 = vector.extract_strided_slice %41 {offsets = [8, 24], sizes = [8, 8], strides = [1, 1]} : vector<16x32xf32> to vector<8x8xf32>
    %175 = vector.extract_strided_slice %44 {offsets = [8, 24], sizes = [8, 8], strides = [1, 1]} : vector<16x32xf32> to vector<8x8xf32>
    %176 = vector.extract_strided_slice %38 {offsets = [8, 24], sizes = [8, 8], strides = [1, 1]} : vector<16x32xf32> to vector<8x8xf32>
    %cst_57 = arith.constant dense<0.000000e+00> : vector<8x8xf32>
    %177 = tpu.matmul %174, %175, %cst_57 {dimension_numbers = #tpu.dot_dimension_numbers<[1], [1], [0], [0], [0, 0, 1, 0], [], []>} : vector<8x8xf32>, vector<8x8xf32>, vector<8x8xf32> -> vector<8x8xf32>
    %cst_58 = arith.constant 0.353553385 : f32
    %178 = vector.broadcast %cst_58 : f32 to vector<8x8xf32>
    %179 = arith.mulf %177, %178 : vector<8x8xf32>
    %180 = vector.broadcast %119 : vector<1x8xf32> to vector<8x8xf32>
    %181 = arith.addf %179, %180 : vector<8x8xf32>
    %cst_59 = arith.constant dense<0xFF800000> : vector<8xf32>
    %182 = vector.multi_reduction <maximumf>, %181, %cst_59 [1] : vector<8x8xf32> to vector<8xf32>
    %183 = vector.shape_cast %182 : vector<8xf32> to vector<8x1xf32>
    %184 = vector.broadcast %183 : vector<8x1xf32> to vector<8x8xf32>
    %185 = arith.subf %181, %184 : vector<8x8xf32>
    %186 = math.exp %185 : vector<8x8xf32>
    %cst_60 = arith.constant dense<0.000000e+00> : vector<8xf32>
    %187 = vector.multi_reduction <add>, %186, %cst_60 [1] : vector<8x8xf32> to vector<8xf32>
    %188 = vector.shape_cast %187 : vector<8xf32> to vector<8x1xf32>
    %189 = vector.broadcast %188 : vector<8x1xf32> to vector<8x8xf32>
    %190 = arith.divf %186, %189 : vector<8x8xf32>
    %cst_61 = arith.constant dense<0.000000e+00> : vector<8x8xf32>
    %191 = tpu.matmul %190, %176, %cst_61 {dimension_numbers = #tpu.dot_dimension_numbers<[1], [0], [0], [1], [0, 0, 1, 1], [], []>} : vector<8x8xf32>, vector<8x8xf32>, vector<8x8xf32> -> vector<8x8xf32>
    %192 = tpu.concatenate %137, %155, %173, %191 in 1 : vector<8x8xf32>, vector<8x8xf32>, vector<8x8xf32>, vector<8x8xf32> -> vector<8x32xf32>
    %193 = tpu.concatenate %118, %192 in 0 : vector<8x32xf32>, vector<8x32xf32> -> vector<16x32xf32>
    %194 = arith.truncf %193 : vector<16x32xf32> to vector<16x32xbf16>
    %c0_62 = arith.constant 0 : index
    %c0_63 = arith.constant 0 : index
    %c0_64 = arith.constant 0 : index
    %195 = vector.load %arg6[%c0_62, %c0_63, %c0_64] : memref<2x32x32xbf16, #tpu.memory_space<vmem>>, vector<1x32x32xbf16>
    %196 = vector.shape_cast %195 : vector<1x32x32xbf16> to vector<32x32xbf16>
    %cst_65 = arith.constant dense<0.000000e+00> : vector<16x32xf32>
    %197 = tpu.matmul %194, %196, %cst_65 {dimension_numbers = #tpu.dot_dimension_numbers<[1], [0], [0], [1], [0, 0, 1, 1], [], []>} : vector<16x32xbf16>, vector<32x32xbf16>, vector<16x32xf32> -> vector<16x32xf32>
    %c0_66 = arith.constant 0 : index
    %c0_67 = arith.constant 0 : index
    %c0_68 = arith.constant 0 : index
    %198 = vector.load %arg7[%c0_66, %c0_67, %c0_68] : memref<2x1x32xf32, #tpu.memory_space<vmem>>, vector<1x1x32xf32>
    %199 = vector.shape_cast %198 : vector<1x1x32xf32> to vector<1x32xf32>
    %200 = vector.broadcast %199 : vector<1x32xf32> to vector<16x32xf32>
    %201 = arith.addf %197, %200 : vector<16x32xf32>
    %202 = arith.addf %201, %22 : vector<16x32xf32>
    %c0_69 = arith.constant 0 : index
    %c0_70 = arith.constant 0 : index
    %c0_71 = arith.constant 0 : index
    %203 = vector.load %arg8[%c0_69, %c0_70, %c0_71] : memref<2x1x32xf32, #tpu.memory_space<vmem>>, vector<1x1x32xf32>
    %204 = vector.shape_cast %203 : vector<1x1x32xf32> to vector<1x32xf32>
    %c0_72 = arith.constant 0 : index
    %c0_73 = arith.constant 0 : index
    %c0_74 = arith.constant 0 : index
    %205 = vector.load %arg9[%c0_72, %c0_73, %c0_74] : memref<2x1x32xf32, #tpu.memory_space<vmem>>, vector<1x1x32xf32>
    %206 = vector.shape_cast %205 : vector<1x1x32xf32> to vector<1x32xf32>
    %cst_75 = arith.constant dense<0.000000e+00> : vector<16xf32>
    %207 = vector.multi_reduction <add>, %202, %cst_75 [1] : vector<16x32xf32> to vector<16xf32>
    %208 = vector.shape_cast %207 : vector<16xf32> to vector<16x1xf32>
    %cst_76 = arith.constant 3.200000e+01 : f32
    %209 = vector.broadcast %cst_76 : f32 to vector<16x1xf32>
    %210 = arith.divf %208, %209 : vector<16x1xf32>
    %211 = vector.broadcast %210 : vector<16x1xf32> to vector<16x32xf32>
    %212 = arith.subf %202, %211 : vector<16x32xf32>
    %213 = arith.mulf %212, %212 : vector<16x32xf32>
    %cst_77 = arith.constant dense<0.000000e+00> : vector<16xf32>
    %214 = vector.multi_reduction <add>, %213, %cst_77 [1] : vector<16x32xf32> to vector<16xf32>
    %215 = vector.shape_cast %214 : vector<16xf32> to vector<16x1xf32>
    %cst_78 = arith.constant 3.200000e+01 : f32
    %216 = vector.broadcast %cst_78 : f32 to vector<16x1xf32>
    %217 = arith.divf %215, %216 : vector<16x1xf32>
    %cst_79 = arith.constant 9.99999996E-13 : f32
    %218 = vector.broadcast %cst_79 : f32 to vector<16x1xf32>
    %219 = arith.addf %217, %218 : vector<16x1xf32>
    %220 = math.rsqrt %219 : vector<16x1xf32>
    %221 = vector.broadcast %220 : vector<16x1xf32> to vector<16x32xf32>
    %222 = arith.mulf %212, %221 : vector<16x32xf32>
    %223 = vector.broadcast %204 : vector<1x32xf32> to vector<16x32xf32>
    %224 = arith.mulf %222, %223 : vector<16x32xf32>
    %225 = vector.broadcast %206 : vector<1x32xf32> to vector<16x32xf32>
    %226 = arith.addf %224, %225 : vector<16x32xf32>
    %227 = arith.truncf %226 : vector<16x32xf32> to vector<16x32xbf16>
    %c0_80 = arith.constant 0 : index
    %c0_81 = arith.constant 0 : index
    %c0_82 = arith.constant 0 : index
    %228 = vector.load %arg10[%c0_80, %c0_81, %c0_82] : memref<2x32x128xbf16, #tpu.memory_space<vmem>>, vector<1x32x128xbf16>
    %229 = vector.shape_cast %228 : vector<1x32x128xbf16> to vector<32x128xbf16>
    %cst_83 = arith.constant dense<0.000000e+00> : vector<16x128xf32>
    %230 = tpu.matmul %227, %229, %cst_83 {dimension_numbers = #tpu.dot_dimension_numbers<[1], [0], [0], [1], [0, 0, 1, 1], [], []>} : vector<16x32xbf16>, vector<32x128xbf16>, vector<16x128xf32> -> vector<16x128xf32>
    %c0_84 = arith.constant 0 : index
    %c0_85 = arith.constant 0 : index
    %c0_86 = arith.constant 0 : index
    %231 = vector.load %arg11[%c0_84, %c0_85, %c0_86] : memref<2x1x128xf32, #tpu.memory_space<vmem>>, vector<1x1x128xf32>
    %232 = vector.shape_cast %231 : vector<1x1x128xf32> to vector<1x128xf32>
    %233 = vector.broadcast %232 : vector<1x128xf32> to vector<16x128xf32>
    %234 = arith.addf %230, %233 : vector<16x128xf32>
    %cst_87 = arith.constant 5.000000e-01 : f32
    %235 = vector.broadcast %cst_87 : f32 to vector<16x128xf32>
    %236 = arith.mulf %235, %234 : vector<16x128xf32>
    %cst_88 = arith.constant 0.707106769 : f32
    %237 = vector.broadcast %cst_88 : f32 to vector<16x128xf32>
    %238 = arith.mulf %234, %237 : vector<16x128xf32>
    %239 = math.erf %238 : vector<16x128xf32>
    %cst_89 = arith.constant 1.000000e+00 : f32
    %240 = vector.broadcast %cst_89 : f32 to vector<16x128xf32>
    %241 = arith.addf %240, %239 : vector<16x128xf32>
    %242 = arith.mulf %236, %241 : vector<16x128xf32>
    %243 = arith.truncf %242 : vector<16x128xf32> to vector<16x128xbf16>
    %c0_90 = arith.constant 0 : index
    %c0_91 = arith.constant 0 : index
    %c0_92 = arith.constant 0 : index
    %244 = vector.load %arg12[%c0_90, %c0_91, %c0_92] : memref<2x128x32xbf16, #tpu.memory_space<vmem>>, vector<1x128x32xbf16>
    %245 = vector.shape_cast %244 : vector<1x128x32xbf16> to vector<128x32xbf16>
    %cst_93 = arith.constant dense<0.000000e+00> : vector<16x32xf32>
    %246 = tpu.matmul %243, %245, %cst_93 {dimension_numbers = #tpu.dot_dimension_numbers<[1], [0], [0], [1], [0, 0, 1, 1], [], []>} : vector<16x128xbf16>, vector<128x32xbf16>, vector<16x32xf32> -> vector<16x32xf32>
    %c0_94 = arith.constant 0 : index
    %c0_95 = arith.constant 0 : index
    %c0_96 = arith.constant 0 : index
    %247 = vector.load %arg13[%c0_94, %c0_95, %c0_96] : memref<2x1x32xf32, #tpu.memory_space<vmem>>, vector<1x1x32xf32>
    %248 = vector.shape_cast %247 : vector<1x1x32xf32> to vector<1x32xf32>
    %249 = vector.broadcast %248 : vector<1x32xf32> to vector<16x32xf32>
    %250 = arith.addf %246, %249 : vector<16x32xf32>
    %251 = arith.addf %250, %226 : vector<16x32xf32>
    %c0_97 = arith.constant 0 : index
    %c0_98 = arith.constant 0 : index
    %c0_99 = arith.constant 0 : index
    %252 = vector.load %arg14[%c0_97, %c0_98, %c0_99] : memref<2x1x32xf32, #tpu.memory_space<vmem>>, vector<1x1x32xf32>
    %253 = vector.shape_cast %252 : vector<1x1x32xf32> to vector<1x32xf32>
    %c0_100 = arith.constant 0 : index
    %c0_101 = arith.constant 0 : index
    %c0_102 = arith.constant 0 : index
    %254 = vector.load %arg15[%c0_100, %c0_101, %c0_102] : memref<2x1x32xf32, #tpu.memory_space<vmem>>, vector<1x1x32xf32>
    %255 = vector.shape_cast %254 : vector<1x1x32xf32> to vector<1x32xf32>
    %cst_103 = arith.constant dense<0.000000e+00> : vector<16xf32>
    %256 = vector.multi_reduction <add>, %251, %cst_103 [1] : vector<16x32xf32> to vector<16xf32>
    %257 = vector.shape_cast %256 : vector<16xf32> to vector<16x1xf32>
    %cst_104 = arith.constant 3.200000e+01 : f32
    %258 = vector.broadcast %cst_104 : f32 to vector<16x1xf32>
    %259 = arith.divf %257, %258 : vector<16x1xf32>
    %260 = vector.broadcast %259 : vector<16x1xf32> to vector<16x32xf32>
    %261 = arith.subf %251, %260 : vector<16x32xf32>
    %262 = arith.mulf %261, %261 : vector<16x32xf32>
    %cst_105 = arith.constant dense<0.000000e+00> : vector<16xf32>
    %263 = vector.multi_reduction <add>, %262, %cst_105 [1] : vector<16x32xf32> to vector<16xf32>
    %264 = vector.shape_cast %263 : vector<16xf32> to vector<16x1xf32>
    %cst_106 = arith.constant 3.200000e+01 : f32
    %265 = vector.broadcast %cst_106 : f32 to vector<16x1xf32>
    %266 = arith.divf %264, %265 : vector<16x1xf32>
    %cst_107 = arith.constant 9.99999996E-13 : f32
    %267 = vector.broadcast %cst_107 : f32 to vector<16x1xf32>
    %268 = arith.addf %266, %267 : vector<16x1xf32>
    %269 = math.rsqrt %268 : vector<16x1xf32>
    %270 = vector.broadcast %269 : vector<16x1xf32> to vector<16x32xf32>
    %271 = arith.mulf %261, %270 : vector<16x32xf32>
    %272 = vector.broadcast %253 : vector<1x32xf32> to vector<16x32xf32>
    %273 = arith.mulf %271, %272 : vector<16x32xf32>
    %274 = vector.broadcast %255 : vector<1x32xf32> to vector<16x32xf32>
    %275 = arith.addf %273, %274 : vector<16x32xf32>
    %276 = arith.truncf %275 : vector<16x32xf32> to vector<16x32xbf16>
    %c1 = arith.constant 1 : index
    %c0_108 = arith.constant 0 : index
    %c0_109 = arith.constant 0 : index
    %277 = vector.load %arg4[%c1, %c0_108, %c0_109] : memref<2x32x160xbf16, #tpu.memory_space<vmem>>, vector<1x32x160xbf16>
    %278 = vector.shape_cast %277 : vector<1x32x160xbf16> to vector<32x160xbf16>
    %cst_110 = arith.constant dense<0.000000e+00> : vector<16x160xf32>
    %279 = tpu.matmul %276, %278, %cst_110 {dimension_numbers = #tpu.dot_dimension_numbers<[1], [0], [0], [1], [0, 0, 1, 1], [], []>} : vector<16x32xbf16>, vector<32x160xbf16>, vector<16x160xf32> -> vector<16x160xf32>
    %c1_111 = arith.constant 1 : index
    %c0_112 = arith.constant 0 : index
    %c0_113 = arith.constant 0 : index
    %280 = vector.load %arg5[%c1_111, %c0_112, %c0_113] : memref<2x1x160xf32, #tpu.memory_space<vmem>>, vector<1x1x160xf32>
    %281 = vector.shape_cast %280 : vector<1x1x160xf32> to vector<1x160xf32>
    %282 = vector.broadcast %281 : vector<1x160xf32> to vector<16x160xf32>
    %283 = arith.addf %279, %282 : vector<16x160xf32>
    %284 = vector.extract_strided_slice %283 {offsets = [0, 0], sizes = [16, 32], strides = [1, 1]} : vector<16x160xf32> to vector<16x32xf32>
    %285 = vector.extract_strided_slice %283 {offsets = [0, 32], sizes = [16, 32], strides = [1, 1]} : vector<16x160xf32> to vector<16x32xf32>
    %286 = vector.extract_strided_slice %283 {offsets = [0, 64], sizes = [16, 32], strides = [1, 1]} : vector<16x160xf32> to vector<16x32xf32>
    %287 = vector.extract_strided_slice %283 {offsets = [0, 96], sizes = [16, 32], strides = [1, 1]} : vector<16x160xf32> to vector<16x32xf32>
    %288 = vector.extract_strided_slice %283 {offsets = [0, 128], sizes = [16, 32], strides = [1, 1]} : vector<16x160xf32> to vector<16x32xf32>
    %289 = arith.mulf %284, %23 : vector<16x32xf32>
    %290 = arith.mulf %285, %24 : vector<16x32xf32>
    %291 = arith.addf %289, %290 : vector<16x32xf32>
    %292 = arith.mulf %286, %23 : vector<16x32xf32>
    %293 = arith.mulf %287, %24 : vector<16x32xf32>
    %294 = arith.addf %292, %293 : vector<16x32xf32>
    %295 = vector.extract_strided_slice %25 {offsets = [0, 0], sizes = [1, 8], strides = [1, 1]} : vector<2x8xf32> to vector<1x8xf32>
    %296 = vector.extract_strided_slice %291 {offsets = [0, 0], sizes = [8, 8], strides = [1, 1]} : vector<16x32xf32> to vector<8x8xf32>
    %297 = vector.extract_strided_slice %294 {offsets = [0, 0], sizes = [8, 8], strides = [1, 1]} : vector<16x32xf32> to vector<8x8xf32>
    %298 = vector.extract_strided_slice %288 {offsets = [0, 0], sizes = [8, 8], strides = [1, 1]} : vector<16x32xf32> to vector<8x8xf32>
    %cst_114 = arith.constant dense<0.000000e+00> : vector<8x8xf32>
    %299 = tpu.matmul %296, %297, %cst_114 {dimension_numbers = #tpu.dot_dimension_numbers<[1], [1], [0], [0], [0, 0, 1, 0], [], []>} : vector<8x8xf32>, vector<8x8xf32>, vector<8x8xf32> -> vector<8x8xf32>
    %cst_115 = arith.constant 0.353553385 : f32
    %300 = vector.broadcast %cst_115 : f32 to vector<8x8xf32>
    %301 = arith.mulf %299, %300 : vector<8x8xf32>
    %302 = vector.broadcast %295 : vector<1x8xf32> to vector<8x8xf32>
    %303 = arith.addf %301, %302 : vector<8x8xf32>
    %cst_116 = arith.constant dense<0xFF800000> : vector<8xf32>
    %304 = vector.multi_reduction <maximumf>, %303, %cst_116 [1] : vector<8x8xf32> to vector<8xf32>
    %305 = vector.shape_cast %304 : vector<8xf32> to vector<8x1xf32>
    %306 = vector.broadcast %305 : vector<8x1xf32> to vector<8x8xf32>
    %307 = arith.subf %303, %306 : vector<8x8xf32>
    %308 = math.exp %307 : vector<8x8xf32>
    %cst_117 = arith.constant dense<0.000000e+00> : vector<8xf32>
    %309 = vector.multi_reduction <add>, %308, %cst_117 [1] : vector<8x8xf32> to vector<8xf32>
    %310 = vector.shape_cast %309 : vector<8xf32> to vector<8x1xf32>
    %311 = vector.broadcast %310 : vector<8x1xf32> to vector<8x8xf32>
    %312 = arith.divf %308, %311 : vector<8x8xf32>
    %cst_118 = arith.constant dense<0.000000e+00> : vector<8x8xf32>
    %313 = tpu.matmul %312, %298, %cst_118 {dimension_numbers = #tpu.dot_dimension_numbers<[1], [0], [0], [1], [0, 0, 1, 1], [], []>} : vector<8x8xf32>, vector<8x8xf32>, vector<8x8xf32> -> vector<8x8xf32>
    %314 = vector.extract_strided_slice %291 {offsets = [0, 8], sizes = [8, 8], strides = [1, 1]} : vector<16x32xf32> to vector<8x8xf32>
    %315 = vector.extract_strided_slice %294 {offsets = [0, 8], sizes = [8, 8], strides = [1, 1]} : vector<16x32xf32> to vector<8x8xf32>
    %316 = vector.extract_strided_slice %288 {offsets = [0, 8], sizes = [8, 8], strides = [1, 1]} : vector<16x32xf32> to vector<8x8xf32>
    %cst_119 = arith.constant dense<0.000000e+00> : vector<8x8xf32>
    %317 = tpu.matmul %314, %315, %cst_119 {dimension_numbers = #tpu.dot_dimension_numbers<[1], [1], [0], [0], [0, 0, 1, 0], [], []>} : vector<8x8xf32>, vector<8x8xf32>, vector<8x8xf32> -> vector<8x8xf32>
    %cst_120 = arith.constant 0.353553385 : f32
    %318 = vector.broadcast %cst_120 : f32 to vector<8x8xf32>
    %319 = arith.mulf %317, %318 : vector<8x8xf32>
    %320 = vector.broadcast %295 : vector<1x8xf32> to vector<8x8xf32>
    %321 = arith.addf %319, %320 : vector<8x8xf32>
    %cst_121 = arith.constant dense<0xFF800000> : vector<8xf32>
    %322 = vector.multi_reduction <maximumf>, %321, %cst_121 [1] : vector<8x8xf32> to vector<8xf32>
    %323 = vector.shape_cast %322 : vector<8xf32> to vector<8x1xf32>
    %324 = vector.broadcast %323 : vector<8x1xf32> to vector<8x8xf32>
    %325 = arith.subf %321, %324 : vector<8x8xf32>
    %326 = math.exp %325 : vector<8x8xf32>
    %cst_122 = arith.constant dense<0.000000e+00> : vector<8xf32>
    %327 = vector.multi_reduction <add>, %326, %cst_122 [1] : vector<8x8xf32> to vector<8xf32>
    %328 = vector.shape_cast %327 : vector<8xf32> to vector<8x1xf32>
    %329 = vector.broadcast %328 : vector<8x1xf32> to vector<8x8xf32>
    %330 = arith.divf %326, %329 : vector<8x8xf32>
    %cst_123 = arith.constant dense<0.000000e+00> : vector<8x8xf32>
    %331 = tpu.matmul %330, %316, %cst_123 {dimension_numbers = #tpu.dot_dimension_numbers<[1], [0], [0], [1], [0, 0, 1, 1], [], []>} : vector<8x8xf32>, vector<8x8xf32>, vector<8x8xf32> -> vector<8x8xf32>
    %332 = vector.extract_strided_slice %291 {offsets = [0, 16], sizes = [8, 8], strides = [1, 1]} : vector<16x32xf32> to vector<8x8xf32>
    %333 = vector.extract_strided_slice %294 {offsets = [0, 16], sizes = [8, 8], strides = [1, 1]} : vector<16x32xf32> to vector<8x8xf32>
    %334 = vector.extract_strided_slice %288 {offsets = [0, 16], sizes = [8, 8], strides = [1, 1]} : vector<16x32xf32> to vector<8x8xf32>
    %cst_124 = arith.constant dense<0.000000e+00> : vector<8x8xf32>
    %335 = tpu.matmul %332, %333, %cst_124 {dimension_numbers = #tpu.dot_dimension_numbers<[1], [1], [0], [0], [0, 0, 1, 0], [], []>} : vector<8x8xf32>, vector<8x8xf32>, vector<8x8xf32> -> vector<8x8xf32>
    %cst_125 = arith.constant 0.353553385 : f32
    %336 = vector.broadcast %cst_125 : f32 to vector<8x8xf32>
    %337 = arith.mulf %335, %336 : vector<8x8xf32>
    %338 = vector.broadcast %295 : vector<1x8xf32> to vector<8x8xf32>
    %339 = arith.addf %337, %338 : vector<8x8xf32>
    %cst_126 = arith.constant dense<0xFF800000> : vector<8xf32>
    %340 = vector.multi_reduction <maximumf>, %339, %cst_126 [1] : vector<8x8xf32> to vector<8xf32>
    %341 = vector.shape_cast %340 : vector<8xf32> to vector<8x1xf32>
    %342 = vector.broadcast %341 : vector<8x1xf32> to vector<8x8xf32>
    %343 = arith.subf %339, %342 : vector<8x8xf32>
    %344 = math.exp %343 : vector<8x8xf32>
    %cst_127 = arith.constant dense<0.000000e+00> : vector<8xf32>
    %345 = vector.multi_reduction <add>, %344, %cst_127 [1] : vector<8x8xf32> to vector<8xf32>
    %346 = vector.shape_cast %345 : vector<8xf32> to vector<8x1xf32>
    %347 = vector.broadcast %346 : vector<8x1xf32> to vector<8x8xf32>
    %348 = arith.divf %344, %347 : vector<8x8xf32>
    %cst_128 = arith.constant dense<0.000000e+00> : vector<8x8xf32>
    %349 = tpu.matmul %348, %334, %cst_128 {dimension_numbers = #tpu.dot_dimension_numbers<[1], [0], [0], [1], [0, 0, 1, 1], [], []>} : vector<8x8xf32>, vector<8x8xf32>, vector<8x8xf32> -> vector<8x8xf32>
    %350 = vector.extract_strided_slice %291 {offsets = [0, 24], sizes = [8, 8], strides = [1, 1]} : vector<16x32xf32> to vector<8x8xf32>
    %351 = vector.extract_strided_slice %294 {offsets = [0, 24], sizes = [8, 8], strides = [1, 1]} : vector<16x32xf32> to vector<8x8xf32>
    %352 = vector.extract_strided_slice %288 {offsets = [0, 24], sizes = [8, 8], strides = [1, 1]} : vector<16x32xf32> to vector<8x8xf32>
    %cst_129 = arith.constant dense<0.000000e+00> : vector<8x8xf32>
    %353 = tpu.matmul %350, %351, %cst_129 {dimension_numbers = #tpu.dot_dimension_numbers<[1], [1], [0], [0], [0, 0, 1, 0], [], []>} : vector<8x8xf32>, vector<8x8xf32>, vector<8x8xf32> -> vector<8x8xf32>
    %cst_130 = arith.constant 0.353553385 : f32
    %354 = vector.broadcast %cst_130 : f32 to vector<8x8xf32>
    %355 = arith.mulf %353, %354 : vector<8x8xf32>
    %356 = vector.broadcast %295 : vector<1x8xf32> to vector<8x8xf32>
    %357 = arith.addf %355, %356 : vector<8x8xf32>
    %cst_131 = arith.constant dense<0xFF800000> : vector<8xf32>
    %358 = vector.multi_reduction <maximumf>, %357, %cst_131 [1] : vector<8x8xf32> to vector<8xf32>
    %359 = vector.shape_cast %358 : vector<8xf32> to vector<8x1xf32>
    %360 = vector.broadcast %359 : vector<8x1xf32> to vector<8x8xf32>
    %361 = arith.subf %357, %360 : vector<8x8xf32>
    %362 = math.exp %361 : vector<8x8xf32>
    %cst_132 = arith.constant dense<0.000000e+00> : vector<8xf32>
    %363 = vector.multi_reduction <add>, %362, %cst_132 [1] : vector<8x8xf32> to vector<8xf32>
    %364 = vector.shape_cast %363 : vector<8xf32> to vector<8x1xf32>
    %365 = vector.broadcast %364 : vector<8x1xf32> to vector<8x8xf32>
    %366 = arith.divf %362, %365 : vector<8x8xf32>
    %cst_133 = arith.constant dense<0.000000e+00> : vector<8x8xf32>
    %367 = tpu.matmul %366, %352, %cst_133 {dimension_numbers = #tpu.dot_dimension_numbers<[1], [0], [0], [1], [0, 0, 1, 1], [], []>} : vector<8x8xf32>, vector<8x8xf32>, vector<8x8xf32> -> vector<8x8xf32>
    %368 = tpu.concatenate %313, %331, %349, %367 in 1 : vector<8x8xf32>, vector<8x8xf32>, vector<8x8xf32>, vector<8x8xf32> -> vector<8x32xf32>
    %369 = vector.extract_strided_slice %25 {offsets = [1, 0], sizes = [1, 8], strides = [1, 1]} : vector<2x8xf32> to vector<1x8xf32>
    %370 = vector.extract_strided_slice %291 {offsets = [8, 0], sizes = [8, 8], strides = [1, 1]} : vector<16x32xf32> to vector<8x8xf32>
    %371 = vector.extract_strided_slice %294 {offsets = [8, 0], sizes = [8, 8], strides = [1, 1]} : vector<16x32xf32> to vector<8x8xf32>
    %372 = vector.extract_strided_slice %288 {offsets = [8, 0], sizes = [8, 8], strides = [1, 1]} : vector<16x32xf32> to vector<8x8xf32>
    %cst_134 = arith.constant dense<0.000000e+00> : vector<8x8xf32>
    %373 = tpu.matmul %370, %371, %cst_134 {dimension_numbers = #tpu.dot_dimension_numbers<[1], [1], [0], [0], [0, 0, 1, 0], [], []>} : vector<8x8xf32>, vector<8x8xf32>, vector<8x8xf32> -> vector<8x8xf32>
    %cst_135 = arith.constant 0.353553385 : f32
    %374 = vector.broadcast %cst_135 : f32 to vector<8x8xf32>
    %375 = arith.mulf %373, %374 : vector<8x8xf32>
    %376 = vector.broadcast %369 : vector<1x8xf32> to vector<8x8xf32>
    %377 = arith.addf %375, %376 : vector<8x8xf32>
    %cst_136 = arith.constant dense<0xFF800000> : vector<8xf32>
    %378 = vector.multi_reduction <maximumf>, %377, %cst_136 [1] : vector<8x8xf32> to vector<8xf32>
    %379 = vector.shape_cast %378 : vector<8xf32> to vector<8x1xf32>
    %380 = vector.broadcast %379 : vector<8x1xf32> to vector<8x8xf32>
    %381 = arith.subf %377, %380 : vector<8x8xf32>
    %382 = math.exp %381 : vector<8x8xf32>
    %cst_137 = arith.constant dense<0.000000e+00> : vector<8xf32>
    %383 = vector.multi_reduction <add>, %382, %cst_137 [1] : vector<8x8xf32> to vector<8xf32>
    %384 = vector.shape_cast %383 : vector<8xf32> to vector<8x1xf32>
    %385 = vector.broadcast %384 : vector<8x1xf32> to vector<8x8xf32>
    %386 = arith.divf %382, %385 : vector<8x8xf32>
    %cst_138 = arith.constant dense<0.000000e+00> : vector<8x8xf32>
    %387 = tpu.matmul %386, %372, %cst_138 {dimension_numbers = #tpu.dot_dimension_numbers<[1], [0], [0], [1], [0, 0, 1, 1], [], []>} : vector<8x8xf32>, vector<8x8xf32>, vector<8x8xf32> -> vector<8x8xf32>
    %388 = vector.extract_strided_slice %291 {offsets = [8, 8], sizes = [8, 8], strides = [1, 1]} : vector<16x32xf32> to vector<8x8xf32>
    %389 = vector.extract_strided_slice %294 {offsets = [8, 8], sizes = [8, 8], strides = [1, 1]} : vector<16x32xf32> to vector<8x8xf32>
    %390 = vector.extract_strided_slice %288 {offsets = [8, 8], sizes = [8, 8], strides = [1, 1]} : vector<16x32xf32> to vector<8x8xf32>
    %cst_139 = arith.constant dense<0.000000e+00> : vector<8x8xf32>
    %391 = tpu.matmul %388, %389, %cst_139 {dimension_numbers = #tpu.dot_dimension_numbers<[1], [1], [0], [0], [0, 0, 1, 0], [], []>} : vector<8x8xf32>, vector<8x8xf32>, vector<8x8xf32> -> vector<8x8xf32>
    %cst_140 = arith.constant 0.353553385 : f32
    %392 = vector.broadcast %cst_140 : f32 to vector<8x8xf32>
    %393 = arith.mulf %391, %392 : vector<8x8xf32>
    %394 = vector.broadcast %369 : vector<1x8xf32> to vector<8x8xf32>
    %395 = arith.addf %393, %394 : vector<8x8xf32>
    %cst_141 = arith.constant dense<0xFF800000> : vector<8xf32>
    %396 = vector.multi_reduction <maximumf>, %395, %cst_141 [1] : vector<8x8xf32> to vector<8xf32>
    %397 = vector.shape_cast %396 : vector<8xf32> to vector<8x1xf32>
    %398 = vector.broadcast %397 : vector<8x1xf32> to vector<8x8xf32>
    %399 = arith.subf %395, %398 : vector<8x8xf32>
    %400 = math.exp %399 : vector<8x8xf32>
    %cst_142 = arith.constant dense<0.000000e+00> : vector<8xf32>
    %401 = vector.multi_reduction <add>, %400, %cst_142 [1] : vector<8x8xf32> to vector<8xf32>
    %402 = vector.shape_cast %401 : vector<8xf32> to vector<8x1xf32>
    %403 = vector.broadcast %402 : vector<8x1xf32> to vector<8x8xf32>
    %404 = arith.divf %400, %403 : vector<8x8xf32>
    %cst_143 = arith.constant dense<0.000000e+00> : vector<8x8xf32>
    %405 = tpu.matmul %404, %390, %cst_143 {dimension_numbers = #tpu.dot_dimension_numbers<[1], [0], [0], [1], [0, 0, 1, 1], [], []>} : vector<8x8xf32>, vector<8x8xf32>, vector<8x8xf32> -> vector<8x8xf32>
    %406 = vector.extract_strided_slice %291 {offsets = [8, 16], sizes = [8, 8], strides = [1, 1]} : vector<16x32xf32> to vector<8x8xf32>
    %407 = vector.extract_strided_slice %294 {offsets = [8, 16], sizes = [8, 8], strides = [1, 1]} : vector<16x32xf32> to vector<8x8xf32>
    %408 = vector.extract_strided_slice %288 {offsets = [8, 16], sizes = [8, 8], strides = [1, 1]} : vector<16x32xf32> to vector<8x8xf32>
    %cst_144 = arith.constant dense<0.000000e+00> : vector<8x8xf32>
    %409 = tpu.matmul %406, %407, %cst_144 {dimension_numbers = #tpu.dot_dimension_numbers<[1], [1], [0], [0], [0, 0, 1, 0], [], []>} : vector<8x8xf32>, vector<8x8xf32>, vector<8x8xf32> -> vector<8x8xf32>
    %cst_145 = arith.constant 0.353553385 : f32
    %410 = vector.broadcast %cst_145 : f32 to vector<8x8xf32>
    %411 = arith.mulf %409, %410 : vector<8x8xf32>
    %412 = vector.broadcast %369 : vector<1x8xf32> to vector<8x8xf32>
    %413 = arith.addf %411, %412 : vector<8x8xf32>
    %cst_146 = arith.constant dense<0xFF800000> : vector<8xf32>
    %414 = vector.multi_reduction <maximumf>, %413, %cst_146 [1] : vector<8x8xf32> to vector<8xf32>
    %415 = vector.shape_cast %414 : vector<8xf32> to vector<8x1xf32>
    %416 = vector.broadcast %415 : vector<8x1xf32> to vector<8x8xf32>
    %417 = arith.subf %413, %416 : vector<8x8xf32>
    %418 = math.exp %417 : vector<8x8xf32>
    %cst_147 = arith.constant dense<0.000000e+00> : vector<8xf32>
    %419 = vector.multi_reduction <add>, %418, %cst_147 [1] : vector<8x8xf32> to vector<8xf32>
    %420 = vector.shape_cast %419 : vector<8xf32> to vector<8x1xf32>
    %421 = vector.broadcast %420 : vector<8x1xf32> to vector<8x8xf32>
    %422 = arith.divf %418, %421 : vector<8x8xf32>
    %cst_148 = arith.constant dense<0.000000e+00> : vector<8x8xf32>
    %423 = tpu.matmul %422, %408, %cst_148 {dimension_numbers = #tpu.dot_dimension_numbers<[1], [0], [0], [1], [0, 0, 1, 1], [], []>} : vector<8x8xf32>, vector<8x8xf32>, vector<8x8xf32> -> vector<8x8xf32>
    %424 = vector.extract_strided_slice %291 {offsets = [8, 24], sizes = [8, 8], strides = [1, 1]} : vector<16x32xf32> to vector<8x8xf32>
    %425 = vector.extract_strided_slice %294 {offsets = [8, 24], sizes = [8, 8], strides = [1, 1]} : vector<16x32xf32> to vector<8x8xf32>
    %426 = vector.extract_strided_slice %288 {offsets = [8, 24], sizes = [8, 8], strides = [1, 1]} : vector<16x32xf32> to vector<8x8xf32>
    %cst_149 = arith.constant dense<0.000000e+00> : vector<8x8xf32>
    %427 = tpu.matmul %424, %425, %cst_149 {dimension_numbers = #tpu.dot_dimension_numbers<[1], [1], [0], [0], [0, 0, 1, 0], [], []>} : vector<8x8xf32>, vector<8x8xf32>, vector<8x8xf32> -> vector<8x8xf32>
    %cst_150 = arith.constant 0.353553385 : f32
    %428 = vector.broadcast %cst_150 : f32 to vector<8x8xf32>
    %429 = arith.mulf %427, %428 : vector<8x8xf32>
    %430 = vector.broadcast %369 : vector<1x8xf32> to vector<8x8xf32>
    %431 = arith.addf %429, %430 : vector<8x8xf32>
    %cst_151 = arith.constant dense<0xFF800000> : vector<8xf32>
    %432 = vector.multi_reduction <maximumf>, %431, %cst_151 [1] : vector<8x8xf32> to vector<8xf32>
    %433 = vector.shape_cast %432 : vector<8xf32> to vector<8x1xf32>
    %434 = vector.broadcast %433 : vector<8x1xf32> to vector<8x8xf32>
    %435 = arith.subf %431, %434 : vector<8x8xf32>
    %436 = math.exp %435 : vector<8x8xf32>
    %cst_152 = arith.constant dense<0.000000e+00> : vector<8xf32>
    %437 = vector.multi_reduction <add>, %436, %cst_152 [1] : vector<8x8xf32> to vector<8xf32>
    %438 = vector.shape_cast %437 : vector<8xf32> to vector<8x1xf32>
    %439 = vector.broadcast %438 : vector<8x1xf32> to vector<8x8xf32>
    %440 = arith.divf %436, %439 : vector<8x8xf32>
    %cst_153 = arith.constant dense<0.000000e+00> : vector<8x8xf32>
    %441 = tpu.matmul %440, %426, %cst_153 {dimension_numbers = #tpu.dot_dimension_numbers<[1], [0], [0], [1], [0, 0, 1, 1], [], []>} : vector<8x8xf32>, vector<8x8xf32>, vector<8x8xf32> -> vector<8x8xf32>
    %442 = tpu.concatenate %387, %405, %423, %441 in 1 : vector<8x8xf32>, vector<8x8xf32>, vector<8x8xf32>, vector<8x8xf32> -> vector<8x32xf32>
    %443 = tpu.concatenate %368, %442 in 0 : vector<8x32xf32>, vector<8x32xf32> -> vector<16x32xf32>
    %444 = arith.truncf %443 : vector<16x32xf32> to vector<16x32xbf16>
    %c1_154 = arith.constant 1 : index
    %c0_155 = arith.constant 0 : index
    %c0_156 = arith.constant 0 : index
    %445 = vector.load %arg6[%c1_154, %c0_155, %c0_156] : memref<2x32x32xbf16, #tpu.memory_space<vmem>>, vector<1x32x32xbf16>
    %446 = vector.shape_cast %445 : vector<1x32x32xbf16> to vector<32x32xbf16>
    %cst_157 = arith.constant dense<0.000000e+00> : vector<16x32xf32>
    %447 = tpu.matmul %444, %446, %cst_157 {dimension_numbers = #tpu.dot_dimension_numbers<[1], [0], [0], [1], [0, 0, 1, 1], [], []>} : vector<16x32xbf16>, vector<32x32xbf16>, vector<16x32xf32> -> vector<16x32xf32>
    %c1_158 = arith.constant 1 : index
    %c0_159 = arith.constant 0 : index
    %c0_160 = arith.constant 0 : index
    %448 = vector.load %arg7[%c1_158, %c0_159, %c0_160] : memref<2x1x32xf32, #tpu.memory_space<vmem>>, vector<1x1x32xf32>
    %449 = vector.shape_cast %448 : vector<1x1x32xf32> to vector<1x32xf32>
    %450 = vector.broadcast %449 : vector<1x32xf32> to vector<16x32xf32>
    %451 = arith.addf %447, %450 : vector<16x32xf32>
    %452 = arith.addf %451, %275 : vector<16x32xf32>
    %c1_161 = arith.constant 1 : index
    %c0_162 = arith.constant 0 : index
    %c0_163 = arith.constant 0 : index
    %453 = vector.load %arg8[%c1_161, %c0_162, %c0_163] : memref<2x1x32xf32, #tpu.memory_space<vmem>>, vector<1x1x32xf32>
    %454 = vector.shape_cast %453 : vector<1x1x32xf32> to vector<1x32xf32>
    %c1_164 = arith.constant 1 : index
    %c0_165 = arith.constant 0 : index
    %c0_166 = arith.constant 0 : index
    %455 = vector.load %arg9[%c1_164, %c0_165, %c0_166] : memref<2x1x32xf32, #tpu.memory_space<vmem>>, vector<1x1x32xf32>
    %456 = vector.shape_cast %455 : vector<1x1x32xf32> to vector<1x32xf32>
    %cst_167 = arith.constant dense<0.000000e+00> : vector<16xf32>
    %457 = vector.multi_reduction <add>, %452, %cst_167 [1] : vector<16x32xf32> to vector<16xf32>
    %458 = vector.shape_cast %457 : vector<16xf32> to vector<16x1xf32>
    %cst_168 = arith.constant 3.200000e+01 : f32
    %459 = vector.broadcast %cst_168 : f32 to vector<16x1xf32>
    %460 = arith.divf %458, %459 : vector<16x1xf32>
    %461 = vector.broadcast %460 : vector<16x1xf32> to vector<16x32xf32>
    %462 = arith.subf %452, %461 : vector<16x32xf32>
    %463 = arith.mulf %462, %462 : vector<16x32xf32>
    %cst_169 = arith.constant dense<0.000000e+00> : vector<16xf32>
    %464 = vector.multi_reduction <add>, %463, %cst_169 [1] : vector<16x32xf32> to vector<16xf32>
    %465 = vector.shape_cast %464 : vector<16xf32> to vector<16x1xf32>
    %cst_170 = arith.constant 3.200000e+01 : f32
    %466 = vector.broadcast %cst_170 : f32 to vector<16x1xf32>
    %467 = arith.divf %465, %466 : vector<16x1xf32>
    %cst_171 = arith.constant 9.99999996E-13 : f32
    %468 = vector.broadcast %cst_171 : f32 to vector<16x1xf32>
    %469 = arith.addf %467, %468 : vector<16x1xf32>
    %470 = math.rsqrt %469 : vector<16x1xf32>
    %471 = vector.broadcast %470 : vector<16x1xf32> to vector<16x32xf32>
    %472 = arith.mulf %462, %471 : vector<16x32xf32>
    %473 = vector.broadcast %454 : vector<1x32xf32> to vector<16x32xf32>
    %474 = arith.mulf %472, %473 : vector<16x32xf32>
    %475 = vector.broadcast %456 : vector<1x32xf32> to vector<16x32xf32>
    %476 = arith.addf %474, %475 : vector<16x32xf32>
    %477 = arith.truncf %476 : vector<16x32xf32> to vector<16x32xbf16>
    %c1_172 = arith.constant 1 : index
    %c0_173 = arith.constant 0 : index
    %c0_174 = arith.constant 0 : index
    %478 = vector.load %arg10[%c1_172, %c0_173, %c0_174] : memref<2x32x128xbf16, #tpu.memory_space<vmem>>, vector<1x32x128xbf16>
    %479 = vector.shape_cast %478 : vector<1x32x128xbf16> to vector<32x128xbf16>
    %cst_175 = arith.constant dense<0.000000e+00> : vector<16x128xf32>
    %480 = tpu.matmul %477, %479, %cst_175 {dimension_numbers = #tpu.dot_dimension_numbers<[1], [0], [0], [1], [0, 0, 1, 1], [], []>} : vector<16x32xbf16>, vector<32x128xbf16>, vector<16x128xf32> -> vector<16x128xf32>
    %c1_176 = arith.constant 1 : index
    %c0_177 = arith.constant 0 : index
    %c0_178 = arith.constant 0 : index
    %481 = vector.load %arg11[%c1_176, %c0_177, %c0_178] : memref<2x1x128xf32, #tpu.memory_space<vmem>>, vector<1x1x128xf32>
    %482 = vector.shape_cast %481 : vector<1x1x128xf32> to vector<1x128xf32>
    %483 = vector.broadcast %482 : vector<1x128xf32> to vector<16x128xf32>
    %484 = arith.addf %480, %483 : vector<16x128xf32>
    %cst_179 = arith.constant 5.000000e-01 : f32
    %485 = vector.broadcast %cst_179 : f32 to vector<16x128xf32>
    %486 = arith.mulf %485, %484 : vector<16x128xf32>
    %cst_180 = arith.constant 0.707106769 : f32
    %487 = vector.broadcast %cst_180 : f32 to vector<16x128xf32>
    %488 = arith.mulf %484, %487 : vector<16x128xf32>
    %489 = math.erf %488 : vector<16x128xf32>
    %cst_181 = arith.constant 1.000000e+00 : f32
    %490 = vector.broadcast %cst_181 : f32 to vector<16x128xf32>
    %491 = arith.addf %490, %489 : vector<16x128xf32>
    %492 = arith.mulf %486, %491 : vector<16x128xf32>
    %493 = arith.truncf %492 : vector<16x128xf32> to vector<16x128xbf16>
    %c1_182 = arith.constant 1 : index
    %c0_183 = arith.constant 0 : index
    %c0_184 = arith.constant 0 : index
    %494 = vector.load %arg12[%c1_182, %c0_183, %c0_184] : memref<2x128x32xbf16, #tpu.memory_space<vmem>>, vector<1x128x32xbf16>
    %495 = vector.shape_cast %494 : vector<1x128x32xbf16> to vector<128x32xbf16>
    %cst_185 = arith.constant dense<0.000000e+00> : vector<16x32xf32>
    %496 = tpu.matmul %493, %495, %cst_185 {dimension_numbers = #tpu.dot_dimension_numbers<[1], [0], [0], [1], [0, 0, 1, 1], [], []>} : vector<16x128xbf16>, vector<128x32xbf16>, vector<16x32xf32> -> vector<16x32xf32>
    %c1_186 = arith.constant 1 : index
    %c0_187 = arith.constant 0 : index
    %c0_188 = arith.constant 0 : index
    %497 = vector.load %arg13[%c1_186, %c0_187, %c0_188] : memref<2x1x32xf32, #tpu.memory_space<vmem>>, vector<1x1x32xf32>
    %498 = vector.shape_cast %497 : vector<1x1x32xf32> to vector<1x32xf32>
    %499 = vector.broadcast %498 : vector<1x32xf32> to vector<16x32xf32>
    %500 = arith.addf %496, %499 : vector<16x32xf32>
    %501 = arith.addf %500, %476 : vector<16x32xf32>
    %c1_189 = arith.constant 1 : index
    %c0_190 = arith.constant 0 : index
    %c0_191 = arith.constant 0 : index
    %502 = vector.load %arg14[%c1_189, %c0_190, %c0_191] : memref<2x1x32xf32, #tpu.memory_space<vmem>>, vector<1x1x32xf32>
    %503 = vector.shape_cast %502 : vector<1x1x32xf32> to vector<1x32xf32>
    %c1_192 = arith.constant 1 : index
    %c0_193 = arith.constant 0 : index
    %c0_194 = arith.constant 0 : index
    %504 = vector.load %arg15[%c1_192, %c0_193, %c0_194] : memref<2x1x32xf32, #tpu.memory_space<vmem>>, vector<1x1x32xf32>
    %505 = vector.shape_cast %504 : vector<1x1x32xf32> to vector<1x32xf32>
    %cst_195 = arith.constant dense<0.000000e+00> : vector<16xf32>
    %506 = vector.multi_reduction <add>, %501, %cst_195 [1] : vector<16x32xf32> to vector<16xf32>
    %507 = vector.shape_cast %506 : vector<16xf32> to vector<16x1xf32>
    %cst_196 = arith.constant 3.200000e+01 : f32
    %508 = vector.broadcast %cst_196 : f32 to vector<16x1xf32>
    %509 = arith.divf %507, %508 : vector<16x1xf32>
    %510 = vector.broadcast %509 : vector<16x1xf32> to vector<16x32xf32>
    %511 = arith.subf %501, %510 : vector<16x32xf32>
    %512 = arith.mulf %511, %511 : vector<16x32xf32>
    %cst_197 = arith.constant dense<0.000000e+00> : vector<16xf32>
    %513 = vector.multi_reduction <add>, %512, %cst_197 [1] : vector<16x32xf32> to vector<16xf32>
    %514 = vector.shape_cast %513 : vector<16xf32> to vector<16x1xf32>
    %cst_198 = arith.constant 3.200000e+01 : f32
    %515 = vector.broadcast %cst_198 : f32 to vector<16x1xf32>
    %516 = arith.divf %514, %515 : vector<16x1xf32>
    %cst_199 = arith.constant 9.99999996E-13 : f32
    %517 = vector.broadcast %cst_199 : f32 to vector<16x1xf32>
    %518 = arith.addf %516, %517 : vector<16x1xf32>
    %519 = math.rsqrt %518 : vector<16x1xf32>
    %520 = vector.broadcast %519 : vector<16x1xf32> to vector<16x32xf32>
    %521 = arith.mulf %511, %520 : vector<16x32xf32>
    %522 = vector.broadcast %503 : vector<1x32xf32> to vector<16x32xf32>
    %523 = arith.mulf %521, %522 : vector<16x32xf32>
    %524 = vector.broadcast %505 : vector<1x32xf32> to vector<16x32xf32>
    %525 = arith.addf %523, %524 : vector<16x32xf32>
    %526 = arith.truncf %525 : vector<16x32xf32> to vector<16x32xbf16>
    %c0_200 = arith.constant 0 : index
    %c0_201 = arith.constant 0 : index
    %527 = vector.load %arg19[%c0_200, %c0_201] : memref<32x32xbf16, #tpu.memory_space<vmem>>, vector<32x32xbf16>
    %cst_202 = arith.constant dense<0.000000e+00> : vector<16x32xf32>
    %528 = tpu.matmul %526, %527, %cst_202 {dimension_numbers = #tpu.dot_dimension_numbers<[1], [0], [0], [1], [0, 0, 1, 1], [], []>} : vector<16x32xbf16>, vector<32x32xbf16>, vector<16x32xf32> -> vector<16x32xf32>
    %c0_203 = arith.constant 0 : index
    %c0_204 = arith.constant 0 : index
    %529 = vector.load %arg20[%c0_203, %c0_204] : memref<1x32xf32, #tpu.memory_space<vmem>>, vector<1x32xf32>
    %530 = vector.broadcast %529 : vector<1x32xf32> to vector<16x32xf32>
    %531 = arith.addf %528, %530 : vector<16x32xf32>
    %cst_205 = arith.constant 5.000000e-01 : f32
    %532 = vector.broadcast %cst_205 : f32 to vector<16x32xf32>
    %533 = arith.mulf %532, %531 : vector<16x32xf32>
    %cst_206 = arith.constant 0.707106769 : f32
    %534 = vector.broadcast %cst_206 : f32 to vector<16x32xf32>
    %535 = arith.mulf %531, %534 : vector<16x32xf32>
    %536 = math.erf %535 : vector<16x32xf32>
    %cst_207 = arith.constant 1.000000e+00 : f32
    %537 = vector.broadcast %cst_207 : f32 to vector<16x32xf32>
    %538 = arith.addf %537, %536 : vector<16x32xf32>
    %539 = arith.mulf %533, %538 : vector<16x32xf32>
    %c0_208 = arith.constant 0 : index
    %c0_209 = arith.constant 0 : index
    %540 = vector.load %arg21[%c0_208, %c0_209] : memref<1x32xf32, #tpu.memory_space<vmem>>, vector<1x32xf32>
    %c0_210 = arith.constant 0 : index
    %c0_211 = arith.constant 0 : index
    %541 = vector.load %arg22[%c0_210, %c0_211] : memref<1x32xf32, #tpu.memory_space<vmem>>, vector<1x32xf32>
    %cst_212 = arith.constant dense<0.000000e+00> : vector<16xf32>
    %542 = vector.multi_reduction <add>, %539, %cst_212 [1] : vector<16x32xf32> to vector<16xf32>
    %543 = vector.shape_cast %542 : vector<16xf32> to vector<16x1xf32>
    %cst_213 = arith.constant 3.200000e+01 : f32
    %544 = vector.broadcast %cst_213 : f32 to vector<16x1xf32>
    %545 = arith.divf %543, %544 : vector<16x1xf32>
    %546 = vector.broadcast %545 : vector<16x1xf32> to vector<16x32xf32>
    %547 = arith.subf %539, %546 : vector<16x32xf32>
    %548 = arith.mulf %547, %547 : vector<16x32xf32>
    %cst_214 = arith.constant dense<0.000000e+00> : vector<16xf32>
    %549 = vector.multi_reduction <add>, %548, %cst_214 [1] : vector<16x32xf32> to vector<16xf32>
    %550 = vector.shape_cast %549 : vector<16xf32> to vector<16x1xf32>
    %cst_215 = arith.constant 3.200000e+01 : f32
    %551 = vector.broadcast %cst_215 : f32 to vector<16x1xf32>
    %552 = arith.divf %550, %551 : vector<16x1xf32>
    %cst_216 = arith.constant 9.99999996E-13 : f32
    %553 = vector.broadcast %cst_216 : f32 to vector<16x1xf32>
    %554 = arith.addf %552, %553 : vector<16x1xf32>
    %555 = math.rsqrt %554 : vector<16x1xf32>
    %556 = vector.broadcast %555 : vector<16x1xf32> to vector<16x32xf32>
    %557 = arith.mulf %547, %556 : vector<16x32xf32>
    %558 = vector.broadcast %540 : vector<1x32xf32> to vector<16x32xf32>
    %559 = arith.mulf %557, %558 : vector<16x32xf32>
    %560 = vector.broadcast %541 : vector<1x32xf32> to vector<16x32xf32>
    %561 = arith.addf %559, %560 : vector<16x32xf32>
    %562 = arith.truncf %561 : vector<16x32xf32> to vector<16x32xbf16>
    %c0_217 = arith.constant 0 : index
    %c0_218 = arith.constant 0 : index
    %563 = vector.load %arg23[%c0_217, %c0_218] : memref<32x128xbf16, #tpu.memory_space<vmem>>, vector<32x128xbf16>
    %cst_219 = arith.constant dense<0.000000e+00> : vector<16x128xf32>
    %564 = tpu.matmul %562, %563, %cst_219 {dimension_numbers = #tpu.dot_dimension_numbers<[1], [0], [0], [1], [0, 0, 1, 1], [], []>} : vector<16x32xbf16>, vector<32x128xbf16>, vector<16x128xf32> -> vector<16x128xf32>
    %c0_220 = arith.constant 0 : index
    %c0_221 = arith.constant 0 : index
    %565 = vector.load %arg24[%c0_220, %c0_221] : memref<1x128xf32, #tpu.memory_space<vmem>>, vector<1x128xf32>
    %566 = vector.broadcast %565 : vector<1x128xf32> to vector<16x128xf32>
    %567 = arith.addf %564, %566 : vector<16x128xf32>
    %c0_222 = arith.constant 0 : index
    %c0_223 = arith.constant 0 : index
    %568 = vector.load %arg25[%c0_222, %c0_223] : memref<16x128xf32, #tpu.memory_space<vmem>>, vector<16x128xf32>
    tpu.vector_store %arg25[%c0_222, %c0_223], %567 {strides = array<i32>} : memref<16x128xf32, #tpu.memory_space<vmem>>, vector<16x128xf32>,
    return
  }
  func.func @transform_0(%arg0: i32) -> (i32, i32) {
    %c0_i32 = arith.constant 0 : i32
    %c0_i32_0 = arith.constant 0 : i32
    %c0_i32_1 = arith.constant 0 : i32
    return %c0_i32, %c0_i32_0 : i32, i32
  }
  func.func @transform_1(%arg0: i32) -> (i32, i32) {
    %c0_i32 = arith.constant 0 : i32
    %c0_i32_0 = arith.constant 0 : i32
    %c0_i32_1 = arith.constant 0 : i32
    return %c0_i32, %c0_i32_0 : i32, i32
  }
  func.func @transform_2(%arg0: i32) -> (i32, i32) {
    %c0_i32 = arith.constant 0 : i32
    %c0_i32_0 = arith.constant 0 : i32
    %c0_i32_1 = arith.constant 0 : i32
    return %c0_i32, %c0_i32_0 : i32, i32
  }
  func.func @transform_3(%arg0: i32) -> (i32, i32, i32) {
    %c0_i32 = arith.constant 0 : i32
    %c0_i32_0 = arith.constant 0 : i32
    %c0_i32_1 = arith.constant 0 : i32
    %c0_i32_2 = arith.constant 0 : i32
    return %c0_i32, %c0_i32_0, %c0_i32_1 : i32, i32, i32
  }
  func.func @transform_4(%arg0: i32) -> (i32, i32, i32) {
    %c0_i32 = arith.constant 0 : i32
    %c0_i32_0 = arith.constant 0 : i32
    %c0_i32_1 = arith.constant 0 : i32
    %c0_i32_2 = arith.constant 0 : i32
    return %c0_i32, %c0_i32_0, %c0_i32_1 : i32, i32, i32
  }
  func.func @transform_5(%arg0: i32) -> (i32, i32, i32) {
    %c0_i32 = arith.constant 0 : i32
    %c0_i32_0 = arith.constant 0 : i32
    %c0_i32_1 = arith.constant 0 : i32
    %c0_i32_2 = arith.constant 0 : i32
    return %c0_i32, %c0_i32_0, %c0_i32_1 : i32, i32, i32
  }
  func.func @transform_6(%arg0: i32) -> (i32, i32, i32) {
    %c0_i32 = arith.constant 0 : i32
    %c0_i32_0 = arith.constant 0 : i32
    %c0_i32_1 = arith.constant 0 : i32
    %c0_i32_2 = arith.constant 0 : i32
    return %c0_i32, %c0_i32_0, %c0_i32_1 : i32, i32, i32
  }
  func.func @transform_7(%arg0: i32) -> (i32, i32, i32) {
    %c0_i32 = arith.constant 0 : i32
    %c0_i32_0 = arith.constant 0 : i32
    %c0_i32_1 = arith.constant 0 : i32
    %c0_i32_2 = arith.constant 0 : i32
    return %c0_i32, %c0_i32_0, %c0_i32_1 : i32, i32, i32
  }
  func.func @transform_8(%arg0: i32) -> (i32, i32, i32) {
    %c0_i32 = arith.constant 0 : i32
    %c0_i32_0 = arith.constant 0 : i32
    %c0_i32_1 = arith.constant 0 : i32
    %c0_i32_2 = arith.constant 0 : i32
    return %c0_i32, %c0_i32_0, %c0_i32_1 : i32, i32, i32
  }
  func.func @transform_9(%arg0: i32) -> (i32, i32, i32) {
    %c0_i32 = arith.constant 0 : i32
    %c0_i32_0 = arith.constant 0 : i32
    %c0_i32_1 = arith.constant 0 : i32
    %c0_i32_2 = arith.constant 0 : i32
    return %c0_i32, %c0_i32_0, %c0_i32_1 : i32, i32, i32
  }
  func.func @transform_10(%arg0: i32) -> (i32, i32, i32) {
    %c0_i32 = arith.constant 0 : i32
    %c0_i32_0 = arith.constant 0 : i32
    %c0_i32_1 = arith.constant 0 : i32
    %c0_i32_2 = arith.constant 0 : i32
    return %c0_i32, %c0_i32_0, %c0_i32_1 : i32, i32, i32
  }
  func.func @transform_11(%arg0: i32) -> (i32, i32, i32) {
    %c0_i32 = arith.constant 0 : i32
    %c0_i32_0 = arith.constant 0 : i32
    %c0_i32_1 = arith.constant 0 : i32
    %c0_i32_2 = arith.constant 0 : i32
    return %c0_i32, %c0_i32_0, %c0_i32_1 : i32, i32, i32
  }
  func.func @transform_12(%arg0: i32) -> (i32, i32, i32) {
    %c0_i32 = arith.constant 0 : i32
    %c0_i32_0 = arith.constant 0 : i32
    %c0_i32_1 = arith.constant 0 : i32
    %c0_i32_2 = arith.constant 0 : i32
    return %c0_i32, %c0_i32_0, %c0_i32_1 : i32, i32, i32
  }
  func.func @transform_13(%arg0: i32) -> (i32, i32, i32) {
    %c0_i32 = arith.constant 0 : i32
    %c0_i32_0 = arith.constant 0 : i32
    %c0_i32_1 = arith.constant 0 : i32
    %c0_i32_2 = arith.constant 0 : i32
    return %c0_i32, %c0_i32_0, %c0_i32_1 : i32, i32, i32
  }
  func.func @transform_14(%arg0: i32) -> (i32, i32, i32) {
    %c0_i32 = arith.constant 0 : i32
    %c0_i32_0 = arith.constant 0 : i32
    %c0_i32_1 = arith.constant 0 : i32
    %c0_i32_2 = arith.constant 0 : i32
    return %c0_i32, %c0_i32_0, %c0_i32_1 : i32, i32, i32
  }
  func.func @transform_15(%arg0: i32) -> (i32, i32) {
    %c0_i32 = arith.constant 0 : i32
    %c0_i32_0 = arith.constant 0 : i32
    %c0_i32_1 = arith.constant 0 : i32
    return %c0_i32, %c0_i32_0 : i32, i32
  }
  func.func @transform_16(%arg0: i32) -> (i32, i32) {
    %c0_i32 = arith.constant 0 : i32
    %c0_i32_0 = arith.constant 0 : i32
    %c0_i32_1 = arith.constant 0 : i32
    return %c0_i32, %c0_i32_0 : i32, i32
  }
  func.func @transform_17(%arg0: i32) -> (i32, i32) {
    %c0_i32 = arith.constant 0 : i32
    %c0_i32_0 = arith.constant 0 : i32
    %c0_i32_1 = arith.constant 0 : i32
    return %c0_i32, %c0_i32_0 : i32, i32
  }
  func.func @transform_18(%arg0: i32) -> (i32, i32) {
    %c0_i32 = arith.constant 0 : i32
    %c0_i32_0 = arith.constant 0 : i32
    %c0_i32_1 = arith.constant 0 : i32
    return %c0_i32, %c0_i32_0 : i32, i32
  }
  func.func @transform_19(%arg0: i32) -> (i32, i32) {
    %c0_i32 = arith.constant 0 : i32
    %c0_i32_0 = arith.constant 0 : i32
    %c0_i32_1 = arith.constant 0 : i32
    return %c0_i32, %c0_i32_0 : i32, i32
  }
  func.func @transform_20(%arg0: i32) -> (i32, i32) {
    %c0_i32 = arith.constant 0 : i32
    %c0_i32_0 = arith.constant 0 : i32
    %c0_i32_1 = arith.constant 0 : i32
    return %c0_i32, %c0_i32_0 : i32, i32
  }
  func.func @transform_21(%arg0: i32) -> (i32, i32) {
    %c0_i32 = arith.constant 0 : i32
    %c0_i32_0 = arith.constant 0 : i32
    %c0_i32_1 = arith.constant 0 : i32
    return %c0_i32, %c0_i32_0 : i32, i32
  }
  func.func @transform_22(%arg0: i32) -> (i32, i32) {
    %c0_i32 = arith.constant 0 : i32
    %c0_i32_0 = arith.constant 0 : i32
    %c0_i32_1 = arith.constant 0 : i32
    return %c0_i32, %c0_i32_0 : i32, i32
  }
  func.func @transform_23(%arg0: i32) -> (i32, i32) {
    %c0_i32 = arith.constant 0 : i32
    %c0_i32_0 = arith.constant 0 : i32
    %c0_i32_1 = arith.constant 0 : i32
    return %c0_i32, %c0_i32_0 : i32, i32
  }
  func.func @transform_24(%arg0: i32) -> (i32, i32) {
    %c0_i32 = arith.constant 0 : i32
    %c0_i32_0 = arith.constant 0 : i32
    %c0_i32_1 = arith.constant 0 : i32
    return %c0_i32, %c0_i32_0 : i32, i32
  }
}

</mosaic_0001>

<bundles_post_ra>
// kernel: roformer_forward.1
= control target key start
LH: loop header
LB: loop body
LE: loop exit
PB: predicated region body
PF: predicated region fallthrough
CT: control target
= control target key end

     0   :  { %s5567_s0 = inlined_call_operand.vmem [shape: f32[16,32], index: 0, kind: input, shape index: {}]   ;;  %s5568_s1 = inlined_call_operand.vmem [shape: f32[1,32], index: 1, kind: input, shape index: {}]   ;;  %s5569_s2 = inlined_call_operand.vmem [shape: f32[1,32], index: 2, kind: input, shape index: {}]   ;;  %s5570_s3 = inlined_call_operand.vmem [shape: bf16[2,32,160], index: 3, kind: input, shape index: {}]   ;;  %s5571_s4 = inlined_call_operand.vmem [shape: f32[2,1,160], index: 4, kind: input, shape index: {}]   ;;  %s5572_s5 = inlined_call_operand.vmem [shape: bf16[2,32,32], index: 5, kind: input, shape index: {}]   ;;  %s5573_s6 = inlined_call_operand.vmem [shape: f32[2,1,32], index: 6, kind: input, shape index: {}]   ;;  %s5574_s7 = inlined_call_operand.vmem [shape: f32[2,1,32], index: 7, kind: input, shape index: {}]   ;;  %s5575_s8 = inlined_call_operand.vmem [shape: f32[2,1,32], index: 8, kind: input, shape index: {}]   ;;  %s5576_s9 = inlined_call_operand.vmem [shape: bf16[2,32,128], index: 9, kind: input, shape index: {}]   ;;  %s5577_s10 = inlined_call_operand.vmem [shape: f32[2,1,128], index: 10, kind: input, shape index: {}]   ;;  %s5578_s11 = inlined_call_operand.vmem [shape: bf16[2,128,32], index: 11, kind: input, shape index: {}]   ;;  %s5579_s12 = inlined_call_operand.vmem [shape: f32[2,1,32], index: 12, kind: input, shape index: {}]   ;;  %s5580_s13 = inlined_call_operand.vmem [shape: f32[2,1,32], index: 13, kind: input, shape index: {}]   ;;  %s5581_s14 = inlined_call_operand.vmem [shape: f32[2,1,32], index: 14, kind: input, shape index: {}]   ;;  %s5582_s15 = inlined_call_operand.vmem [shape: f32[16,32], index: 15, kind: input, shape index: {}]   ;;  %s5583_s16 = inlined_call_operand.vmem [shape: f32[16,32], index: 16, kind: input, shape index: {}]   ;;  %s5584_s17 = inlined_call_operand.vmem [shape: f32[2,8], index: 17, kind: input, shape index: {}]   ;;  %s5585_s18 = inlined_call_operand.vmem [shape: bf16[32,32], index: 18, kind: input, shape index: {}]   ;;  %s5586_s19 = inlined_call_operand.vmem [shape: f32[1,32], index: 19, kind: input, shape index: {}]   ;;  %s5587_s20 = inlined_call_operand.vmem [shape: f32[1,32], index: 20, kind: input, shape index: {}]   ;;  %s5588_s21 = inlined_call_operand.vmem [shape: f32[1,32], index: 21, kind: input, shape index: {}]   ;;  %s5589_s22 = inlined_call_operand.vmem [shape: bf16[32,128], index: 22, kind: input, shape index: {}]   ;;  %s5590_s23 = inlined_call_operand.vmem [shape: f32[1,128], index: 23, kind: input, shape index: {}]   ;;  %s5591_s24 = inlined_call_operand.hbm [shape: f32[16,128], index: 24, kind: output, shape index: {}]  }
   0x1   :  { %5613 = sst [smem:[#allocation5_spill]] %s5567_s0 }
   0x2   :  { %5614 = sst [smem:[#allocation6_spill]] %s5568_s1 }
   0x3   :  { %5615 = sst [smem:[#allocation7_spill]] %s5569_s2 }
   0x4   :  { %5616 = sst [smem:[#allocation8_spill]] %s5570_s3 }
   0x5   :  { %5617 = sst [smem:[#allocation9_spill]] %s5571_s4 }
   0x6   :  { %5618 = sst [smem:[#allocation10_spill]] %s5572_s5 }
   0x7   :  { %5619 = sst [smem:[#allocation11_spill]] %s5573_s6 }
   0x8   :  { %5620 = sst [smem:[#allocation12_spill]] %s5574_s7 }
   0x9   :  { %5621 = sst [smem:[#allocation13_spill]] %s5575_s8 }
   0xa   :  { %s5622_s27 = sld [smem:[#allocation5_spill]]  ;;  %vm83_vm0 = vcmask 261120  }
  0x10   :  { %v79_v0 = vld [vmem:[%s5622_s27] sm:$0xff]  ;;  %v80_v1 = vld [vmem:[%s5622_s27 + $0x8] sm:$0xff] }
  0x11   :  { %v84_v2 = vsel %vm83_vm0, %v79_v0, 0.0  ;;  %v87_v3 = vsel %vm83_vm0, %v80_v1, 0.0 }
  0x12   :  { %85 = vadd.xlane.f32.xlu0 %v84_v2 }
  0x16   :  { %88 = vadd.xlane.f32.xlu0 %v87_v3 }
  0x17   :  { %29 = vsyncpa [#allocation3], 0  ;;  %s5623_s0 = sld [smem:[#allocation8_spill]]  ;;  %v4742_v17 = vmov 0   ;;  %v129_v19 = vld [vmem:[%s5583_s16] sm:$0xff]  ;;  %s4743_s28 = smov 96   ;;  %v139_v39 = vlaneseq }
  0x18   :  { %204 = vmatprep.mubr.bf16.mxu0 %v4742_v17  ;;  %v4913_v20 = vld [vmem:[%s5582_s15] sm:$0xff]  ;;  %s4744_s6 = smov 64   ;;  %s5624_s7 = sld [smem:[#allocation6_spill]]  ;;  %v4745_v38 = vmov 0.0   ;;  %vm4747_vm1 = vmmov 0   ;;  %v130_v62 = vld [vmem:[%s5583_s16 + $0x8] sm:$0xff] }
  0x19   :  { %s5625_s25 = sld [smem:[#allocation7_spill]]  ;;  %4286 = vmatprep.subr.mxu1 %v4745_v38  ;;  %v140_v40 = vshrl.u32 %v139_v39, 7  ;;  %s5626_s1 = sld [smem:[#allocation9_spill]]  ;;  %4288 = vmatprep.mubr.msk.f32.mxu1 %vm4747_vm1, %v4745_v38  ;;  %v128_v63 = vld [vmem:[%s5582_s15 + $0x8] sm:$0xff]  ;;  %vm268_vm2 = vcmask 64512   ;;  %vm949_vm3 = vcmask 130048  }
  0x1a   :  { %s4746_s5 = smov 32   ;;  %s5611_s30 = smov 56   ;;  %vm951_vm4 = vcmask 195584  }
  0x1b   :  { %v4933_v41 = vsub.s32 0, %v140_v40  ;;  %v4938_v43 = vsub.s32 1, %v140_v40  ;;  %s4749_s3 = smov 120   ;;  %s5605_s8 = smov 104  }
  0x1c   :  { %s5609_s4 = smov 112   ;;  %s5627_s27 = sld [smem:[#allocation10_spill]] }
  0x1d   :  { %v4576_v14 = vld [vmem:[%s5623_s0 + $0x4] ss:$8 sps:$4 sm:$0xff]   ;;  %v4578_v15 = vld [vmem:[%s5623_s0] ss:$8 sps:$4 sm:$0xff]   ;;  %v4579_v16 = vld [vmem:[%s5623_s0 + $0x14] ss:$8 sps:$4 sm:$0xff]  }
  0x1e   :  { %172 = vmatprep.subr.bf16.mxu0 %v4576_v14  ;;  %v4581_v18 = vld [vmem:[%s5623_s0 + $0x10] ss:$8 sps:$4 sm:$0xff]   ;;  %v4033_v29 = vld [vmem:[%s5624_s7] ss:$0 sm:$0xff]  ;;  %s5601_s16 = smov 8   ;;  %s5600_s7 = smov 16  }
  0x1f   :  { %173 = vmatpush1.bf16.msra.mxu0 %v4578_v15  ;;  %v4034_v33 = vld [vmem:[%s5625_s25] ss:$0 sm:$0xff]  ;;  %s5607_s25 = smov 40   ;;  %s5628_s29 = sld [smem:[#allocation11_spill]] }
  0x20   :  { %174 = vmatprep.subr.bf16.mxu0 %v4579_v16  ;;  %v137_v42 = vld [vmem:[%s5626_s1] sm:$0x3]  ;;  %s5631_s26 = smov 56   ;;  %s5633_s2 = smov 40  }
  0x21   :  { %v142_v44 = vrot.slane %v137_v42, %v4933_v41  ;;  %v146_v45 = vrot.slane %v137_v42, %v4938_v43 }
  0x23   :  { %175 = vmatpush1.bf16.msra.mxu0 %v4581_v18 }
  0x24   :  { %4281 = vmatprep.subr.mxu0 %v4745_v38 }
  0x2c   :  { %247 = vrot.lane.b32.xlu0 %v129_v19, %s4743_s28 }
  0x9f   :  { %v86_v4 = vpop.xlane.xlu0 %85 }
  0xa0   :  { %v91_v5 = vmul.f32 0.03125, %v86_v4 }
  0xa2   :  { %v93_v6 = vsub.f32 %v79_v0, %v91_v5 }
  0xa3   :  { %v89_v7 = vpop.xlane.xlu0 %88 }
  0xa4   :  { %v92_v8 = vmul.f32 0.03125, %v89_v7  ;;  %v95_v9 = vmul.f32 %v93_v6, %v93_v6 }
  0xa6   :  { %v94_v10 = vsub.f32 %v80_v1, %v92_v8  ;;  %v97_v11 = vsel %vm83_vm0, %v95_v9, 0.0  ;;  %v4993_v8 = vld [vmem:[%s5584_s17] sm:$0x3]  ;;  %s5603_s17 = smov 48  }
  0xa7   :  { %98 = vadd.xlane.f32.xlu1 %v97_v11  ;;  %v4942_v47 = vpop.permute.xlu0 %247  ;;  %v4997_v9 = vrot.slane %v4993_v8, %v4933_v41 }
  0xa8   :  { %v96_v12 = vmul.f32 %v94_v10, %v94_v10 }
  0xaa   :  { %v100_v13 = vsel %vm83_vm0, %v96_v12, 0.0 }
  0xab   :  { %101 = vadd.xlane.f32.xlu1 %v100_v13 }
  0xbc   :  { %239 = vrot.lane.b32.xlu1 %v4913_v20, %s4744_s6 }
 0x134   :  { %v99_v21 = vpop.xlane.xlu1 %98 }
 0x135   :  { %v103_v22 = vmul.f32 0.03125, %v99_v21 }
 0x137   :  { %v105_v23 = vadd.f32 1e-12, %v103_v22 }
 0x138   :  { %v102_v24 = vpop.xlane.xlu1 %101 }
 0x139   :  { %4616 = vrsqrt.f32 %v105_v23  ;;  %v104_v25 = vmul.f32 0.03125, %v102_v24 }
 0x13b   :  { %v106_v26 = vadd.f32 1e-12, %v104_v25 }
 0x13c   :  { %v4958_v56 = vpop.permute.xlu1 %239 }
 0x13d   :  { %4618 = vrsqrt.f32 %v106_v26 }
 0x143   :  { %v4617_v27 = vpop.eup %4616 }
 0x144   :  { %v109_v28 = vmul.f32 %v4617_v27, %v93_v6 }
 0x146   :  { %v117_v32 = vmul.f32 %v4033_v29, %v109_v28 }
 0x147   :  { %v4619_v30 = vpop.eup %4618 }
 0x148   :  { %v110_v31 = vmul.f32 %v4619_v30, %v94_v10  ;;  %v4924_v35 = vadd.f32 %v4034_v33, %v117_v32 }
 0x14a   :  { %v118_v34 = vmul.f32 %v4033_v29, %v110_v31 }
 0x14c   :  { %v4926_v36 = vadd.f32 %v4034_v33, %v118_v34 }
 0x14e   :  { %v132_v37 = vpack.c.bf16 %v4926_v36, %v4924_v35 }
 0x150   :  { %4039 = vmatmul.mubr.msk.bf16.vlgmr.msra.gmra.mrb[0].mxu0 %vm83_vm0, %v132_v37 }
 0x151   :  { %4283 = vmatprep.mubr.msk.f32.mxu0 %vm4747_vm1, %v4745_v38 }
 0x223   :  { %v206_v46 = vpop.f32.mrb[0].mxu0 }
 0x224   :  { %v207_v48 = vadd.f32 %v206_v46, %v142_v44  ;;  %v208_v49 = vpop.f32.mrb[1].mxu0 }
 0x225   :  { %v4944_v50 = vadd.f32 %v208_v49, %v146_v45  ;;  %v210_v51 = vpop.f32.mrb[2].mxu0 }
 0x226   :  { %v4946_v52 = vadd.f32 %v210_v51, %v142_v44  ;;  %v253_v53 = vmul.f32 %v4942_v47, %v207_v48  ;;  %v212_v54 = vpop.f32.mrb[3].mxu0  ;;  %v245_v57 = vmul.f32 %v4958_v56, %v207_v48  ;;  %v215_v1 = vmul.f32 %v207_v48, %v4913_v20 }
 0x227   :  { %v4949_v55 = vadd.f32 %v212_v54, %v146_v45  ;;  %4287 = vmatpush3.msra.mxu1 %v4944_v50 }
 0x228   :  { %257 = vrot.lane.b32.xlu1 %v253_v53, %s4743_s28  ;;  %4291 = vmatprep.subr.mxu1 %v4745_v38  ;;  %v216_v26 = vmul.f32 %v4946_v52, %v128_v63 }
 0x22c   :  { %219 = vrot.lane.b32.xlu1 %v129_v19, %s4746_s5 }
 0x29a   :  { %v258_v58 = vpop.permute.xlu1 %257 }
 0x29b   :  { %v263_v59 = vadd.f32 %v258_v58, %v245_v57 }
 0x29d   :  { %266 = vrot.lane.b32.xlu0 %v263_v59, %s4744_s6 }
 0x29e   :  { %v4962_v60 = vpop.permute.xlu1 %219 }
 0x29f   :  { %v225_v61 = vmul.f32 %v4962_v60, %v207_v48 }
 0x2a1   :  { %229 = vrot.lane.b32.xlu1 %v225_v61, %s4743_s28 }
 0x2a5   :  { %249 = vrot.lane.b32.xlu1 %v130_v62, %s4743_s28 }
 0x2a9   :  { %221 = vrot.lane.b32.xlu1 %v130_v62, %s4746_s5  ;;  %s5599_s5 = smov 24  }
 0x2ad   :  { %241 = vrot.lane.b32.xlu1 %v128_v63, %s4744_s6 }
 0x30f   :  { %v267_v0 = vpop.permute.xlu0 %266 }
 0x310   :  { %4282 = vmatpush3.xpose.msk.msra.mxu0 %vm268_vm2, %v267_v0 }
 0x311   :  { %4296 = vmatprep.subr.mxu0 %v4745_v38 }
 0x313   :  { %v230_v2 = vpop.permute.xlu1 %229 }
 0x314   :  { %v235_v3 = vadd.f32 %v230_v2, %v215_v1 }
 0x316   :  { %4284 = vmatmul.mubr.msk.f32.vlgmr.msra.gmra.mrb[4].mxu0 %vm268_vm2, %v235_v3 }
 0x317   :  { %v4978_v4 = vpop.permute.xlu1 %249  ;;  %4298 = vmatprep.mubr.msk.f32.mxu0 %vm4747_vm1, %v4745_v38 }
 0x318   :  { %v254_v5 = vmul.f32 %v4978_v4, %v4946_v52 }
 0x31a   :  { %259 = vrot.lane.b32.xlu1 %v254_v5, %s4743_s28 }
 0x31b   :  { %v4985_v6 = vpop.permute.xlu1 %221 }
 0x31c   :  { %v226_v7 = vmul.f32 %v4985_v6, %v4946_v52 }
 0x31e   :  { %231 = vrot.lane.b32.xlu1 %v226_v7, %s4743_s28  ;;  %v5066_v7 = vrot.slane %v4993_v8, %v4938_v43 }
 0x31f   :  { %v5004_v15 = vpop.permute.xlu1 %241 }
 0x320   :  { %v246_v18 = vmul.f32 %v5004_v15, %v4946_v52 }
 0x38c   :  { %v260_v16 = vpop.permute.xlu1 %259 }
 0x38d   :  { %v264_v19 = vadd.f32 %v260_v16, %v246_v18 }
 0x390   :  { %v232_v25 = vpop.permute.xlu1 %231 }
 0x391   :  { %v236_v27 = vadd.f32 %v232_v25, %v216_v26 }
 0x3e9   :  { %v340_v10 = vpop.f32.mrb[4].mxu0 }
 0x3ea   :  { %v344_v11 = vmul.f32 0.35355338, %v340_v10  ;;  %v4285_v12 = vpop.f32.mrb[5].mxu0 }
 0x3ec   :  { %v349_v13 = vadd.f32 %v4997_v9, %v344_v11 }
 0x3ee   :  { %v350_v14 = vsel %vm268_vm2, %v349_v13, -inf }
 0x3ef   :  { %351 = vmax.xlane.f32.xlu0 %v350_v14 }
 0x405   :  { %436 = vrot.lane.b32.xlu0 %v263_v59, %s5611_s30 }
 0x409   :  { %434 = vrot.lane.b32.xlu0 %v235_v3, %s4749_s3 }
 0x40d   :  { %604 = vrot.lane.b32.xlu0 %v263_v59, %s5603_s17 }
 0x411   :  { %771 = vrot.lane.b32.xlu0 %v263_v59, %s5607_s25 }
 0x415   :  { %769 = vrot.lane.b32.xlu0 %v235_v3, %s5605_s8 }
 0x419   :  { %954 = vrot.lane.b32.xlu0 %v264_v19, %s4744_s6 }
 0x41d   :  { %1123 = vrot.lane.b32.xlu0 %v264_v19, %s5611_s30 }
 0x421   :  { %1291 = vrot.lane.b32.xlu0 %v264_v19, %s5603_s17  ;;  %s5634_s17 = smov 104  }
 0x425   :  { %1458 = vrot.lane.b32.xlu0 %v264_v19, %s5607_s25 }
 0x47c   :  { %v352_v20 = vpop.xlane.xlu0 %351 }
 0x47d   :  { %v353_v21 = vsub.f32 %v349_v13, %v352_v20 }
 0x47f   :  { %v354_v22 = vmul.f32 1.442695, %v353_v21 }
 0x480   :  { %v437_v28 = vpop.permute.xlu0 %436 }
 0x481   :  { %4620 = vpow2.f32 %v354_v22 }
 0x484   :  { %v435_v29 = vpop.permute.xlu0 %434 }
 0x488   :  { %v605_v31 = vpop.permute.xlu0 %604 }
 0x48b   :  { %v4621_v23 = vpop.eup %4620 }
 0x48c   :  { %v356_v24 = vsel %vm268_vm2, %v4621_v23, 0.0  ;;  %v772_v32 = vpop.permute.xlu0 %771 }
 0x48d   :  { %357 = vadd.xlane.f32.xlu1 %v356_v24 }
 0x490   :  { %v770_v37 = vpop.permute.xlu0 %769 }
 0x494   :  { %v955_v39 = vpop.permute.xlu0 %954 }
 0x498   :  { %v1124_v42 = vpop.permute.xlu0 %1123 }
 0x49c   :  { %v1292_v45 = vpop.permute.xlu0 %1291 }
 0x49e   :  { %602 = vrot.lane.b32.xlu1 %v235_v3, %s5609_s4 }
 0x4a0   :  { %v1459_v48 = vpop.permute.xlu0 %1458 }
 0x4a2   :  { %1121 = vrot.lane.b32.xlu1 %v236_v27, %s4749_s3 }
 0x4a6   :  { %1289 = vrot.lane.b32.xlu1 %v236_v27, %s5609_s4 }
 0x4aa   :  { %1456 = vrot.lane.b32.xlu1 %v236_v27, %s5605_s8 }
 0x51a   :  { %v358_v30 = vpop.xlane.xlu1 %357 }
 0x51b   :  { %4622 = vrcp.f32 %v358_v30 }
 0x51e   :  { %v603_v40 = vpop.permute.xlu1 %602 }
 0x522   :  { %v1122_v44 = vpop.permute.xlu1 %1121 }
 0x525   :  { %v4623_v33 = vpop.eup %4622 }
 0x526   :  { %v360_v34 = vmul.f32 %v4623_v33, %v4621_v23  ;;  %v1290_v46 = vpop.permute.xlu1 %1289 }
 0x528   :  { %4289 = vmatmul.mubr.msk.f32.vlgmr.msra.gmra.mrb[0].mxu1 %vm268_vm2, %v360_v34 }
 0x529   :  { %4292 = vmatpush3.xpose.msk.msra.mxu1 %vm268_vm2, %v437_v28  ;;  %4293 = vmatprep.mubr.msk.f32.mxu1 %vm4747_vm1, %v4745_v38 }
 0x52a   :  { %4301 = vmatprep.subr.mxu1 %v4745_v38  ;;  %v1457_v49 = vpop.permute.xlu1 %1456 }
 0x52c   :  { %4294 = vmatmul.mubr.msk.f32.vlgmr.msra.gmra.mrb[2].mxu1 %vm268_vm2, %v435_v29 }
 0x52d   :  { %4302 = vmatpush3.xpose.msk.msra.mxu1 %vm268_vm2, %v605_v31  ;;  %4303 = vmatprep.mubr.msk.f32.mxu1 %vm4747_vm1, %v4745_v38 }
 0x52e   :  { %4311 = vmatprep.subr.mxu1 %v4745_v38 }
 0x530   :  { %4304 = vmatmul.mubr.msk.f32.vlgmr.msra.gmra.mrb[4].mxu1 %vm268_vm2, %v603_v40 }
 0x531   :  { %4312 = vmatpush3.xpose.msk.msra.mxu1 %vm268_vm2, %v772_v32  ;;  %4313 = vmatprep.mubr.msk.f32.mxu1 %vm4747_vm1, %v4745_v38 }
 0x532   :  { %4321 = vmatprep.subr.mxu1 %v4745_v38 }
 0x534   :  { %4314 = vmatmul.mubr.msk.f32.vlgmr.msra.gmra.mrb[6].mxu1 %vm268_vm2, %v770_v37 }
 0x535   :  { %4322 = vmatpush3.xpose.msk.msra.mxu1 %vm268_vm2, %v955_v39  ;;  %4323 = vmatprep.mubr.msk.f32.mxu1 %vm4747_vm1, %v4745_v38 }
 0x536   :  { %4331 = vmatprep.subr.mxu1 %v4745_v38 }
 0x538   :  { %4324 = vmatmul.mubr.msk.f32.vlgmr.msra.gmra.mrb[8].mxu1 %vm268_vm2, %v236_v27 }
 0x539   :  { %4332 = vmatpush3.xpose.msk.msra.mxu1 %vm268_vm2, %v1124_v42  ;;  %4333 = vmatprep.mubr.msk.f32.mxu1 %vm4747_vm1, %v4745_v38 }
 0x53a   :  { %4341 = vmatprep.subr.mxu1 %v4745_v38 }
 0x53c   :  { %4334 = vmatmul.mubr.msk.f32.vlgmr.msra.gmra.mrb[10].mxu1 %vm268_vm2, %v1122_v44 }
 0x53d   :  { %4342 = vmatpush3.xpose.msk.msra.mxu1 %vm268_vm2, %v1292_v45  ;;  %4343 = vmatprep.mubr.msk.f32.mxu1 %vm4747_vm1, %v4745_v38 }
 0x53e   :  { %4351 = vmatprep.subr.mxu1 %v4745_v38 }
 0x540   :  { %4344 = vmatmul.mubr.msk.f32.vlgmr.msra.gmra.mrb[12].mxu1 %vm268_vm2, %v1290_v46 }
 0x541   :  { %4352 = vmatpush3.xpose.msk.msra.mxu1 %vm268_vm2, %v1459_v48  ;;  %4353 = vmatprep.mubr.msk.f32.mxu1 %vm4747_vm1, %v4745_v38 }
 0x542   :  { %4361 = vmatprep.subr.bf16.mxu1 %v4745_v38 }
 0x544   :  { %4354 = vmatmul.mubr.msk.f32.vlgmr.msra.gmra.mrb[14].mxu1 %vm268_vm2, %v1457_v49 }
 0x545   :  { %4365 = vmatprep.mubr.msk.bf16.mxu1 %vm4747_vm1, %v4745_v38 }
 0x5fb   :  { %v5058_v51 = vpop.f32.mrb[0].mxu1 }
 0x5fc   :  { %v4290_v52 = vpop.f32.mrb[1].mxu1 }
 0x5ff   :  { %v508_v53 = vpop.f32.mrb[2].mxu1 }
 0x600   :  { %v512_v54 = vmul.f32 0.35355338, %v508_v53  ;;  %v4295_v57 = vpop.f32.mrb[3].mxu1 }
 0x602   :  { %v513_v58 = vadd.f32 %v512_v54, %v4997_v9 }
 0x603   :  { %v676_v59 = vpop.f32.mrb[4].mxu1 }
 0x604   :  { %v680_v61 = vmul.f32 0.35355338, %v676_v59  ;;  %v4305_v62 = vpop.f32.mrb[5].mxu1  ;;  %v514_v63 = vsel %vm268_vm2, %v513_v58, -inf }
 0x605   :  { %515 = vmax.xlane.f32.xlu0 %v514_v63 }
 0x606   :  { %v681_v0 = vadd.f32 %v680_v61, %v4997_v9 }
 0x607   :  { %v843_v1 = vpop.f32.mrb[6].mxu1 }
 0x608   :  { %v847_v2 = vmul.f32 0.35355338, %v843_v1  ;;  %v4315_v3 = vpop.f32.mrb[7].mxu1  ;;  %v682_v5 = vsel %vm268_vm2, %v681_v0, -inf }
 0x609   :  { %683 = vmax.xlane.f32.xlu1 %v682_v5 }
 0x60a   :  { %v848_v10 = vadd.f32 %v847_v2, %v4997_v9 }
 0x60b   :  { %v1027_v11 = vpop.f32.mrb[8].mxu1 }
 0x60c   :  { %v1031_v12 = vmul.f32 0.35355338, %v1027_v11  ;;  %v4325_v13 = vpop.f32.mrb[9].mxu1  ;;  %v849_v14 = vsel %vm268_vm2, %v848_v10, -inf }
 0x60d   :  { %850 = vmax.xlane.f32.xlu0 %v849_v14 }
 0x60e   :  { %v1036_v16 = vadd.f32 %v5066_v7, %v1031_v12 }
 0x60f   :  { %v1195_v18 = vpop.f32.mrb[10].mxu1 }
 0x610   :  { %v1199_v19 = vmul.f32 0.35355338, %v1195_v18  ;;  %v4335_v20 = vpop.f32.mrb[11].mxu1  ;;  %v1037_v21 = vsel %vm268_vm2, %v1036_v16, -inf }
 0x611   :  { %1038 = vmax.xlane.f32.xlu0 %v1037_v21 }
 0x612   :  { %v1200_v22 = vadd.f32 %v1199_v19, %v5066_v7 }
 0x613   :  { %v1363_v8 = vpop.f32.mrb[12].mxu1 }
 0x614   :  { %v1367_v23 = vmul.f32 0.35355338, %v1363_v8  ;;  %v4345_v24 = vpop.f32.mrb[13].mxu1  ;;  %v1201_v25 = vsel %vm268_vm2, %v1200_v22, -inf }
 0x615   :  { %1202 = vmax.xlane.f32.xlu0 %v1201_v25 }
 0x616   :  { %v1368_v26 = vadd.f32 %v1367_v23, %v5066_v7 }
 0x617   :  { %v1530_v27 = vpop.f32.mrb[14].mxu1 }
 0x618   :  { %v1534_v28 = vmul.f32 0.35355338, %v1530_v27  ;;  %v4355_v29 = vpop.f32.mrb[15].mxu1  ;;  %v1369_v30 = vsel %vm268_vm2, %v1368_v26, -inf }
 0x619   :  { %1370 = vmax.xlane.f32.xlu1 %v1369_v30 }
 0x61a   :  { %v1535_v31 = vadd.f32 %v1534_v28, %v5066_v7 }
 0x61c   :  { %v1536_v32 = vsel %vm268_vm2, %v1535_v31, -inf }
 0x61d   :  { %1537 = vmax.xlane.f32.xlu0 %v1536_v32 }
 0x692   :  { %v516_v33 = vpop.xlane.xlu0 %515 }
 0x693   :  { %v517_v34 = vsub.f32 %v513_v58, %v516_v33 }
 0x695   :  { %v518_v37 = vmul.f32 1.442695, %v517_v34 }
 0x696   :  { %v684_v39 = vpop.xlane.xlu1 %683 }
 0x697   :  { %4624 = vpow2.f32 %v518_v37  ;;  %v685_v40 = vsub.f32 %v681_v0, %v684_v39 }
 0x699   :  { %v686_v42 = vmul.f32 1.442695, %v685_v40 }
 0x69a   :  { %v851_v49 = vpop.xlane.xlu0 %850 }
 0x69b   :  { %4626 = vpow2.f32 %v686_v42  ;;  %v852_v57 = vsub.f32 %v848_v10, %v851_v49 }
 0x69d   :  { %v853_v62 = vmul.f32 1.442695, %v852_v57 }
 0x69e   :  { %v1039_v52 = vpop.xlane.xlu0 %1038 }
 0x69f   :  { %v1040_v53 = vsub.f32 %v1036_v16, %v1039_v52 }
 0x6a1   :  { %v4625_v44 = vpop.eup %4624  ;;  %v1041_v58 = vmul.f32 1.442695, %v1040_v53 }
 0x6a2   :  { %v520_v45 = vsel %vm268_vm2, %v4625_v44, 0.0  ;;  %v1203_v61 = vpop.xlane.xlu0 %1202 }
 0x6a3   :  { %521 = vadd.xlane.f32.xlu1 %v520_v45  ;;  %4628 = vpow2.f32 %v1041_v58  ;;  %v1204_v63 = vsub.f32 %v1200_v22, %v1203_v61 }
 0x6a4   :  { %4630 = vpow2.f32 %v853_v62 }
 0x6a5   :  { %v4627_v46 = vpop.eup %4626  ;;  %v1205_v2 = vmul.f32 1.442695, %v1204_v63  ;;  %v4582_v63 = vld [vmem:[%s5627_s27] sm:$0xff]  }
 0x6a6   :  { %v688_v48 = vsel %vm268_vm2, %v4627_v46, 0.0  ;;  %v1371_v54 = vpop.xlane.xlu1 %1370  ;;  %4362 = vmatpush3.bf16.msra.mxu1 %v4582_v63  ;;  %v4586_v63 = vld [vmem:[%s5578_s11] sm:$0xff]  }
 0x6a7   :  { %689 = vadd.xlane.f32.xlu0 %v688_v48  ;;  %v1372_v59 = vsub.f32 %v1368_v26, %v1371_v54  ;;  %4363 = vmatprep.subr.bf16.mxu1 %v4745_v38 }
 0x6a9   :  { %v1373_v0 = vmul.f32 1.442695, %v1372_v59 }
 0x6aa   :  { %v1538_v1 = vpop.xlane.xlu0 %1537 }
 0x6ab   :  { %4632 = vpow2.f32 %v1373_v0  ;;  %v1539_v3 = vsub.f32 %v1535_v31, %v1538_v1 }
 0x6ac   :  { %4634 = vpow2.f32 %v1205_v2  ;;  %v4583_v2 = vld [vmem:[%s5627_s27 + $0x8] sm:$0xff]  }
 0x6ad   :  { %v1540_v5 = vmul.f32 1.442695, %v1539_v3  ;;  %v4629_v11 = vpop.eup %4628  ;;  %4364 = vmatpush3.bf16.msra.mxu1 %v4583_v2 }
 0x6ae   :  { %v1043_v12 = vsel %vm268_vm2, %v4629_v11, 0.0  ;;  %4377 = vmatprep.subr.bf16.mxu1 %v4745_v38 }
 0x6af   :  { %4636 = vpow2.f32 %v1540_v5 }
 0x6b4   :  { %693 = vrot.lane.b32.xlu1 %v4944_v50, %s5609_s4 }
 0x6b8   :  { %860 = vrot.lane.b32.xlu1 %v4944_v50, %s5605_s8 }
 0x6bc   :  { %1213 = vrot.lane.b32.xlu1 %v4949_v55, %s4749_s3 }
 0x6bd   :  { %526 = vrot.lane.b32.xlu0 %v4944_v50, %s4749_s3  ;;  %v4631_v50 = vpop.eup %4630 }
 0x6be   :  { %v5089_v10 = vpop.eup %4632  ;;  %v855_v13 = vsel %vm268_vm2, %v4631_v50, 0.0 }
 0x6bf   :  { %v1375_v14 = vsel %vm268_vm2, %v5089_v10, 0.0  ;;  %v4635_v16 = vpop.eup %4634 }
 0x6c0   :  { %v1207_v18 = vsel %vm268_vm2, %v4635_v16, 0.0  ;;  %v5095_v19 = vpop.eup %4636 }
 0x6c1   :  { %v1542_v20 = vsel %vm268_vm2, %v5095_v19, 0.0 }
 0x6dc   :  { %1044 = vadd.xlane.f32.xlu0 %v1043_v12 }
 0x6e0   :  { %856 = vadd.xlane.f32.xlu1 %v855_v13  ;;  %1376 = vadd.xlane.f32.xlu0 %v1375_v14 }
 0x6e4   :  { %1208 = vadd.xlane.f32.xlu1 %v1207_v18 }
 0x6e8   :  { %1543 = vadd.xlane.f32.xlu1 %v1542_v20 }
 0x6f6   :  { %1380 = vrot.lane.b32.xlu0 %v4949_v55, %s5609_s4  ;;  %s5638_s4 = smov 24  }
 0x6f9   :  { %1547 = vrot.lane.b32.xlu1 %v4949_v55, %s5605_s8  ;;  %s5636_s8 = smov 8  }
 0x730   :  { %v522_v21 = vpop.xlane.xlu1 %521 }
 0x731   :  { %4638 = vrcp.f32 %v522_v21 }
 0x734   :  { %v690_v22 = vpop.xlane.xlu0 %689  ;;  %v694_v25 = vpop.permute.xlu1 %693 }
 0x735   :  { %4640 = vrcp.f32 %v690_v22 }
 0x738   :  { %v527_v8 = vpop.permute.xlu0 %526  ;;  %v861_v28 = vpop.permute.xlu1 %860 }
 0x739   :  { %4297 = vmatpush3.msra.mxu0 %v527_v8 }
 0x73a   :  { %4306 = vmatprep.subr.mxu0 %v4745_v38 }
 0x73b   :  { %v4639_v23 = vpop.eup %4638 }
 0x73c   :  { %v524_v24 = vmul.f32 %v4639_v23, %v4625_v44  ;;  %v1214_v29 = vpop.permute.xlu1 %1213 }
 0x73e   :  { %4299 = vmatmul.mubr.msk.f32.vlgmr.msra.gmra.mrb[6].mxu0 %vm268_vm2, %v524_v24 }
 0x73f   :  { %v4641_v26 = vpop.eup %4640  ;;  %4307 = vmatpush3.msra.mxu0 %v694_v25  ;;  %4308 = vmatprep.mubr.msk.f32.mxu0 %vm4747_vm1, %v4745_v38 }
 0x740   :  { %v692_v27 = vmul.f32 %v4641_v26, %v4627_v46  ;;  %4316 = vmatprep.subr.mxu0 %v4745_v38 }
 0x742   :  { %4309 = vmatmul.mubr.msk.f32.vlgmr.msra.gmra.mrb[8].mxu0 %vm268_vm2, %v692_v27 }
 0x743   :  { %4317 = vmatpush3.msra.mxu0 %v861_v28  ;;  %4318 = vmatprep.mubr.msk.f32.mxu0 %vm4747_vm1, %v4745_v38 }
 0x744   :  { %4326 = vmatprep.subr.mxu0 %v4745_v38 }
 0x769   :  { %v1045_v31 = vpop.xlane.xlu0 %1044 }
 0x76d   :  { %v857_v30 = vpop.xlane.xlu1 %856  ;;  %v1377_v33 = vpop.xlane.xlu0 %1376 }
 0x76e   :  { %4642 = vrcp.f32 %v857_v30 }
 0x76f   :  { %4644 = vrcp.f32 %v1045_v31 }
 0x771   :  { %v1209_v32 = vpop.xlane.xlu1 %1208  ;;  %v1381_v48 = vpop.permute.xlu0 %1380 }
 0x772   :  { %4646 = vrcp.f32 %v1209_v32 }
 0x773   :  { %4648 = vrcp.f32 %v1377_v33 }
 0x775   :  { %v1544_v39 = vpop.xlane.xlu1 %1543 }
 0x776   :  { %4650 = vrcp.f32 %v1544_v39 }
 0x778   :  { %v4643_v34 = vpop.eup %4642 }
 0x779   :  { %v859_v37 = vmul.f32 %v4643_v34, %v4631_v50  ;;  %v4645_v40 = vpop.eup %4644  ;;  %v1548_v52 = vpop.permute.xlu1 %1547 }
 0x77a   :  { %v1047_v42 = vmul.f32 %v4645_v40, %v4629_v11 }
 0x77b   :  { %4319 = vmatmul.mubr.msk.f32.vlgmr.msra.gmra.mrb[10].mxu0 %vm268_vm2, %v859_v37 }
 0x77c   :  { %4327 = vmatpush3.msra.mxu0 %v4949_v55  ;;  %4328 = vmatprep.mubr.msk.f32.mxu0 %vm4747_vm1, %v4745_v38  ;;  %v4647_v44 = vpop.eup %4646 }
 0x77d   :  { %4336 = vmatprep.subr.mxu0 %v4745_v38  ;;  %v1211_v45 = vmul.f32 %v4647_v44, %v4635_v16  ;;  %v4649_v46 = vpop.eup %4648 }
 0x77e   :  { %v1379_v55 = vmul.f32 %v4649_v46, %v5089_v10 }
 0x77f   :  { %4329 = vmatmul.mubr.msk.f32.vlgmr.msra.gmra.mrb[12].mxu0 %vm268_vm2, %v1047_v42 }
 0x780   :  { %4337 = vmatpush3.msra.mxu0 %v1214_v29  ;;  %4338 = vmatprep.mubr.msk.f32.mxu0 %vm4747_vm1, %v4745_v38  ;;  %v4651_v49 = vpop.eup %4650 }
 0x781   :  { %4346 = vmatprep.subr.mxu0 %v4745_v38  ;;  %v1546_v53 = vmul.f32 %v4651_v49, %v5095_v19 }
 0x783   :  { %4339 = vmatmul.mubr.msk.f32.vlgmr.msra.gmra.mrb[14].mxu0 %vm268_vm2, %v1211_v45 }
 0x784   :  { %4347 = vmatpush3.msra.mxu0 %v1381_v48  ;;  %4348 = vmatprep.mubr.msk.f32.mxu0 %vm4747_vm1, %v4745_v38 }
 0x785   :  { %4356 = vmatprep.subr.mxu0 %v4745_v38 }
 0x787   :  { %4349 = vmatmul.mubr.msk.f32.vlgmr.msra.gmra.mrb[16].mxu0 %vm268_vm2, %v1379_v55 }
 0x788   :  { %4357 = vmatpush3.msra.mxu0 %v1548_v52  ;;  %4358 = vmatprep.mubr.msk.f32.mxu0 %vm4747_vm1, %v4745_v38 }
 0x789   :  { %4369 = vmatprep.subr.bf16.mxu0 %v4745_v38 }
 0x78b   :  { %4359 = vmatmul.mubr.msk.f32.vlgmr.msra.gmra.mrb[18].mxu0 %vm268_vm2, %v1546_v53 }
 0x78c   :  { %4373 = vmatprep.mubr.msk.bf16.mxu0 %vm4747_vm1, %v4745_v38 }
 0x811   :  { %v598_v54 = vpop.f32.mrb[6].mxu0 }
 0x812   :  { %v4300_v57 = vpop.f32.mrb[7].mxu0 }
 0x815   :  { %v765_v58 = vpop.f32.mrb[8].mxu0 }
 0x816   :  { %v4310_v59 = vpop.f32.mrb[9].mxu0 }
 0x84e   :  { %v932_v61 = vpop.f32.mrb[10].mxu0 }
 0x84f   :  { %v4320_v62 = vpop.f32.mrb[11].mxu0 }
 0x850   :  { %v4585_v62 = vld [vmem:[%s5576_s9 + $0x8] sm:$0xff]  }
 0x852   :  { %v1117_v0 = vpop.f32.mrb[12].mxu0 }
 0x853   :  { %v4330_v1 = vpop.f32.mrb[13].mxu0 }
 0x856   :  { %v1285_v3 = vpop.f32.mrb[14].mxu0 }
 0x857   :  { %v4546_v5 = vpack.i.bf16 %v1285_v3, %v598_v54  ;;  %v4340_v11 = vpop.f32.mrb[15].mxu0 }
 0x859   :  { %4547 = vrot.lane.b32.xlu0 %v4546_v5, %s5601_s16 }
 0x85a   :  { %v1452_v50 = vpop.f32.mrb[16].mxu0 }
 0x85b   :  { %v4551_v12 = vpack.i.bf16 %v1452_v50, %v765_v58  ;;  %v4350_v10 = vpop.f32.mrb[17].mxu0 }
 0x85d   :  { %4552 = vrot.lane.b32.xlu1 %v4551_v12, %s5600_s7  ;;  %s5629_s7 = sld [smem:[#allocation12_spill]] }
 0x85e   :  { %v1619_v13 = vpop.f32.mrb[18].mxu0 }
 0x85f   :  { %v4556_v14 = vpack.i.bf16 %v1619_v13, %v932_v61  ;;  %v4360_v16 = vpop.f32.mrb[19].mxu0 }
 0x861   :  { %4557 = vrot.lane.b32.xlu0 %v4556_v14, %s5599_s5  ;;  %s5630_s5 = sld [smem:[#allocation13_spill]] }
 0x863   :  { %v4068_v13 = vld [vmem:[%s5629_s7] ss:$0 sm:$0xff] }
 0x8cb   :  { %v4548_v18 = vpop.permute.xlu0 %4547 }
 0x8cc   :  { %v4550_v20 = vunpack.i.h.bf16 %v4548_v18  ;;  %v4549_v21 = vunpack.i.l.bf16 %v4548_v18 }
 0x8ce   :  { %v1635_v24 = vsel %vm268_vm2, %v1117_v0, %v4550_v20  ;;  %v948_v25 = vsel %vm268_vm2, %v5058_v51, %v4549_v21  ;;  %v4064_v51 = vld [vmem:[%s5628_s29] ss:$0 sm:$0xff]  ;;  %v4587_v0 = vld [vmem:[%s5578_s11 + $0x8] sm:$0xff]  }
 0x8cf   :  { %v4553_v19 = vpop.permute.xlu1 %4552 }
 0x8d0   :  { %v4555_v22 = vunpack.i.h.bf16 %v4553_v19  ;;  %v4554_v8 = vunpack.i.l.bf16 %v4553_v19  ;;  %v4069_v19 = vld [vmem:[%s5630_s5] ss:$0 sm:$0xff] }
 0x8d2   :  { %v1636_v28 = vsel %vm949_vm3, %v1635_v24, %v4555_v22  ;;  %v950_v29 = vsel %vm949_vm3, %v948_v25, %v4554_v8  ;;  %v4589_v24 = vld [vmem:[%s5578_s11 + $0x18] sm:$0xff]   ;;  %v4590_v25 = vld [vmem:[%s5578_s11 + $0x20] sm:$0xff]  }
 0x8d3   :  { %v4558_v23 = vpop.permute.xlu0 %4557 }
 0x8d4   :  { %v4560_v26 = vunpack.i.h.bf16 %v4558_v23  ;;  %v4559_v27 = vunpack.i.l.bf16 %v4558_v23  ;;  %v4588_v23 = vld [vmem:[%s5578_s11 + $0x10] sm:$0xff]  }
 0x8d6   :  { %v952_v30 = vsel %vm951_vm4, %v950_v29, %v4559_v27  ;;  %v1637_v31 = vsel %vm951_vm4, %v1636_v28, %v4560_v26  ;;  %v4592_v26 = vld [vmem:[%s5578_s11 + $0x30] sm:$0xff]   ;;  %v4593_v27 = vld [vmem:[%s5578_s11 + $0x38] sm:$0xff]   ;;  %v4070_v28 = vld [vmem:[%s5577_s10] ss:$0 sm:$0xff] }
 0x8d7   :  { %v1638_v32 = vpack.c.bf16 %v1637_v31, %v952_v30 }
 0x8d9   :  { %4366 = vmatmul.mubr.msk.bf16.vlgmr.msra.gmra.mrb[16].mxu1 %vm83_vm0, %v1638_v32 }
 0x8da   :  { %4393 = vmatprep.mubr.msk.bf16.mxu1 %vm4747_vm1, %v4745_v38  ;;  %4378 = vmatpush3.bf16.msra.mxu1 %v4586_v63 }
 0x8db   :  { %4379 = vmatprep.subr.bf16.mxu1 %v4745_v38 }
 0x8de   :  { %4380 = vmatpush3.bf16.msra.mxu1 %v4587_v0 }
 0x8df   :  { %4381 = vmatprep.subr.bf16.mxu1 %v4745_v38 }
 0x8e2   :  { %4382 = vmatpush3.bf16.msra.mxu1 %v4588_v23 }
 0x8e3   :  { %4383 = vmatprep.subr.bf16.mxu1 %v4745_v38 }
 0x8e6   :  { %4384 = vmatpush3.bf16.msra.mxu1 %v4589_v24 }
 0x8e7   :  { %4385 = vmatprep.subr.bf16.mxu1 %v4745_v38 }
 0x8ea   :  { %4386 = vmatpush3.bf16.msra.mxu1 %v4590_v25 }
 0x8eb   :  { %4387 = vmatprep.subr.bf16.mxu1 %v4745_v38 }
 0x9ac   :  { %v1699_v33 = vpop.f32.mrb[16].mxu1 }
 0x9ad   :  { %v1700_v34 = vadd.f32 %v4064_v51, %v1699_v33  ;;  %v4367_v37 = vpop.f32.mrb[17].mxu1 }
 0x9ae   :  { %v1702_v39 = vpop.f32.mrb[18].mxu1 }
 0x9af   :  { %v1703_v40 = vadd.f32 %v4064_v51, %v1702_v39  ;;  %v4368_v42 = vpop.f32.mrb[19].mxu1  ;;  %v1706_v44 = vadd.f32 %v1700_v34, %v4924_v35 }
 0x9b1   :  { %v1710_v45 = vsel %vm83_vm0, %v1706_v44, 0.0  ;;  %v1707_v46 = vadd.f32 %v1703_v40, %v4926_v36  ;;  %v4584_v36 = vld [vmem:[%s5576_s9] sm:$0xff]  }
 0x9b2   :  { %1711 = vadd.xlane.f32.xlu1 %v1710_v45  ;;  %4370 = vmatpush3.bf16.msra.mxu0 %v4584_v36 }
 0x9b3   :  { %v1713_v48 = vsel %vm83_vm0, %v1707_v46, 0.0  ;;  %4371 = vmatprep.subr.bf16.mxu0 %v4745_v38 }
 0x9b4   :  { %1714 = vadd.xlane.f32.xlu0 %v1713_v48 }
 0x9b6   :  { %4372 = vmatpush3.bf16.msra.mxu0 %v4585_v62 }
 0xa3f   :  { %v1712_v55 = vpop.xlane.xlu1 %1711 }
 0xa40   :  { %v1716_v49 = vmul.f32 0.03125, %v1712_v55 }
 0xa41   :  { %v1715_v52 = vpop.xlane.xlu0 %1714 }
 0xa42   :  { %v1718_v53 = vsub.f32 %v1706_v44, %v1716_v49  ;;  %v1717_v54 = vmul.f32 0.03125, %v1715_v52  ;;  %v4074_v52 = vld [vmem:[%s5579_s12] ss:$0 sm:$0xff] }
 0xa44   :  { %v1719_v57 = vsub.f32 %v1707_v46, %v1717_v54  ;;  %v1720_v58 = vmul.f32 %v1718_v53, %v1718_v53 }
 0xa46   :  { %v1722_v59 = vsel %vm83_vm0, %v1720_v58, 0.0  ;;  %v1721_v61 = vmul.f32 %v1719_v57, %v1719_v57 }
 0xa47   :  { %1723 = vadd.xlane.f32.xlu0 %v1722_v59 }
 0xa48   :  { %v1725_v35 = vsel %vm83_vm0, %v1721_v61, 0.0 }
 0xa4b   :  { %1726 = vadd.xlane.f32.xlu0 %v1725_v35 }
 0xad4   :  { %v1724_v1 = vpop.xlane.xlu0 %1723 }
 0xad5   :  { %v1728_v2 = vmul.f32 0.03125, %v1724_v1 }
 0xad7   :  { %v1730_v3 = vadd.f32 1e-12, %v1728_v2 }
 0xad8   :  { %v1727_v5 = vpop.xlane.xlu0 %1726 }
 0xad9   :  { %4652 = vrsqrt.f32 %v1730_v3  ;;  %v1729_v11 = vmul.f32 0.03125, %v1727_v5 }
 0xadb   :  { %v1731_v50 = vadd.f32 1e-12, %v1729_v11 }
 0xadd   :  { %4654 = vrsqrt.f32 %v1731_v50 }
 0xae3   :  { %v4653_v12 = vpop.eup %4652 }
 0xae4   :  { %v1734_v10 = vmul.f32 %v4653_v12, %v1718_v53 }
 0xae6   :  { %v1742_v16 = vmul.f32 %v4068_v13, %v1734_v10 }
 0xae7   :  { %v4655_v14 = vpop.eup %4654 }
 0xae8   :  { %v1735_v18 = vmul.f32 %v4655_v14, %v1719_v57  ;;  %v1750_v21 = vadd.f32 %v4069_v19, %v1742_v16  ;;  %v4596_v14 = vld [vmem:[%s5623_s0 + $0x24] ss:$8 sps:$4 sm:$0xff]   ;;  %v4594_v16 = vld [vmem:[%s5623_s0 + $0x20] ss:$8 sps:$4 sm:$0xff]  }
 0xae9   :  { %2031 = vmatprep.subr.bf16.mxu0 %v4596_v14 }
 0xaea   :  { %v1743_v20 = vmul.f32 %v4068_v13, %v1735_v18  ;;  %v4597_v18 = vld [vmem:[%s5623_s0 + $0x30] ss:$8 sps:$4 sm:$0xff]  }
 0xaec   :  { %v1751_v22 = vadd.f32 %v4069_v19, %v1743_v20  ;;  %v4599_v19 = vld [vmem:[%s5623_s0 + $0x34] ss:$8 sps:$4 sm:$0xff]  }
 0xaee   :  { %v1752_v8 = vpack.c.bf16 %v1751_v22, %v1750_v21 }
 0xaf0   :  { %4374 = vmatmul.mubr.msk.bf16.vlgmr.msra.gmra.mrb[20].mxu0 %vm83_vm0, %v1752_v8 }
 0xaf1   :  { %2063 = vmatprep.mubr.bf16.mxu0 %v4742_v17  ;;  %v4591_v17 = vld [vmem:[%s5578_s11 + $0x28] sm:$0xff]   ;;  %2032 = vmatpush1.bf16.msra.mxu0 %v4594_v16 }
 0xaf2   :  { %4388 = vmatpush3.bf16.msra.mxu1 %v4591_v17  ;;  %2033 = vmatprep.subr.bf16.mxu0 %v4599_v19  ;;  %v4083_v17 = vld [vmem:[%s5580_s13] ss:$0 sm:$0xff] }
 0xaf3   :  { %4389 = vmatprep.subr.bf16.mxu1 %v4745_v38 }
 0xaf5   :  { %2034 = vmatpush1.bf16.msra.mxu0 %v4597_v18 }
 0xaf6   :  { %4390 = vmatpush3.bf16.msra.mxu1 %v4592_v26  ;;  %4397 = vmatprep.subr.mxu0 %v4745_v38 }
 0xaf7   :  { %4391 = vmatprep.subr.bf16.mxu1 %v4745_v38 }
 0xafa   :  { %4392 = vmatpush3.bf16.msra.mxu1 %v4593_v27 }
 0xafb   :  { %4427 = vmatprep.subr.mxu1 %v4745_v38 }
 0xbc3   :  { %v1813_v29 = vpop.f32.mrb[20].mxu0 }
 0xbc4   :  { %v1814_v30 = vadd.f32 %v4070_v28, %v1813_v29  ;;  %v4375_v31 = vpop.f32.mrb[21].mxu0 }
 0xbc5   :  { %v1816_v32 = vpop.f32.mrb[22].mxu0 }
 0xbc6   :  { %v1822_v51 = vmul.f32 0.70710677, %v1814_v30  ;;  %v1817_v33 = vadd.f32 %v4070_v28, %v1816_v32  ;;  %v4376_v34 = vpop.f32.mrb[23].mxu0  ;;  %v1820_v44 = vmul.f32 0.5, %v1814_v30  ;;  %v4084_v30 = vld [vmem:[%s5581_s14] ss:$0 sm:$0xff] }
 0xbc7   :  { %v4089_v34 = vld [vmem:[%s5626_s1 + $0x2] sm:$0x3]  ;;  %s5637_s1 = smov 16  }
 0xbc8   :  { %4656 = verf.f32 %v1822_v51  ;;  %v1823_v37 = vmul.f32 0.70710677, %v1817_v33  ;;  %v1821_v45 = vmul.f32 0.5, %v1817_v33 }
 0xbca   :  { %4658 = verf.f32 %v1823_v37  ;;  %v2001_v37 = vrot.slane %v4089_v34, %v4933_v41 }
 0xbd2   :  { %v4657_v39 = vpop.eup %4656 }
 0xbd3   :  { %v1826_v40 = vadd.f32 1.0, %v4657_v39 }
 0xbd4   :  { %v4659_v42 = vpop.eup %4658 }
 0xbd5   :  { %v1827_v46 = vadd.f32 1.0, %v4659_v42  ;;  %v1828_v48 = vmul.f32 %v1826_v40, %v1820_v44  ;;  %v2005_v44 = vrot.slane %v4089_v34, %v4938_v43 }
 0xbd7   :  { %v1829_v55 = vmul.f32 %v1827_v46, %v1821_v45 }
 0xbd9   :  { %v1830_v49 = vpack.c.bf16 %v1829_v55, %v1828_v48 }
 0xbdb   :  { %4394 = vmatmul.mubr.bf16.vlgmr.msra.gmra.mrb[20].mxu1 %v1830_v49 }
 0xbdc   :  { %4429 = vmatprep.mubr.msk.f32.mxu1 %vm4747_vm1, %v4745_v38 }
 0xcae   :  { %v1936_v53 = vpop.f32.mrb[20].mxu1 }
 0xcaf   :  { %v1937_v54 = vadd.f32 %v4074_v52, %v1936_v53  ;;  %v4395_v57 = vpop.f32.mrb[21].mxu1 }
 0xcb0   :  { %v1939_v58 = vpop.f32.mrb[22].mxu1 }
 0xcb1   :  { %v1940_v59 = vadd.f32 %v4074_v52, %v1939_v58  ;;  %v4396_v61 = vpop.f32.mrb[23].mxu1  ;;  %v1943_v35 = vadd.f32 %v1937_v54, %v1750_v21 }
 0xcb3   :  { %v1947_v36 = vsel %vm83_vm0, %v1943_v35, 0.0  ;;  %v1944_v62 = vadd.f32 %v1940_v59, %v1751_v22 }
 0xcb4   :  { %1948 = vadd.xlane.f32.xlu1 %v1947_v36 }
 0xcb5   :  { %v1950_v63 = vsel %vm83_vm0, %v1944_v62, 0.0 }
 0xcb6   :  { %1951 = vadd.xlane.f32.xlu0 %v1950_v63 }
 0xd41   :  { %v1949_v0 = vpop.xlane.xlu1 %1948 }
 0xd42   :  { %v1953_v1 = vmul.f32 0.03125, %v1949_v0 }
 0xd43   :  { %v1952_v2 = vpop.xlane.xlu0 %1951 }
 0xd44   :  { %v1955_v3 = vsub.f32 %v1943_v35, %v1953_v1  ;;  %v1954_v5 = vmul.f32 0.03125, %v1952_v2 }
 0xd46   :  { %v1956_v11 = vsub.f32 %v1944_v62, %v1954_v5  ;;  %v1957_v50 = vmul.f32 %v1955_v3, %v1955_v3 }
 0xd48   :  { %v1959_v12 = vsel %vm83_vm0, %v1957_v50, 0.0  ;;  %v1958_v10 = vmul.f32 %v1956_v11, %v1956_v11 }
 0xd49   :  { %1960 = vadd.xlane.f32.xlu1 %v1959_v12 }
 0xd4a   :  { %v1962_v13 = vsel %vm83_vm0, %v1958_v10, 0.0 }
 0xd4b   :  { %1963 = vadd.xlane.f32.xlu0 %v1962_v13 }
 0xdd6   :  { %v1961_v20 = vpop.xlane.xlu1 %1960 }
 0xdd7   :  { %v1965_v21 = vmul.f32 0.03125, %v1961_v20 }
 0xdd8   :  { %v1964_v22 = vpop.xlane.xlu0 %1963 }
 0xdd9   :  { %v1967_v8 = vadd.f32 1e-12, %v1965_v21  ;;  %v1966_v23 = vmul.f32 0.03125, %v1964_v22 }
 0xddb   :  { %4660 = vrsqrt.f32 %v1967_v8  ;;  %v1968_v24 = vadd.f32 1e-12, %v1966_v23 }
 0xddd   :  { %4662 = vrsqrt.f32 %v1968_v24 }
 0xde5   :  { %v4661_v25 = vpop.eup %4660 }
 0xde6   :  { %v1971_v26 = vmul.f32 %v4661_v25, %v1955_v3  ;;  %v4717_v25 = vld [vmem:[%s5582_s15 + $0x8] sm:$0xff] }
 0xde7   :  { %v4663_v27 = vpop.eup %4662 }
 0xde8   :  { %v1979_v28 = vmul.f32 %v4083_v17, %v1971_v26  ;;  %v1972_v29 = vmul.f32 %v4663_v27, %v1956_v11 }
 0xdea   :  { %v1980_v31 = vmul.f32 %v4083_v17, %v1972_v29  ;;  %v5242_v32 = vadd.f32 %v4084_v30, %v1979_v28 }
 0xdec   :  { %v5244_v51 = vadd.f32 %v4084_v30, %v1980_v31 }
 0xdee   :  { %v1989_v33 = vpack.c.bf16 %v5244_v51, %v5242_v32 }
 0xdf0   :  { %4094 = vmatmul.mubr.msk.bf16.vlgmr.msra.gmra.mrb[24].mxu0 %vm83_vm0, %v1989_v33 }
 0xdf1   :  { %4399 = vmatprep.mubr.msk.f32.mxu0 %vm4747_vm1, %v4745_v38 }
 0xec3   :  { %v2065_v39 = vpop.f32.mrb[24].mxu0 }
 0xec4   :  { %v2066_v40 = vadd.f32 %v2065_v39, %v2001_v37  ;;  %v2067_v42 = vpop.f32.mrb[25].mxu0 }
 0xec5   :  { %v2069_v45 = vpop.f32.mrb[26].mxu0  ;;  %v5274_v59 = vadd.f32 %v2067_v42, %v2005_v44 }
 0xec6   :  { %v5256_v46 = vadd.f32 %v2069_v45, %v2001_v37  ;;  %v2071_v48 = vpop.f32.mrb[27].mxu0  ;;  %v2090_v55 = vmul.f32 %v2066_v40, %v4942_v47  ;;  %v2076_v52 = vmul.f32 %v2066_v40, %v4962_v60  ;;  %v2088_v41 = vmul.f32 %v2066_v40, %v4958_v56  ;;  %v4716_v47 = vld [vmem:[%s5582_s15] sm:$0xff]  ;;  %s5635_s15 = smov 48  }
 0xec7   :  { %v5259_v49 = vadd.f32 %v2071_v48, %v2005_v44  ;;  %v2074_v57 = vmul.f32 %v4716_v47, %v2066_v40 }
 0xec8   :  { %2094 = vrot.lane.b32.xlu1 %v2090_v55, %s4743_s28  ;;  %v2091_v5 = vmul.f32 %v5256_v46, %v4978_v4  ;;  %v2077_v11 = vmul.f32 %v5256_v46, %v4985_v6  ;;  %v2089_v8 = vmul.f32 %v5256_v46, %v5004_v15  ;;  %v2075_v17 = vmul.f32 %v4717_v25, %v5256_v46 }
 0xecc   :  { %2080 = vrot.lane.b32.xlu1 %v2076_v52, %s4743_s28 }
 0xf3a   :  { %v2095_v53 = vpop.permute.xlu1 %2094 }
 0xf3b   :  { %v5265_v54 = vadd.f32 %v2095_v53, %v2088_v41 }
 0xf3d   :  { %2103 = vrot.lane.b32.xlu0 %v5265_v54, %s4744_s6 }
 0xf3e   :  { %v2081_v43 = vpop.permute.xlu1 %2080 }
 0xf3f   :  { %v2086_v60 = vadd.f32 %v2081_v43, %v2074_v57 }
 0xfaf   :  { %v2104_v58 = vpop.permute.xlu0 %2103 }
 0xfb0   :  { %4398 = vmatpush3.xpose.msk.msra.mxu0 %vm268_vm2, %v2104_v58 }
 0xfb1   :  { %4402 = vmatprep.subr.mxu0 %v4745_v38 }
 0xfb3   :  { %4400 = vmatmul.mubr.msk.f32.vlgmr.msra.gmra.mrb[28].mxu0 %vm268_vm2, %v2086_v60 }
 0xfb4   :  { %4403 = vmatpush3.msra.mxu0 %v5274_v59  ;;  %4404 = vmatprep.mubr.msk.f32.mxu0 %vm4747_vm1, %v4745_v38 }
 0xfb5   :  { %4407 = vmatprep.subr.mxu0 %v4745_v38 }
0x1086   :  { %v2176_v56 = vpop.f32.mrb[28].mxu0 }
0x1087   :  { %v2180_v61 = vmul.f32 0.35355338, %v2176_v56  ;;  %v4401_v35 = vpop.f32.mrb[29].mxu0 }
0x1089   :  { %v2181_v36 = vadd.f32 %v2180_v61, %v4997_v9 }
0x108b   :  { %v2182_v62 = vsel %vm268_vm2, %v2181_v36, -inf }
0x108c   :  { %2183 = vmax.xlane.f32.xlu1 %v2182_v62 }
0x109d   :  { %2266 = vrot.lane.b32.xlu1 %v2086_v60, %s4749_s3 }
0x1119   :  { %v2184_v63 = vpop.xlane.xlu1 %2183 }
0x111a   :  { %v2185_v0 = vsub.f32 %v2181_v36, %v2184_v63 }
0x111c   :  { %v2186_v1 = vmul.f32 1.442695, %v2185_v0 }
0x111d   :  { %v2267_v4 = vpop.permute.xlu1 %2266 }
0x111e   :  { %4664 = vpow2.f32 %v2186_v1 }
0x1128   :  { %v4665_v2 = vpop.eup %4664 }
0x1129   :  { %v2188_v3 = vsel %vm268_vm2, %v4665_v2, 0.0 }
0x112a   :  { %2189 = vadd.xlane.f32.xlu0 %v2188_v3 }
0x1140   :  { %2268 = vrot.lane.b32.xlu0 %v5265_v54, %s5631_s26 }
0x1144   :  { %2096 = vrot.lane.b32.xlu0 %v2091_v5, %s4743_s28 }
0x1148   :  { %2082 = vrot.lane.b32.xlu0 %v2077_v11, %s4743_s28  ;;  %s5632_s28 = smov 112  }
0x11b7   :  { %v2190_v50 = vpop.xlane.xlu0 %2189 }
0x11b8   :  { %4666 = vrcp.f32 %v2190_v50 }
0x11bb   :  { %v2269_v13 = vpop.permute.xlu0 %2268 }
0x11bf   :  { %v2097_v22 = vpop.permute.xlu0 %2096 }
0x11c0   :  { %v2101_v23 = vadd.f32 %v2097_v22, %v2089_v8 }
0x11c2   :  { %v4667_v12 = vpop.eup %4666 }
0x11c3   :  { %v2192_v10 = vmul.f32 %v4667_v12, %v4665_v2  ;;  %v2083_v24 = vpop.permute.xlu0 %2082 }
0x11c4   :  { %v2087_v26 = vadd.f32 %v2083_v24, %v2075_v17 }
0x11c5   :  { %4405 = vmatmul.mubr.msk.f32.vlgmr.msra.gmra.mrb[30].mxu0 %vm268_vm2, %v2192_v10 }
0x11c6   :  { %4408 = vmatpush3.xpose.msk.msra.mxu0 %vm268_vm2, %v2269_v13  ;;  %4409 = vmatprep.mubr.msk.f32.mxu0 %vm4747_vm1, %v4745_v38 }
0x11c7   :  { %4412 = vmatprep.subr.mxu0 %v4745_v38 }
0x11c9   :  { %4410 = vmatmul.mubr.msk.f32.vlgmr.msra.gmra.mrb[32].mxu0 %vm268_vm2, %v2267_v4 }
0x11ca   :  { %4414 = vmatprep.mubr.msk.f32.mxu0 %vm4747_vm1, %v4745_v38 }
0x1298   :  { %v5301_v6 = vpop.f32.mrb[30].mxu0 }
0x1299   :  { %v4406_v14 = vpop.f32.mrb[31].mxu0 }
0x129c   :  { %v2340_v16 = vpop.f32.mrb[32].mxu0 }
0x129d   :  { %v2344_v18 = vmul.f32 0.35355338, %v2340_v16  ;;  %v4411_v19 = vpop.f32.mrb[33].mxu0 }
0x129f   :  { %v2345_v20 = vadd.f32 %v2344_v18, %v4997_v9 }
0x12a1   :  { %v2346_v21 = vsel %vm268_vm2, %v2345_v20, -inf }
0x12a2   :  { %2347 = vmax.xlane.f32.xlu1 %v2346_v21 }
0x12b3   :  { %2358 = vrot.lane.b32.xlu1 %v5274_v59, %s4749_s3 }
0x12b7   :  { %2434 = vrot.lane.b32.xlu1 %v2086_v60, %s5632_s28 }
0x12bb   :  { %2603 = vrot.lane.b32.xlu1 %v5265_v54, %s5633_s2 }
0x12bf   :  { %2601 = vrot.lane.b32.xlu1 %v2086_v60, %s5634_s17 }
0x12c3   :  { %2784 = vrot.lane.b32.xlu1 %v2101_v23, %s4744_s6 }
0x12c7   :  { %2947 = vrot.lane.b32.xlu1 %v2087_v26, %s4749_s3 }
0x12cb   :  { %3115 = vrot.lane.b32.xlu1 %v2087_v26, %s5632_s28 }
0x12cf   :  { %3282 = vrot.lane.b32.xlu1 %v2087_v26, %s5634_s17 }
0x132f   :  { %v2348_v15 = vpop.xlane.xlu1 %2347 }
0x1330   :  { %v2349_v27 = vsub.f32 %v2345_v20, %v2348_v15 }
0x1332   :  { %v2350_v28 = vmul.f32 1.442695, %v2349_v27 }
0x1333   :  { %v2359_v29 = vpop.permute.xlu1 %2358 }
0x1334   :  { %4668 = vpow2.f32 %v2350_v28  ;;  %4413 = vmatpush3.msra.mxu0 %v2359_v29 }
0x1335   :  { %4417 = vmatprep.subr.mxu0 %v4745_v38 }
0x1337   :  { %v2435_v30 = vpop.permute.xlu1 %2434 }
0x133b   :  { %v2604_v31 = vpop.permute.xlu1 %2603 }
0x133c   :  { %4428 = vmatpush3.xpose.msk.msra.mxu1 %vm268_vm2, %v2604_v31 }
0x133d   :  { %4437 = vmatprep.subr.mxu1 %v4745_v38 }
0x133e   :  { %v4669_v33 = vpop.eup %4668 }
0x133f   :  { %v2602_v34 = vpop.permute.xlu1 %2601  ;;  %v2352_v37 = vsel %vm268_vm2, %v4669_v33, 0.0 }
0x1340   :  { %2353 = vadd.xlane.f32.xlu0 %v2352_v37  ;;  %4430 = vmatmul.mubr.msk.f32.vlgmr.msra.gmra.mrb[24].mxu1 %vm268_vm2, %v2602_v34 }
0x1341   :  { %4439 = vmatprep.mubr.msk.f32.mxu1 %vm4747_vm1, %v4745_v38 }
0x1343   :  { %v2785_v39 = vpop.permute.xlu1 %2784 }
0x1344   :  { %4438 = vmatpush3.xpose.msk.msra.mxu1 %vm268_vm2, %v2785_v39 }
0x1345   :  { %4447 = vmatprep.subr.mxu1 %v4745_v38 }
0x1347   :  { %4440 = vmatmul.mubr.msk.f32.vlgmr.msra.gmra.mrb[26].mxu1 %vm268_vm2, %v2087_v26  ;;  %v2948_v44 = vpop.permute.xlu1 %2947 }
0x1348   :  { %4449 = vmatprep.mubr.msk.f32.mxu1 %vm4747_vm1, %v4745_v38 }
0x134b   :  { %v3116_v52 = vpop.permute.xlu1 %3115 }
0x134f   :  { %v3283_v53 = vpop.permute.xlu1 %3282 }
0x1356   :  { %2436 = vrot.lane.b32.xlu0 %v5265_v54, %s5635_s15 }
0x135a   :  { %2949 = vrot.lane.b32.xlu0 %v2101_v23, %s5631_s26 }
0x135e   :  { %3117 = vrot.lane.b32.xlu0 %v2101_v23, %s5635_s15 }
0x1362   :  { %3284 = vrot.lane.b32.xlu0 %v2101_v23, %s5633_s2 }
0x13cd   :  { %v2354_v40 = vpop.xlane.xlu0 %2353 }
0x13ce   :  { %4670 = vrcp.f32 %v2354_v40 }
0x13d1   :  { %v2437_v42 = vpop.permute.xlu0 %2436 }
0x13d5   :  { %v2950_v45 = vpop.permute.xlu0 %2949 }
0x13d6   :  { %4448 = vmatpush3.xpose.msk.msra.mxu1 %vm268_vm2, %v2950_v45 }
0x13d7   :  { %4457 = vmatprep.subr.mxu1 %v4745_v38 }
0x13d8   :  { %v4671_v46 = vpop.eup %4670 }
0x13d9   :  { %v2356_v48 = vmul.f32 %v4671_v46, %v4669_v33  ;;  %v3118_v55 = vpop.permute.xlu0 %3117  ;;  %4450 = vmatmul.mubr.msk.f32.vlgmr.msra.gmra.mrb[28].mxu1 %vm268_vm2, %v2948_v44 }
0x13da   :  { %4458 = vmatpush3.xpose.msk.msra.mxu1 %vm268_vm2, %v3118_v55  ;;  %4459 = vmatprep.mubr.msk.f32.mxu1 %vm4747_vm1, %v4745_v38 }
0x13db   :  { %4415 = vmatmul.mubr.msk.f32.vlgmr.msra.gmra.mrb[34].mxu0 %vm268_vm2, %v2356_v48  ;;  %4467 = vmatprep.subr.mxu1 %v4745_v38 }
0x13dc   :  { %4418 = vmatpush3.xpose.msk.msra.mxu0 %vm268_vm2, %v2437_v42  ;;  %4419 = vmatprep.mubr.msk.f32.mxu0 %vm4747_vm1, %v4745_v38 }
0x13dd   :  { %v3285_v41 = vpop.permute.xlu0 %3284  ;;  %4460 = vmatmul.mubr.msk.f32.vlgmr.msra.gmra.mrb[30].mxu1 %vm268_vm2, %v3116_v52  ;;  %4422 = vmatprep.subr.mxu0 %v4745_v38 }
0x13de   :  { %4468 = vmatpush3.xpose.msk.msra.mxu1 %vm268_vm2, %v3285_v41  ;;  %4469 = vmatprep.mubr.msk.f32.mxu1 %vm4747_vm1, %v4745_v38 }
0x13df   :  { %4420 = vmatmul.mubr.msk.f32.vlgmr.msra.gmra.mrb[36].mxu0 %vm268_vm2, %v2435_v30  ;;  %4477 = vmatprep.subr.bf16.mxu1 %v4745_v38 }
0x13e0   :  { %4424 = vmatprep.mubr.msk.f32.mxu0 %vm4747_vm1, %v4745_v38 }
0x13e1   :  { %4470 = vmatmul.mubr.msk.f32.vlgmr.msra.gmra.mrb[32].mxu1 %vm268_vm2, %v3283_v53 }
0x13e2   :  { %4481 = vmatprep.mubr.msk.bf16.mxu1 %vm4747_vm1, %v4745_v38 }
0x1413   :  { %v2675_v54 = vpop.f32.mrb[24].mxu1 }
0x1414   :  { %v2679_v43 = vmul.f32 0.35355338, %v2675_v54  ;;  %v4431_v47 = vpop.f32.mrb[25].mxu1 }
0x1416   :  { %v2680_v57 = vadd.f32 %v2679_v43, %v4997_v9 }
0x1418   :  { %v2681_v58 = vsel %vm268_vm2, %v2680_v57, -inf }
0x1419   :  { %2682 = vmax.xlane.f32.xlu1 %v2681_v58 }
0x141a   :  { %v2857_v60 = vpop.f32.mrb[26].mxu1 }
0x141b   :  { %v4441_v56 = vpop.f32.mrb[27].mxu1  ;;  %v2861_v11 = vmul.f32 0.35355338, %v2857_v60 }
0x141d   :  { %v2862_v20 = vadd.f32 %v2861_v11, %v5066_v7 }
0x141f   :  { %v2863_v23 = vsel %vm268_vm2, %v2862_v20, -inf }
0x14a6   :  { %v2683_v61 = vpop.xlane.xlu1 %2682 }
0x14a7   :  { %v2684_v35 = vsub.f32 %v2680_v57, %v2683_v61 }
0x14a9   :  { %v2685_v36 = vmul.f32 1.442695, %v2684_v35 }
0x14ab   :  { %4672 = vpow2.f32 %v2685_v36 }
0x14ac   :  { %v3021_v62 = vpop.f32.mrb[28].mxu1 }
0x14ad   :  { %v4451_v63 = vpop.f32.mrb[29].mxu1  ;;  %v3025_v16 = vmul.f32 0.35355338, %v3021_v62 }
0x14ae   :  { %v5363_v0 = vpop.f32.mrb[34].mxu0 }
0x14af   :  { %v4416_v1 = vpop.f32.mrb[35].mxu0  ;;  %v3026_v24 = vadd.f32 %v3025_v16, %v5066_v7 }
0x14b0   :  { %v3189_v2 = vpop.f32.mrb[30].mxu1 }
0x14b1   :  { %v4461_v3 = vpop.f32.mrb[31].mxu1  ;;  %v3193_v8 = vmul.f32 0.35355338, %v3189_v2  ;;  %v3027_v25 = vsel %vm268_vm2, %v3026_v24, -inf }
0x14b2   :  { %v2508_v5 = vpop.f32.mrb[36].mxu0 }
0x14b3   :  { %v2512_v50 = vmul.f32 0.35355338, %v2508_v5  ;;  %v4421_v12 = vpop.f32.mrb[37].mxu0  ;;  %v3194_v17 = vadd.f32 %v3193_v8, %v5066_v7  ;;  %v4600_v8 = vld [vmem:[%s5627_s27 + $0x10] sm:$0xff]  }
0x14b4   :  { %v3356_v10 = vpop.f32.mrb[32].mxu1  ;;  %4478 = vmatpush3.bf16.msra.mxu1 %v4600_v8 }
0x14b5   :  { %v3360_v13 = vmul.f32 0.35355338, %v3356_v10  ;;  %v4471_v4 = vpop.f32.mrb[33].mxu1  ;;  %v2513_v14 = vadd.f32 %v2512_v50, %v4997_v9  ;;  %v5370_v22 = vpop.eup %4672  ;;  %v3195_v26 = vsel %vm268_vm2, %v3194_v17, -inf  ;;  %4479 = vmatprep.subr.bf16.mxu1 %v4745_v38 }
0x14b6   :  { %v2687_v9 = vsel %vm268_vm2, %v5370_v22, 0.0 }
0x14b7   :  { %v2514_v18 = vsel %vm268_vm2, %v2513_v14, -inf  ;;  %v3361_v19 = vadd.f32 %v3360_v13, %v5066_v7 }
0x14b8   :  { %2515 = vmax.xlane.f32.xlu0 %v2514_v18 }
0x14b9   :  { %v3362_v21 = vsel %vm268_vm2, %v3361_v19, -inf }
0x14ba   :  { %3363 = vmax.xlane.f32.xlu1 %v3362_v21 }
0x14bc   :  { %2864 = vmax.xlane.f32.xlu0 %v2863_v23 }
0x14be   :  { %2688 = vadd.xlane.f32.xlu1 %v2687_v9  ;;  %v4601_v9 = vld [vmem:[%s5627_s27 + $0x18] sm:$0xff]  }
0x14bf   :  { %4480 = vmatpush3.bf16.msra.mxu1 %v4601_v9  ;;  %v4131_v9 = vld [vmem:[%s5630_s5 + $0x1] ss:$0 sm:$0xff] }
0x14c0   :  { %3028 = vmax.xlane.f32.xlu0 %v3027_v25  ;;  %4493 = vmatprep.subr.bf16.mxu1 %v4745_v38 }
0x14c4   :  { %3196 = vmax.xlane.f32.xlu0 %v3195_v26 }
0x1545   :  { %v2516_v15 = vpop.xlane.xlu0 %2515 }
0x1546   :  { %v2517_v37 = vsub.f32 %v2513_v14, %v2516_v15 }
0x1547   :  { %v3364_v27 = vpop.xlane.xlu1 %3363 }
0x1548   :  { %v3365_v30 = vsub.f32 %v3361_v19, %v3364_v27  ;;  %v2518_v7 = vmul.f32 1.442695, %v2517_v37 }
0x1549   :  { %v2865_v28 = vpop.xlane.xlu0 %2864 }
0x154a   :  { %v2866_v29 = vsub.f32 %v2862_v20, %v2865_v28  ;;  %v3366_v39 = vmul.f32 1.442695, %v3365_v30 }
0x154b   :  { %v2689_v56 = vpop.xlane.xlu1 %2688 }
0x154c   :  { %v2867_v31 = vmul.f32 1.442695, %v2866_v29 }
0x154d   :  { %v3029_v33 = vpop.xlane.xlu0 %3028 }
0x154e   :  { %4674 = vpow2.f32 %v2867_v31  ;;  %v3030_v34 = vsub.f32 %v3026_v24, %v3029_v33 }
0x1550   :  { %v3031_v40 = vmul.f32 1.442695, %v3030_v34 }
0x1551   :  { %v3197_v42 = vpop.xlane.xlu0 %3196 }
0x1552   :  { %4676 = vpow2.f32 %v3031_v40  ;;  %v3198_v44 = vsub.f32 %v3194_v17, %v3197_v42 }
0x1553   :  { %4678 = vpow2.f32 %v3366_v39 }
0x1554   :  { %v3199_v45 = vmul.f32 1.442695, %v3198_v44 }
0x1556   :  { %4680 = vpow2.f32 %v3199_v45 }
0x1557   :  { %4682 = vpow2.f32 %v2518_v7 }
0x1558   :  { %v4675_v46 = vpop.eup %4674 }
0x1559   :  { %v2869_v48 = vsel %vm268_vm2, %v4675_v46, 0.0 }
0x155a   :  { %2870 = vadd.xlane.f32.xlu0 %v2869_v48 }
0x155c   :  { %v4677_v55 = vpop.eup %4676 }
0x155d   :  { %v3033_v52 = vsel %vm268_vm2, %v4677_v55, 0.0  ;;  %v5381_v41 = vpop.eup %4678 }
0x155e   :  { %3034 = vadd.xlane.f32.xlu1 %v3033_v52  ;;  %v3368_v43 = vsel %vm268_vm2, %v5381_v41, 0.0 }
0x1560   :  { %v4681_v53 = vpop.eup %4680 }
0x1561   :  { %v3201_v54 = vsel %vm268_vm2, %v4681_v53, 0.0  ;;  %v4683_v47 = vpop.eup %4682 }
0x1562   :  { %3202 = vadd.xlane.f32.xlu0 %v3201_v54  ;;  %3369 = vadd.xlane.f32.xlu1 %v3368_v43  ;;  %v2520_v57 = vsel %vm268_vm2, %v4683_v47, 0.0 }
0x1566   :  { %2521 = vadd.xlane.f32.xlu0 %v2520_v57 }
0x1573   :  { %2692 = vrot.lane.b32.xlu1 %v5274_v59, %s5634_s17 }
0x1577   :  { %3039 = vrot.lane.b32.xlu1 %v5259_v49, %s4749_s3 }
0x157b   :  { %3206 = vrot.lane.b32.xlu1 %v5259_v49, %s5632_s28 }
0x157c   :  { %2525 = vrot.lane.b32.xlu0 %v5274_v59, %s5632_s28 }
0x1580   :  { %3373 = vrot.lane.b32.xlu0 %v5259_v49, %s5634_s17 }
0x15e7   :  { %v2871_v58 = vpop.xlane.xlu0 %2870 }
0x15eb   :  { %v3035_v35 = vpop.xlane.xlu1 %3034 }
0x15ef   :  { %v3203_v60 = vpop.xlane.xlu0 %3202  ;;  %v3370_v62 = vpop.xlane.xlu1 %3369 }
0x15f3   :  { %v2522_v61 = vpop.xlane.xlu0 %2521  ;;  %v2693_v2 = vpop.permute.xlu1 %2692 }
0x15f4   :  { %4684 = vrcp.f32 %v2522_v61 }
0x15f5   :  { %4686 = vrcp.f32 %v2689_v56 }
0x15f6   :  { %4688 = vrcp.f32 %v2871_v58 }
0x15f7   :  { %v2526_v36 = vpop.permute.xlu0 %2525  ;;  %4690 = vrcp.f32 %v3035_v35  ;;  %v3040_v50 = vpop.permute.xlu1 %3039 }
0x15f8   :  { %4423 = vmatpush3.msra.mxu0 %v2526_v36  ;;  %4692 = vrcp.f32 %v3203_v60 }
0x15f9   :  { %4432 = vmatprep.subr.mxu0 %v4745_v38  ;;  %4694 = vrcp.f32 %v3370_v62 }
0x15fb   :  { %v3207_v4 = vpop.permute.xlu1 %3206  ;;  %v3374_v16 = vpop.permute.xlu0 %3373 }
0x15fe   :  { %v4685_v63 = vpop.eup %4684 }
0x15ff   :  { %v2524_v1 = vmul.f32 %v4685_v63, %v4683_v47  ;;  %v4687_v59 = vpop.eup %4686 }
0x1600   :  { %v2691_v3 = vmul.f32 %v4687_v59, %v5370_v22  ;;  %v4689_v5 = vpop.eup %4688 }
0x1601   :  { %4425 = vmatmul.mubr.msk.f32.vlgmr.msra.gmra.mrb[38].mxu0 %vm268_vm2, %v2524_v1  ;;  %v2873_v11 = vmul.f32 %v4689_v5, %v4675_v46  ;;  %v4691_v12 = vpop.eup %4690 }
0x1602   :  { %4433 = vmatpush3.msra.mxu0 %v2693_v2  ;;  %4434 = vmatprep.mubr.msk.f32.mxu0 %vm4747_vm1, %v4745_v38  ;;  %v3037_v10 = vmul.f32 %v4691_v12, %v4677_v55  ;;  %v4693_v13 = vpop.eup %4692  ;;  %v4603_v12 = vld [vmem:[%s5576_s9 + $0x18] sm:$0xff]  }
0x1603   :  { %4442 = vmatprep.subr.mxu0 %v4745_v38  ;;  %v4695_v14 = vpop.eup %4694 }
0x1604   :  { %v3372_v18 = vmul.f32 %v4695_v14, %v5381_v41 }
0x1605   :  { %4435 = vmatmul.mubr.msk.f32.vlgmr.msra.gmra.mrb[40].mxu0 %vm268_vm2, %v2691_v3 }
0x1606   :  { %4443 = vmatpush3.msra.mxu0 %v5259_v49  ;;  %4444 = vmatprep.mubr.msk.f32.mxu0 %vm4747_vm1, %v4745_v38  ;;  %v3205_v49 = vmul.f32 %v4693_v13, %v4681_v53  ;;  %v4605_v13 = vld [vmem:[%s5578_s11 + $0x48] sm:$0xff]  }
0x1607   :  { %4452 = vmatprep.subr.mxu0 %v4745_v38 }
0x1609   :  { %4445 = vmatmul.mubr.msk.f32.vlgmr.msra.gmra.mrb[42].mxu0 %vm268_vm2, %v2873_v11 }
0x160a   :  { %4453 = vmatpush3.msra.mxu0 %v3040_v50  ;;  %4454 = vmatprep.mubr.msk.f32.mxu0 %vm4747_vm1, %v4745_v38 }
0x160b   :  { %4462 = vmatprep.subr.mxu0 %v4745_v38 }
0x160d   :  { %4455 = vmatmul.mubr.msk.f32.vlgmr.msra.gmra.mrb[44].mxu0 %vm268_vm2, %v3037_v10  ;;  %v4604_v10 = vld [vmem:[%s5578_s11 + $0x40] sm:$0xff]  }
0x160e   :  { %4463 = vmatpush3.msra.mxu0 %v3207_v4  ;;  %4464 = vmatprep.mubr.msk.f32.mxu0 %vm4747_vm1, %v4745_v38 }
0x160f   :  { %4472 = vmatprep.subr.mxu0 %v4745_v38 }
0x1611   :  { %4465 = vmatmul.mubr.msk.f32.vlgmr.msra.gmra.mrb[46].mxu0 %vm268_vm2, %v3205_v49 }
0x1612   :  { %4473 = vmatpush3.msra.mxu0 %v3374_v16  ;;  %4474 = vmatprep.mubr.msk.f32.mxu0 %vm4747_vm1, %v4745_v38 }
0x1613   :  { %4485 = vmatprep.subr.bf16.mxu0 %v4745_v38 }
0x1615   :  { %4475 = vmatmul.mubr.msk.f32.vlgmr.msra.gmra.mrb[48].mxu0 %vm268_vm2, %v3372_v18 }
0x1616   :  { %4489 = vmatprep.mubr.msk.bf16.mxu0 %vm4747_vm1, %v4745_v38 }
0x16d4   :  { %v2597_v19 = vpop.f32.mrb[38].mxu0 }
0x16d5   :  { %v4426_v20 = vpop.f32.mrb[39].mxu0 }
0x16d8   :  { %v2764_v21 = vpop.f32.mrb[40].mxu0 }
0x16d9   :  { %v4436_v22 = vpop.f32.mrb[41].mxu0 }
0x16da   :  { %v4130_v22 = vld [vmem:[%s5629_s7 + $0x1] ss:$0 sm:$0xff] }
0x16dc   :  { %v2943_v23 = vpop.f32.mrb[42].mxu0 }
0x16dd   :  { %v4446_v24 = vpop.f32.mrb[43].mxu0 }
0x16e0   :  { %v3111_v25 = vpop.f32.mrb[44].mxu0 }
0x16e1   :  { %v4561_v17 = vpack.i.bf16 %v3111_v25, %v5363_v0  ;;  %v4456_v26 = vpop.f32.mrb[45].mxu0 }
0x16e3   :  { %4562 = vrot.lane.b32.xlu1 %v4561_v17, %s5636_s8 }
0x16e4   :  { %v3278_v15 = vpop.f32.mrb[46].mxu0 }
0x16e5   :  { %v4566_v27 = vpack.i.bf16 %v3278_v15, %v2597_v19  ;;  %v4466_v28 = vpop.f32.mrb[47].mxu0 }
0x16e6   :  { %v4607_v28 = vld [vmem:[%s5578_s11 + $0x58] sm:$0xff]  }
0x16e7   :  { %4567 = vrot.lane.b32.xlu0 %v4566_v27, %s5637_s1  ;;  %v4606_v27 = vld [vmem:[%s5578_s11 + $0x50] sm:$0xff]  }
0x16e8   :  { %v3445_v29 = vpop.f32.mrb[48].mxu0 }
0x16e9   :  { %v4571_v30 = vpack.i.bf16 %v3445_v29, %v2764_v21  ;;  %v4476_v31 = vpop.f32.mrb[49].mxu0  ;;  %v4608_v29 = vld [vmem:[%s5578_s11 + $0x60] sm:$0xff]  }
0x16ea   :  { %v4610_v31 = vld [vmem:[%s5578_s11 + $0x70] sm:$0xff]  }
0x16eb   :  { %4572 = vrot.lane.b32.xlu1 %v4571_v30, %s5638_s4  ;;  %v4609_v30 = vld [vmem:[%s5578_s11 + $0x68] sm:$0xff]  }
0x1755   :  { %v4563_v33 = vpop.permute.xlu1 %4562 }
0x1756   :  { %v4565_v37 = vunpack.i.h.bf16 %v4563_v33  ;;  %v4564_v0 = vunpack.i.l.bf16 %v4563_v33  ;;  %v4611_v33 = vld [vmem:[%s5578_s11 + $0x78] sm:$0xff]  }
0x1758   :  { %v3461_v44 = vsel %vm268_vm2, %v2943_v23, %v4565_v37  ;;  %v2780_v7 = vsel %vm268_vm2, %v5301_v6, %v4564_v0  ;;  %v4124_v6 = vld [vmem:[%s5628_s29 + $0x1] ss:$0 sm:$0xff] }
0x1759   :  { %v4568_v34 = vpop.permute.xlu0 %4567 }
0x175a   :  { %v4570_v39 = vunpack.i.h.bf16 %v4568_v34  ;;  %v4569_v40 = vunpack.i.l.bf16 %v4568_v34  ;;  %v4137_v34 = vld [vmem:[%s5577_s10 + $0x1] ss:$0 sm:$0xff] }
0x175c   :  { %v2781_v48 = vsel %vm949_vm3, %v2780_v7, %v4569_v40  ;;  %v3462_v55 = vsel %vm949_vm3, %v3461_v44, %v4570_v39 }
0x175d   :  { %v4573_v42 = vpop.permute.xlu1 %4572 }
0x175e   :  { %v4575_v45 = vunpack.i.h.bf16 %v4573_v42  ;;  %v4574_v46 = vunpack.i.l.bf16 %v4573_v42 }
0x1760   :  { %v2782_v52 = vsel %vm951_vm4, %v2781_v48, %v4574_v46  ;;  %v3463_v41 = vsel %vm951_vm4, %v3462_v55, %v4575_v45 }
0x1761   :  { %v3464_v53 = vpack.c.bf16 %v3463_v41, %v2782_v52 }
0x1763   :  { %4482 = vmatmul.mubr.msk.bf16.vlgmr.msra.gmra.mrb[36].mxu1 %vm83_vm0, %v3464_v53 }
0x1764   :  { %4509 = vmatprep.mubr.msk.bf16.mxu1 %vm4747_vm1, %v4745_v38  ;;  %4494 = vmatpush3.bf16.msra.mxu1 %v4604_v10 }
0x1765   :  { %4495 = vmatprep.subr.bf16.mxu1 %v4745_v38 }
0x1768   :  { %4496 = vmatpush3.bf16.msra.mxu1 %v4605_v13  ;;  %v4612_v13 = vld [vmem:[%s5585_s18] sm:$0xff]  }
0x1769   :  { %4497 = vmatprep.subr.bf16.mxu1 %v4745_v38 }
0x176c   :  { %4498 = vmatpush3.bf16.msra.mxu1 %v4606_v27 }
0x176d   :  { %4499 = vmatprep.subr.bf16.mxu1 %v4745_v38 }
0x1770   :  { %4500 = vmatpush3.bf16.msra.mxu1 %v4607_v28  ;;  %v4171_v28 = vld [vmem:[%s5586_s19] ss:$0 sm:$0xff] }
0x1771   :  { %4501 = vmatprep.subr.bf16.mxu1 %v4745_v38 }
0x1774   :  { %4502 = vmatpush3.bf16.msra.mxu1 %v4608_v29 }
0x1775   :  { %4503 = vmatprep.subr.bf16.mxu1 %v4745_v38 }
0x1778   :  { %4504 = vmatpush3.bf16.msra.mxu1 %v4609_v30 }
0x1779   :  { %4505 = vmatprep.subr.bf16.mxu1 %v4745_v38 }
0x177c   :  { %4506 = vmatpush3.bf16.msra.mxu1 %v4610_v31 }
0x177d   :  { %4507 = vmatprep.subr.bf16.mxu1 %v4745_v38 }
0x1780   :  { %4508 = vmatpush3.bf16.msra.mxu1 %v4611_v33 }
0x1836   :  { %v3527_v54 = vpop.f32.mrb[36].mxu1 }
0x1837   :  { %v3528_v43 = vadd.f32 %v4124_v6, %v3527_v54  ;;  %v4483_v47 = vpop.f32.mrb[37].mxu1 }
0x1838   :  { %v3530_v57 = vpop.f32.mrb[38].mxu1  ;;  %v4158_v47 = vld [vmem:[%s5579_s12 + $0x1] ss:$0 sm:$0xff] }
0x1839   :  { %v3534_v58 = vadd.f32 %v3528_v43, %v5242_v32  ;;  %v3531_v60 = vadd.f32 %v4124_v6, %v3530_v57  ;;  %v4484_v56 = vpop.f32.mrb[39].mxu1 }
0x183b   :  { %v3535_v61 = vadd.f32 %v3531_v60, %v5244_v51  ;;  %v3540_v35 = vsel %vm83_vm0, %v3534_v58, 0.0  ;;  %v4602_v51 = vld [vmem:[%s5576_s9 + $0x10] sm:$0xff]  }
0x183c   :  { %3541 = vadd.xlane.f32.xlu0 %v3540_v35  ;;  %4486 = vmatpush3.bf16.msra.mxu0 %v4602_v51 }
0x183d   :  { %v3543_v36 = vsel %vm83_vm0, %v3535_v61, 0.0  ;;  %4487 = vmatprep.subr.bf16.mxu0 %v4745_v38 }
0x183e   :  { %3544 = vadd.xlane.f32.xlu1 %v3543_v36 }
0x1840   :  { %4488 = vmatpush3.bf16.msra.mxu0 %v4603_v12 }
0x1841   :  { %4513 = vmatprep.subr.bf16.mxu0 %v4745_v38 }
0x18c9   :  { %v3542_v62 = vpop.xlane.xlu0 %3541 }
0x18ca   :  { %v3546_v63 = vmul.f32 0.03125, %v3542_v62 }
0x18cb   :  { %v3545_v1 = vpop.xlane.xlu1 %3544 }
0x18cc   :  { %v3548_v59 = vsub.f32 %v3534_v58, %v3546_v63  ;;  %v3547_v2 = vmul.f32 0.03125, %v3545_v1 }
0x18ce   :  { %v3549_v3 = vsub.f32 %v3535_v61, %v3547_v2  ;;  %v3550_v5 = vmul.f32 %v3548_v59, %v3548_v59 }
0x18d0   :  { %v3552_v11 = vsel %vm83_vm0, %v3550_v5, 0.0  ;;  %v3551_v32 = vmul.f32 %v3549_v3, %v3549_v3 }
0x18d1   :  { %3553 = vadd.xlane.f32.xlu0 %v3552_v11 }
0x18d2   :  { %v3555_v50 = vsel %vm83_vm0, %v3551_v32, 0.0 }
0x18d5   :  { %3556 = vadd.xlane.f32.xlu0 %v3555_v50 }
0x195e   :  { %v3554_v4 = vpop.xlane.xlu0 %3553 }
0x195f   :  { %v3558_v49 = vmul.f32 0.03125, %v3554_v4  ;;  %v4613_v4 = vld [vmem:[%s5585_s18 + $0x8] sm:$0xff]  }
0x1961   :  { %v3560_v14 = vadd.f32 1e-12, %v3558_v49 }
0x1962   :  { %v3557_v16 = vpop.xlane.xlu0 %3556 }
0x1963   :  { %4696 = vrsqrt.f32 %v3560_v14  ;;  %v3559_v18 = vmul.f32 0.03125, %v3557_v16 }
0x1965   :  { %v3561_v19 = vadd.f32 1e-12, %v3559_v18 }
0x1967   :  { %4698 = vrsqrt.f32 %v3561_v19 }
0x196d   :  { %v4697_v20 = vpop.eup %4696 }
0x196e   :  { %v3564_v21 = vmul.f32 %v4697_v20, %v3548_v59 }
0x1970   :  { %v3572_v23 = vmul.f32 %v4130_v22, %v3564_v21 }
0x1971   :  { %v4699_v8 = vpop.eup %4698 }
0x1972   :  { %v3565_v24 = vmul.f32 %v4699_v8, %v3549_v3  ;;  %v3580_v17 = vadd.f32 %v4131_v9, %v3572_v23 }
0x1974   :  { %v3573_v25 = vmul.f32 %v4130_v22, %v3565_v24  ;;  %v4169_v22 = vld [vmem:[%s5580_s13 + $0x1] ss:$0 sm:$0xff] }
0x1976   :  { %v3581_v26 = vadd.f32 %v4131_v9, %v3573_v25  ;;  %v4170_v25 = vld [vmem:[%s5581_s14 + $0x1] ss:$0 sm:$0xff] }
0x1978   :  { %v3582_v15 = vpack.c.bf16 %v3581_v26, %v3580_v17 }
0x197a   :  { %4490 = vmatmul.mubr.msk.bf16.vlgmr.msra.gmra.mrb[52].mxu0 %vm83_vm0, %v3582_v15 }
0x197b   :  { %4517 = vmatprep.mubr.msk.bf16.mxu0 %vm4747_vm1, %v4745_v38  ;;  %4514 = vmatpush3.bf16.msra.mxu0 %v4612_v13 }
0x197c   :  { %4515 = vmatprep.subr.bf16.mxu0 %v4745_v38 }
0x197f   :  { %4516 = vmatpush3.bf16.msra.mxu0 %v4613_v4 }
0x1980   :  { %4521 = vmatprep.subr.bf16.mxu0 %v4745_v38 }
0x1a4d   :  { %v3645_v37 = vpop.f32.mrb[52].mxu0 }
0x1a4e   :  { %v3646_v0 = vadd.f32 %v4137_v34, %v3645_v37  ;;  %v4491_v39 = vpop.f32.mrb[53].mxu0 }
0x1a4f   :  { %v3648_v40 = vpop.f32.mrb[54].mxu0 }
0x1a50   :  { %v3654_v42 = vmul.f32 0.70710677, %v3646_v0  ;;  %v3649_v44 = vadd.f32 %v4137_v34, %v3648_v40  ;;  %v4492_v7 = vpop.f32.mrb[55].mxu0  ;;  %v3652_v52 = vmul.f32 0.5, %v3646_v0 }
0x1a52   :  { %4700 = verf.f32 %v3654_v42  ;;  %v3655_v45 = vmul.f32 0.70710677, %v3649_v44  ;;  %v3653_v41 = vmul.f32 0.5, %v3649_v44 }
0x1a54   :  { %4702 = verf.f32 %v3655_v45 }
0x1a5c   :  { %v4701_v46 = vpop.eup %4700 }
0x1a5d   :  { %v3658_v48 = vadd.f32 1.0, %v4701_v46 }
0x1a5e   :  { %v4703_v55 = vpop.eup %4702 }
0x1a5f   :  { %v3659_v53 = vadd.f32 1.0, %v4703_v55  ;;  %v3660_v6 = vmul.f32 %v3658_v48, %v3652_v52 }
0x1a61   :  { %v3661_v54 = vmul.f32 %v3659_v53, %v3653_v41 }
0x1a63   :  { %v3662_v43 = vpack.c.bf16 %v3661_v54, %v3660_v6 }
0x1a65   :  { %4510 = vmatmul.mubr.bf16.vlgmr.msra.gmra.mrb[40].mxu1 %v3662_v43 }
0x1b38   :  { %v3770_v57 = vpop.f32.mrb[40].mxu1 }
0x1b39   :  { %v3771_v58 = vadd.f32 %v4158_v47, %v3770_v57  ;;  %v4511_v60 = vpop.f32.mrb[41].mxu1 }
0x1b3a   :  { %v3773_v56 = vpop.f32.mrb[42].mxu1 }
0x1b3b   :  { %v3777_v61 = vadd.f32 %v3771_v58, %v3580_v17  ;;  %v3774_v35 = vadd.f32 %v4158_v47, %v3773_v56  ;;  %v4512_v36 = vpop.f32.mrb[43].mxu1 }
0x1b3c   :  { %v4615_v36 = vld [vmem:[%s5589_s22 + $0x8] sm:$0xff]  }
0x1b3d   :  { %v3778_v62 = vadd.f32 %v3774_v35, %v3581_v26  ;;  %v3783_v63 = vsel %vm83_vm0, %v3777_v61, 0.0  ;;  %v4614_v35 = vld [vmem:[%s5589_s22] sm:$0xff]  }
0x1b3e   :  { %3784 = vadd.xlane.f32.xlu0 %v3783_v63 }
0x1b3f   :  { %v3786_v1 = vsel %vm83_vm0, %v3778_v62, 0.0 }
0x1b40   :  { %3787 = vadd.xlane.f32.xlu1 %v3786_v1 }
0x1bcb   :  { %v3785_v59 = vpop.xlane.xlu0 %3784 }
0x1bcc   :  { %v3789_v2 = vmul.f32 0.03125, %v3785_v59 }
0x1bcd   :  { %v3788_v3 = vpop.xlane.xlu1 %3787 }
0x1bce   :  { %v3791_v5 = vsub.f32 %v3777_v61, %v3789_v2  ;;  %v3790_v11 = vmul.f32 0.03125, %v3788_v3 }
0x1bd0   :  { %v3792_v32 = vsub.f32 %v3778_v62, %v3790_v11  ;;  %v3793_v50 = vmul.f32 %v3791_v5, %v3791_v5  ;;  %v4175_v11 = vld [vmem:[%s5587_s20] ss:$0 sm:$0xff]  ;;  %s4757_s20 = smov [#allocation2]  }
0x1bd1   :  { %s4022_s16 = sshll.u32 %s4757_s20, 4  ;;  %s4023_s16 = int_to_ptr.vmem [resolvable:$true] %s4022_s16 }
0x1bd2   :  { %v3795_v51 = vsel %vm83_vm0, %v3793_v50, 0.0  ;;  %v3794_v12 = vmul.f32 %v3792_v32, %v3792_v32  ;;  %p4723_p1 = scmp.lt.s32.totalorder %s4023_s16, %s4023_s16 }
0x1bd3   :  { %3796 = vadd.xlane.f32.xlu0 %v3795_v51 }
0x1bd4   :  { %v3798_v10 = vsel %vm83_vm0, %v3794_v12, 0.0 }
0x1bd5   :  { %3799 = vadd.xlane.f32.xlu1 %v3798_v10 }
0x1c60   :  { %v3797_v49 = vpop.xlane.xlu0 %3796 }
0x1c61   :  { %v3801_v14 = vmul.f32 0.03125, %v3797_v49 }
0x1c62   :  { %v3800_v16 = vpop.xlane.xlu1 %3799 }
0x1c63   :  { %v3803_v18 = vadd.f32 1e-12, %v3801_v14  ;;  %v3802_v19 = vmul.f32 0.03125, %v3800_v16  ;;  %v4177_v14 = vld [vmem:[%s5590_s23] ss:$0 sm:$0xff] }
0x1c65   :  { %4704 = vrsqrt.f32 %v3803_v18  ;;  %v3804_v20 = vadd.f32 1e-12, %v3802_v19 }
0x1c67   :  { %4706 = vrsqrt.f32 %v3804_v20 }
0x1c6f   :  { %v4705_v21 = vpop.eup %4704 }
0x1c70   :  { %v3807_v8 = vmul.f32 %v4705_v21, %v3791_v5 }
0x1c71   :  { %v4707_v23 = vpop.eup %4706 }
0x1c72   :  { %v3815_v24 = vmul.f32 %v4169_v22, %v3807_v8  ;;  %v3808_v9 = vmul.f32 %v4707_v23, %v3792_v32 }
0x1c74   :  { %v3816_v17 = vmul.f32 %v4169_v22, %v3808_v9  ;;  %v3823_v26 = vadd.f32 %v4170_v25, %v3815_v24 }
0x1c76   :  { %v3824_v15 = vadd.f32 %v4170_v25, %v3816_v17 }
0x1c78   :  { %v3825_v27 = vpack.c.bf16 %v3824_v15, %v3823_v26 }
0x1c7a   :  { %4518 = vmatmul.mubr.msk.bf16.vlgmr.msra.gmra.mrb[56].mxu0 %vm83_vm0, %v3825_v27 }
0x1c7b   :  { %4525 = vmatprep.mubr.msk.bf16.mxu0 %vm4747_vm1, %v4745_v38  ;;  %4522 = vmatpush3.bf16.msra.mxu0 %v4614_v35 }
0x1c7c   :  { %4523 = vmatprep.subr.bf16.mxu0 %v4745_v38  ;;  %v4176_v38 = vld [vmem:[%s5588_s21] ss:$0 sm:$0xff]  ;;  %s4718_s21 = scalar_lea.vmem %s4023_s16, 256 }
0x1c7d   :  { %p4719_p0 = scmp.ne.s32.totalorder %s4023_s16, %s4718_s21  ;;  %p4724_p2 = scmp.lt.s32.totalorder %s4718_s21, %s4718_s21 }
0x1c7f   :  { %4524 = vmatpush3.bf16.msra.mxu0 %v4615_v36  ;;  %p4725_p3 = por %p4724_p2, %p4723_p1 }
0x1c81   :  { %p4726_p4 = pnand %p4725_p3, %p4719_p0 }
0x1d4d   :  { %v3886_v29 = vpop.f32.mrb[56].mxu0 }
0x1d4e   :  { %v3887_v30 = vadd.f32 %v4171_v28, %v3886_v29  ;;  %v4519_v31 = vpop.f32.mrb[57].mxu0 }
0x1d4f   :  { %v3889_v33 = vpop.f32.mrb[58].mxu0 }
0x1d50   :  { %v3895_v34 = vmul.f32 0.70710677, %v3887_v30  ;;  %v3890_v37 = vadd.f32 %v4171_v28, %v3889_v33  ;;  %v4520_v0 = vpop.f32.mrb[59].mxu0  ;;  %v3893_v42 = vmul.f32 0.5, %v3887_v30 }
0x1d52   :  { %4708 = verf.f32 %v3895_v34  ;;  %v3896_v39 = vmul.f32 0.70710677, %v3890_v37  ;;  %v3894_v45 = vmul.f32 0.5, %v3890_v37 }
0x1d54   :  { %4710 = verf.f32 %v3896_v39 }
0x1d5c   :  { %v4709_v40 = vpop.eup %4708 }
0x1d5d   :  { %v3899_v44 = vadd.f32 1.0, %v4709_v40 }
0x1d5e   :  { %v4711_v7 = vpop.eup %4710 }
0x1d5f   :  { %v3901_v46 = vmul.f32 %v3899_v44, %v3893_v42  ;;  %v3900_v48 = vadd.f32 1.0, %v4711_v7 }
0x1d61   :  { %v3905_v55 = vsel %vm83_vm0, %v3901_v46, 0.0  ;;  %v3902_v52 = vmul.f32 %v3900_v48, %v3894_v45 }
0x1d62   :  { %3906 = vadd.xlane.f32.xlu0 %v3905_v55 }
0x1d63   :  { %v3908_v41 = vsel %vm83_vm0, %v3902_v52, 0.0 }
0x1d64   :  { %3909 = vadd.xlane.f32.xlu1 %v3908_v41 }
0x1def   :  { %v3907_v53 = vpop.xlane.xlu0 %3906 }
0x1df0   :  { %v3911_v6 = vmul.f32 0.03125, %v3907_v53 }
0x1df1   :  { %v3910_v54 = vpop.xlane.xlu1 %3909 }
0x1df2   :  { %v3913_v43 = vsub.f32 %v3901_v46, %v3911_v6  ;;  %v3912_v47 = vmul.f32 0.03125, %v3910_v54 }
0x1df4   :  { %v3914_v57 = vsub.f32 %v3902_v52, %v3912_v47  ;;  %v3915_v58 = vmul.f32 %v3913_v43, %v3913_v43 }
0x1df6   :  { %v3917_v60 = vsel %vm83_vm0, %v3915_v58, 0.0  ;;  %v3916_v56 = vmul.f32 %v3914_v57, %v3914_v57 }
0x1df7   :  { %3918 = vadd.xlane.f32.xlu0 %v3917_v60 }
0x1df8   :  { %v3920_v61 = vsel %vm83_vm0, %v3916_v56, 0.0 }
0x1df9   :  { %3921 = vadd.xlane.f32.xlu1 %v3920_v61 }
0x1e84   :  { %v3919_v62 = vpop.xlane.xlu0 %3918 }
0x1e85   :  { %v3923_v63 = vmul.f32 0.03125, %v3919_v62 }
0x1e86   :  { %v3922_v1 = vpop.xlane.xlu1 %3921 }
0x1e87   :  { %v3925_v59 = vadd.f32 1e-12, %v3923_v63  ;;  %v3924_v2 = vmul.f32 0.03125, %v3922_v1 }
0x1e89   :  { %4712 = vrsqrt.f32 %v3925_v59  ;;  %v3926_v3 = vadd.f32 1e-12, %v3924_v2 }
0x1e8b   :  { %4714 = vrsqrt.f32 %v3926_v3 }
0x1e93   :  { %v4713_v5 = vpop.eup %4712 }
0x1e94   :  { %v3929_v32 = vmul.f32 %v4713_v5, %v3913_v43 }
0x1e95   :  { %v4715_v50 = vpop.eup %4714 }
0x1e96   :  { %v3937_v51 = vmul.f32 %v4175_v11, %v3929_v32  ;;  %v3930_v12 = vmul.f32 %v4715_v50, %v3914_v57 }
0x1e98   :  { %v3938_v10 = vmul.f32 %v4175_v11, %v3930_v12  ;;  %v3945_v13 = vadd.f32 %v4176_v38, %v3937_v51 }
0x1e9a   :  { %v3946_v4 = vadd.f32 %v4176_v38, %v3938_v10 }
0x1e9c   :  { %v3947_v49 = vpack.c.bf16 %v3946_v4, %v3945_v13 }
0x1e9e   :  { %4526 = vmatmul.mubr.msk.bf16.vlgmr.msra.gmra.mrb[60].mxu0 %vm83_vm0, %v3947_v49 }
0x1f71   :  { %v4008_v16 = vpop.f32.mrb[60].mxu0 }
0x1f72   :  { %v4009_v18 = vadd.f32 %v4177_v14, %v4008_v16  ;;  %v4527_v19 = vpop.f32.mrb[61].mxu0 }
0x1f73   :  { %v4011_v20 = vpop.f32.mrb[62].mxu0 }
0x1f74   :  { %4015 = vst [vmem:[#allocation2] sm:$0xff] %v4009_v18  ;;  %v4012_v21 = vadd.f32 %v4177_v14, %v4011_v20  ;;  %v4528_v22 = vpop.f32.mrb[63].mxu0 }
0x1f76   :  { %4016 = vst [vmem:[#allocation2 + $0x8] sm:$0xff] %v4012_v21 }
0x1f77   :  { %4729 = shalt.err (!%p4726_p4)
}
0x1f78   :  { %s4730_s15 = scalar_lea.hbm %s5591_s24, 256 }
0x1f79   :  { %p4731_p5 = scmp.ne.s32.totalorder %s5591_s24, %s4730_s15  ;;  %p4734_p6 = scmp.lt.u32.totalorder %s4730_s15, %s5591_s24 }
0x1f7b   :  { %p4736_p7 = pnand %p4734_p6, %p4731_p5 }
0x1f7d   :  { %4739 = shalt.err (!%p4736_p7)
}
0x1f7e   :  { %s4758_s9 = smov 128  }
0x1f7f   :  { %4028 = dma.vmem_to_hbm [thread:$0]  %s4023_s16, 256, %s5591_s24, [#allocation3], %s4758_s9, %s4758_s9, %s5636_s8  }
0x1f80   :  { %4740 = dma.done.wait [#allocation3], 256  }
0x1f81   :  { %4741 = vsyncadd [#allocation3], 4294967040 }
0x1f82   :  { %4032 = vsyncpa [#allocation3], 1 }

</bundles_post_ra>
